<compile_context>
chip_gen: v7x
topology: tpu7x:2x2x1
jax: 0.10.0
libtpu: 0.0.40
codegen_flags: <defaults>
</compile_context>

<pallas_src>
import functools

import jax
import jax.numpy as jnp
import numpy as np
from jax.experimental import pallas as pl
from jax.experimental.pallas import tpu as pltpu

LANE = 128        # vreg lane width
SUBLANE = 8       # f32 sublane count
MATMUL_DTYPE = jnp.bfloat16   # MXU-native dtype on v5e/v6e/v7x


def _round_up(x, m):
    return ((x + m - 1) // m) * m


def _sigmoid(x):
    # sigmoid(x) == 0.5*tanh(0.5*x)+0.5 : a single EUP op (vs exp + divide).
    return 0.5 * jnp.tanh(0.5 * x) + 0.5


def _vmem_budget_bytes():
    """(vmem_limit_bytes for CompilerParams, block-sizing budget)."""
    try:
        cap = int(pltpu.get_tpu_info().vmem_capacity_bytes)
    except Exception:
        cap = 64 << 20                       # conservative (v7x per-core VMEM)
    limit = min(cap // 2, 64 << 20)
    return limit, (limit * 3) // 4


def _pick_time_chunk(T, bb, k, hp, budget, cap=128):
    """Largest divisor of T (<= cap) whose per-grid-step working set fits `budget`."""
    g = 4 * hp

    def est(tc):
        rows = tc * bb
        io_blocks = 2 * (rows * k + rows * hp) * 2                  # bf16 in/out, double-buffered
        weights = 2 * ((k * g + hp * g + hp * LANE) * 2 + (g + LANE) * 4)
        scratch = rows * g * 4 + 2 * bb * hp * 4                    # xg (f32) + h + c
        return io_blocks + weights + scratch

    best = 1
    for d in range(1, min(T, cap) + 1):
        if T % d:
            continue
        rows_ok = ((d * bb) % 16 == 0) or (d == T)                  # bf16-friendly sublanes
        if rows_ok and est(d) <= budget:
            best = d
    return best


# ----------------------------- in-kernel recurrence -----------------------------
def _run_chunk(xg_sc, w_hh_ref, h_sc, c_sc, y_ref=None):
    """Run t_chunk recurrent steps.  Gates = xg[t] + h @ W_hh (bias already in xg)."""
    bb, hp = h_sc.shape
    t_chunk = xg_sc.shape[0] // bb

    def step(t, carry):
        h, c = carry
        row = pl.multiple_of(t * bb, SUBLANE)
        gates = xg_sc[pl.ds(row, bb), :] + jnp.dot(
            h.astype(w_hh_ref.dtype), w_hh_ref[...],
            preferred_element_type=jnp.float32)                     # (bb, 4*hp) f32
        i_g = _sigmoid(gates[:, 0 * hp:1 * hp])
        f_g = _sigmoid(gates[:, 1 * hp:2 * hp])
        g_g = jnp.tanh(gates[:, 2 * hp:3 * hp])
        o_g = _sigmoid(gates[:, 3 * hp:4 * hp])
        c = f_g * c + i_g * g_g
        h = o_g * jnp.tanh(c)
        if y_ref is not None:
            y_ref[pl.ds(row, bb), :] = h.astype(y_ref.dtype)
        return h, c

    return jax.lax.fori_loop(0, t_chunk, step, (h_sc[...], c_sc[...]),
                             unroll=min(8, t_chunk))


# ----------------- middle layers: fused projection + recurrence, emit sequence -----------------
def _lstm_seq_kernel(x_ref, w_ih_ref, w_hh_ref, b_ref, y_ref, xg_sc, h_sc, c_sc):
    @pl.when(pl.program_id(1) == 0)
    def _():
        h_sc[...] = jnp.zeros_like(h_sc)
        c_sc[...] = jnp.zeros_like(c_sc)

    # Whole-chunk input projection: one large bf16 MXU GEMM, f32 accumulation.
    xg_sc[...] = (
        jnp.dot(x_ref[...], w_ih_ref[...], preferred_element_type=jnp.float32)
        + b_ref[...]
    )

    h, c = _run_chunk(xg_sc, w_hh_ref, h_sc, c_sc, y_ref)
    h_sc[...] = h
    c_sc[...] = c


def lstm_layer_seq(seq, w_ih, w_hh, b, *, bb, t_chunk, vmem_limit):
    """seq: (nB, T*bb, K) bf16  ->  hidden sequence (nB, T*bb, Hp) bf16."""
    nB, TBB, K = seq.shape
    Hp = w_hh.shape[0]
    G = 4 * Hp
    rows = t_chunk * bb
    nT = (TBB // bb) // t_chunk
    return pl.pallas_call(
        _lstm_seq_kernel,
        out_shape=jax.ShapeDtypeStruct((nB, TBB, Hp), MATMUL_DTYPE),
        grid_spec=pltpu.PrefetchScalarGridSpec(
            num_scalar_prefetch=0,
            grid=(nB, nT),
            in_specs=[
                pl.BlockSpec((None, rows, K), lambda bblk, tc: (bblk, tc, 0)),
                pl.BlockSpec((K, G), lambda bblk, tc: (0, 0)),
                pl.BlockSpec((Hp, G), lambda bblk, tc: (0, 0)),
                pl.BlockSpec((1, G), lambda bblk, tc: (0, 0)),
            ],
            out_specs=pl.BlockSpec((None, rows, Hp), lambda bblk, tc: (bblk, tc, 0)),
            scratch_shapes=[
                pltpu.VMEM((rows, G), jnp.float32),   # per-chunk input gates
                pltpu.VMEM((bb, Hp), jnp.float32),    # h state
                pltpu.VMEM((bb, Hp), jnp.float32),    # c state
            ],
        ),
        compiler_params=pltpu.CompilerParams(
            dimension_semantics=("parallel", "arbitrary"),   # batch blocks parallel, time serial
            vmem_limit_bytes=vmem_limit,
        ),
    )(seq, w_ih, w_hh, b)


# ---------------- last layer: fused projection + recurrence + FC head (no seq writeback) ----------------
def _lstm_last_fc_kernel(x_ref, w_ih_ref, w_hh_ref, b_ref, w_fc_ref, b_fc_ref,
                         o_ref, xg_sc, h_sc, c_sc):
    @pl.when(pl.program_id(1) == 0)
    def _():
        h_sc[...] = jnp.zeros_like(h_sc)
        c_sc[...] = jnp.zeros_like(c_sc)

    xg_sc[...] = (
        jnp.dot(x_ref[...], w_ih_ref[...], preferred_element_type=jnp.float32)
        + b_ref[...]
    )

    h, c = _run_chunk(xg_sc, w_hh_ref, h_sc, c_sc, None)
    h_sc[...] = h
    c_sc[...] = c

    # dropout(out[:, -1, :]) is identity in eval mode; FC fused on the final h.
    @pl.when(pl.program_id(1) == pl.num_programs(1) - 1)
    def _():
        o_ref[...] = (
            jnp.dot(h.astype(w_fc_ref.dtype), w_fc_ref[...],
                    preferred_element_type=jnp.float32)
            + b_fc_ref[...]
        ).astype(o_ref.dtype)


def lstm_layer_last_fc(seq, w_ih, w_hh, b, w_fc, b_fc, *, bb, t_chunk, vmem_limit):
    """Last LSTM layer + fused Linear head.  Returns (nB*bb, Op) f32."""
    nB, TBB, K = seq.shape
    Hp = w_hh.shape[0]
    G = 4 * Hp
    Op = w_fc.shape[1]
    rows = t_chunk * bb
    nT = (TBB // bb) // t_chunk
    return pl.pallas_call(
        _lstm_last_fc_kernel,
        out_shape=jax.ShapeDtypeStruct((nB * bb, Op), jnp.float32),
        grid_spec=pltpu.PrefetchScalarGridSpec(
            num_scalar_prefetch=0,
            grid=(nB, nT),
            in_specs=[
                pl.BlockSpec((None, rows, K), lambda bblk, tc: (bblk, tc, 0)),
                pl.BlockSpec((K, G), lambda bblk, tc: (0, 0)),
                pl.BlockSpec((Hp, G), lambda bblk, tc: (0, 0)),
                pl.BlockSpec((1, G), lambda bblk, tc: (0, 0)),
                pl.BlockSpec((Hp, Op), lambda bblk, tc: (0, 0)),
                pl.BlockSpec((1, Op), lambda bblk, tc: (0, 0)),
            ],
            out_specs=pl.BlockSpec((bb, Op), lambda bblk, tc: (bblk, 0)),
            scratch_shapes=[
                pltpu.VMEM((rows, G), jnp.float32),
                pltpu.VMEM((bb, Hp), jnp.float32),
                pltpu.VMEM((bb, Hp), jnp.float32),
            ],
        ),
        compiler_params=pltpu.CompilerParams(
            dimension_semantics=("parallel", "arbitrary"),
            vmem_limit_bytes=vmem_limit,
        ),
    )(seq, w_ih, w_hh, b, w_fc, b_fc)


# --------------------------------- parameters ---------------------------------
def init_params(key, input_size, hidden_size, num_layers, output_size):
    """PyTorch-style uniform(-1/sqrt(H), 1/sqrt(H)) init, raw (unpadded) layout."""
    k = 1.0 / np.sqrt(hidden_size)
    params = {"layers": []}
    for layer in range(num_layers):
        in_sz = input_size if layer == 0 else hidden_size
        key, k1, k2, k3, k4 = jax.random.split(key, 5)
        params["layers"].append(
            {
                "w_ih": jax.random.uniform(k1, (4 * hidden_size, in_sz), jnp.float32, -k, k),
                "w_hh": jax.random.uniform(k2, (4 * hidden_size, hidden_size), jnp.float32, -k, k),
                "b_ih": jax.random.uniform(k3, (4 * hidden_size,), jnp.float32, -k, k),
                "b_hh": jax.random.uniform(k4, (4 * hidden_size,), jnp.float32, -k, k),
            }
        )
    key, k1, k2 = jax.random.split(key, 3)
    params["w_fc"] = jax.random.uniform(k1, (output_size, hidden_size), jnp.float32, -k, k)
    params["b_fc"] = jax.random.uniform(k2, (output_size,), jnp.float32, -k, k)
    return params


def prepare_kernel_params(params, input_size, hidden_size, output_size):
    """Transpose + pad weights so each gate gets a 128-lane-aligned block; weights in bf16.

    Padded weight rows/cols and bias lanes are zero, so padded hidden lanes stay
    exactly zero through the recurrence -> padding is numerically exact.
    Biases stay f32 (added after the f32-accumulated matmul).
    """
    H = hidden_size
    Hp = _round_up(H, LANE)
    Op = _round_up(output_size, LANE)
    kp = {"layers": []}
    for li, lp in enumerate(params["layers"]):
        in_sz = input_size if li == 0 else hidden_size
        in_pad = in_sz if li == 0 else Hp      # later layers consume the padded hidden seq
        w_ih_t = lp["w_ih"].T                  # (in_sz, 4H), gate order [i, f, g, o]
        w_hh_t = lp["w_hh"].T                  # (H, 4H)
        b = lp["b_ih"] + lp["b_hh"]            # (4H,)
        w_ih_pad = jnp.zeros((in_pad, 4 * Hp), jnp.float32)
        w_hh_pad = jnp.zeros((Hp, 4 * Hp), jnp.float32)
        b_pad = jnp.zeros((1, 4 * Hp), jnp.float32)
        for g in range(4):
            w_ih_pad = w_ih_pad.at[:in_sz, g * Hp:g * Hp + H].set(w_ih_t[:, g * H:(g + 1) * H])
            w_hh_pad = w_hh_pad.at[:H, g * Hp:g * Hp + H].set(w_hh_t[:, g * H:(g + 1) * H])
            b_pad = b_pad.at[0, g * Hp:g * Hp + H].set(b[g * H:(g + 1) * H])
        kp["layers"].append(
            {
                "w_ih": w_ih_pad.astype(MATMUL_DTYPE),
                "w_hh": w_hh_pad.astype(MATMUL_DTYPE),
                "b": b_pad,                                   # f32
            }
        )
    kp["w_fc"] = (
        jnp.zeros((Hp, Op), jnp.float32).at[:H, :output_size].set(params["w_fc"].T)
    ).astype(MATMUL_DTYPE)
    kp["b_fc"] = jnp.zeros((1, Op), jnp.float32).at[0, :output_size].set(params["b_fc"])
    return kp


# --------------------------------- full model ---------------------------------
@functools.partial(jax.jit, static_argnames=("output_size", "batch_block"))
def lstm_model_forward(kparams, x, output_size, batch_block=None):
    """x: (B, T, I) batch_first (as in the PyTorch module). Returns (B, output_size).

    batch_block: optional batch-block size (multiple of 8, dividing padded batch).
    On v7x with padded batch >= 16, set e.g. batch_block=Bp//2 to use both TensorCores.
    """
    B, T, I = x.shape
    Hp = kparams["layers"][0]["w_hh"].shape[0]
    Bp = _round_up(B, SUBLANE)

    bb = Bp if batch_block is None else int(batch_block)
    if bb < SUBLANE or Bp % bb != 0:
        bb = Bp
    nB = Bp // bb

    vmem_limit, budget = _vmem_budget_bytes()
    # Size the time chunk against the widest layer (K = Hp for layers > 0).
    t_chunk = _pick_time_chunk(T, bb, max(I, Hp), Hp, budget)

    # time-major, batch padded to full sublane groups
    seq = jnp.transpose(x, (1, 0, 2)).astype(jnp.float32)        # (T, B, I)
    if Bp != B:
        seq = jnp.pad(seq, ((0, 0), (0, Bp - B), (0, 0)))
    # group contiguous batch blocks: (nB, T*bb, I), rows within a block ordered (t, b)
    seq = (
        seq.reshape(T, nB, bb, I)
        .transpose(1, 0, 2, 3)
        .reshape(nB, T * bb, I)
        .astype(MATMUL_DTYPE)
    )

    out = None
    n_layers = len(kparams["layers"])
    for li, lp in enumerate(kparams["layers"]):
        if li < n_layers - 1:
            seq = lstm_layer_seq(
                seq, lp["w_ih"], lp["w_hh"], lp["b"],
                bb=bb, t_chunk=t_chunk, vmem_limit=vmem_limit,
            )                                                    # (nB, T*bb, Hp) bf16
            # inter-layer dropout: identity in eval mode
        else:
            out = lstm_layer_last_fc(
                seq, lp["w_ih"], lp["w_hh"], lp["b"],
                kparams["w_fc"], kparams["b_fc"],
                bb=bb, t_chunk=t_chunk, vmem_limit=vmem_limit,
            )                                                    # (Bp, Op) f32
    return out[:B, :output_size]


# --------------------------- pure-JAX reference check ---------------------------
def _reference_forward(params, x):
    h_seq = jnp.transpose(x, (1, 0, 2)).astype(jnp.float32)
    T, B, _ = h_seq.shape
    for lp in params["layers"]:
        H = lp["w_hh"].shape[1]
        w_ih_t, w_hh_t = lp["w_ih"].T, lp["w_hh"].T
        b = (lp["b_ih"] + lp["b_hh"])[None, :]
        h = jnp.zeros((B, H), jnp.float32)
        c = jnp.zeros((B, H), jnp.float32)
        outs = []
        for t in range(T):
            gates = h_seq[t] @ w_ih_t + h @ w_hh_t + b
            i = jax.nn.sigmoid(gates[:, 0 * H:1 * H])
            f = jax.nn.sigmoid(gates[:, 1 * H:2 * H])
            g = jnp.tanh(gates[:, 2 * H:3 * H])
            o = jax.nn.sigmoid(gates[:, 3 * H:4 * H])
            c = f * c + i * g
            h = o * jnp.tanh(c)
            outs.append(h)
        h_seq = jnp.stack(outs, axis=0)
    return h_seq[-1] @ params["w_fc"].T + params["b_fc"][None, :]


if __name__ == "__main__":
    # Small shapes consistent with the module's forward: (batch, seq, input_size)
    batch, seq_len = 2, 8
    input_size, hidden_size, num_layers, output_size = 8, 32, 2, 4

    key = jax.random.PRNGKey(0)
    pkey, xkey = jax.random.split(key)
    params = init_params(pkey, input_size, hidden_size, num_layers, output_size)
    kparams = prepare_kernel_params(params, input_size, hidden_size, output_size)
    x = jax.random.normal(xkey, (batch, seq_len, input_size), jnp.float32)

    out = lstm_model_forward(kparams, x, output_size=output_size)
    out = jax.block_until_ready(out)
    assert out.shape == (batch, output_size)

    ref = jax.block_until_ready(_reference_forward(params, x))
    # bf16 MXU data path (f32 accumulation / gate math) -> bf16-level tolerance vs f32 ref.
    np.testing.assert_allclose(np.asarray(out), np.asarray(ref), rtol=2e-2, atol=2e-2)

    print("KERNEL_OK")
</pallas_src>

<mosaic_0001>
module attributes {stable_mosaic.version = 11 : i64} {
  func.func @_lstm_seq_kernel(%arg0: i32, %arg1: i32, %arg2: memref<1x64x8xbf16, #tpu.memory_space<vmem>>, %arg3: memref<8x512xbf16, #tpu.memory_space<vmem>>, %arg4: memref<128x512xbf16, #tpu.memory_space<vmem>>, %arg5: memref<1x512xf32, #tpu.memory_space<vmem>>, %arg6: memref<1x64x128xbf16, #tpu.memory_space<vmem>>, %arg7: memref<64x512xf32, #tpu.memory_space<vmem>>, %arg8: memref<8x128xf32, #tpu.memory_space<vmem>>, %arg9: memref<8x128xf32, #tpu.memory_space<vmem>>) attributes {dimension_semantics = [#tpu.dimension_semantics<parallel>, #tpu.dimension_semantics<arbitrary>], iteration_bounds = array<i64: 1, 1>, scalar_prefetch = 0 : i64, scratch_operands = 3 : i64, tpu.core_type = #tpu.core_type<tc>, window_params = [{transform_indices = @transform_0, window_bounds = array<i64: 1, 64, 8>}, {pipeline_mode = #tpu.pipeline_mode<synchronous>, transform_indices = @transform_1, window_bounds = array<i64: 8, 512>}, {pipeline_mode = #tpu.pipeline_mode<synchronous>, transform_indices = @transform_2, window_bounds = array<i64: 128, 512>}, {pipeline_mode = #tpu.pipeline_mode<synchronous>, transform_indices = @transform_3, window_bounds = array<i64: 1, 512>}, {transform_indices = @transform_4, window_bounds = array<i64: 1, 64, 128>}]} {
    %c0_i32 = arith.constant 0 : i32
    %0 = arith.cmpi eq, %arg1, %c0_i32 : i32
    %1 = arith.extui %0 : i1 to i32
    %c0_i32_0 = arith.constant 0 : i32
    %2 = arith.cmpi ne, %1, %c0_i32_0 : i32
    scf.if %2 {
      %cst_146 = arith.constant 0.000000e+00 : f32
      %367 = vector.broadcast %cst_146 : f32 to vector<8x128xf32>
      %c0_147 = arith.constant 0 : index
      %c0_148 = arith.constant 0 : index
      %368 = vector.load %arg8[%c0_147, %c0_148] : memref<8x128xf32, #tpu.memory_space<vmem>>, vector<8x128xf32>
      tpu.vector_store %arg8[%c0_147, %c0_148], %367 {strides = array<i32>} : memref<8x128xf32, #tpu.memory_space<vmem>>, vector<8x128xf32>,
      %cst_149 = arith.constant 0.000000e+00 : f32
      %369 = vector.broadcast %cst_149 : f32 to vector<8x128xf32>
      %c0_150 = arith.constant 0 : index
      %c0_151 = arith.constant 0 : index
      %370 = vector.load %arg9[%c0_150, %c0_151] : memref<8x128xf32, #tpu.memory_space<vmem>>, vector<8x128xf32>
      tpu.vector_store %arg9[%c0_150, %c0_151], %369 {strides = array<i32>} : memref<8x128xf32, #tpu.memory_space<vmem>>, vector<8x128xf32>,
    } else {
    }
    %c0 = arith.constant 0 : index
    %c0_1 = arith.constant 0 : index
    %c0_2 = arith.constant 0 : index
    %3 = vector.load %arg2[%c0, %c0_1, %c0_2] : memref<1x64x8xbf16, #tpu.memory_space<vmem>>, vector<1x64x8xbf16>
    %4 = vector.shape_cast %3 : vector<1x64x8xbf16> to vector<64x8xbf16>
    %c0_3 = arith.constant 0 : index
    %c0_4 = arith.constant 0 : index
    %5 = vector.load %arg3[%c0_3, %c0_4] : memref<8x512xbf16, #tpu.memory_space<vmem>>, vector<8x512xbf16>
    %cst = arith.constant dense<0.000000e+00> : vector<64x512xf32>
    %6 = tpu.matmul %4, %5, %cst {dimension_numbers = #tpu.dot_dimension_numbers<[1], [0], [0], [1], [0, 0, 1, 1], [], []>} : vector<64x8xbf16>, vector<8x512xbf16>, vector<64x512xf32> -> vector<64x512xf32>
    %c0_5 = arith.constant 0 : index
    %c0_6 = arith.constant 0 : index
    %7 = vector.load %arg5[%c0_5, %c0_6] : memref<1x512xf32, #tpu.memory_space<vmem>>, vector<1x512xf32>
    %8 = vector.broadcast %7 : vector<1x512xf32> to vector<64x512xf32>
    %9 = arith.addf %6, %8 : vector<64x512xf32>
    %c0_7 = arith.constant 0 : index
    %c0_8 = arith.constant 0 : index
    %10 = vector.load %arg7[%c0_7, %c0_8] : memref<64x512xf32, #tpu.memory_space<vmem>>, vector<64x512xf32>
    tpu.vector_store %arg7[%c0_7, %c0_8], %9 {strides = array<i32>} : memref<64x512xf32, #tpu.memory_space<vmem>>, vector<64x512xf32>,
    %c0_9 = arith.constant 0 : index
    %c0_10 = arith.constant 0 : index
    %11 = vector.load %arg8[%c0_9, %c0_10] : memref<8x128xf32, #tpu.memory_space<vmem>>, vector<8x128xf32>
    %c0_11 = arith.constant 0 : index
    %c0_12 = arith.constant 0 : index
    %12 = vector.load %arg9[%c0_11, %c0_12] : memref<8x128xf32, #tpu.memory_space<vmem>>, vector<8x128xf32>
    %c0_i32_13 = arith.constant 0 : i32
    %c8_i32 = arith.constant 8 : i32
    %13 = arith.muli %c0_i32_13, %c8_i32 : i32
    %14 = tpu.assume_multiple %13, 8 : i32
    %15 = arith.index_cast %14 : i32 to index
    %c0_14 = arith.constant 0 : index
    %16 = vector.load %arg7[%15, %c0_14] : memref<64x512xf32, #tpu.memory_space<vmem>>, vector<8x512xf32>
    %17 = arith.truncf %11 : vector<8x128xf32> to vector<8x128xbf16>
    %c0_15 = arith.constant 0 : index
    %c0_16 = arith.constant 0 : index
    %18 = vector.load %arg4[%c0_15, %c0_16] : memref<128x512xbf16, #tpu.memory_space<vmem>>, vector<128x512xbf16>
    %cst_17 = arith.constant dense<0.000000e+00> : vector<8x512xf32>
    %19 = tpu.matmul %17, %18, %cst_17 {dimension_numbers = #tpu.dot_dimension_numbers<[1], [0], [0], [1], [0, 0, 1, 1], [], []>} : vector<8x128xbf16>, vector<128x512xbf16>, vector<8x512xf32> -> vector<8x512xf32>
    %20 = arith.addf %16, %19 : vector<8x512xf32>
    %21 = vector.extract_strided_slice %20 {offsets = [0, 0], sizes = [8, 128], strides = [1, 1]} : vector<8x512xf32> to vector<8x128xf32>
    %cst_18 = arith.constant 5.000000e-01 : f32
    %22 = vector.broadcast %cst_18 : f32 to vector<8x128xf32>
    %23 = arith.mulf %22, %21 : vector<8x128xf32>
    %24 = math.tanh %23 : vector<8x128xf32>
    %cst_19 = arith.constant 5.000000e-01 : f32
    %25 = vector.broadcast %cst_19 : f32 to vector<8x128xf32>
    %26 = arith.mulf %25, %24 : vector<8x128xf32>
    %cst_20 = arith.constant 5.000000e-01 : f32
    %27 = vector.broadcast %cst_20 : f32 to vector<8x128xf32>
    %28 = arith.addf %26, %27 : vector<8x128xf32>
    %29 = vector.extract_strided_slice %20 {offsets = [0, 128], sizes = [8, 128], strides = [1, 1]} : vector<8x512xf32> to vector<8x128xf32>
    %cst_21 = arith.constant 5.000000e-01 : f32
    %30 = vector.broadcast %cst_21 : f32 to vector<8x128xf32>
    %31 = arith.mulf %30, %29 : vector<8x128xf32>
    %32 = math.tanh %31 : vector<8x128xf32>
    %cst_22 = arith.constant 5.000000e-01 : f32
    %33 = vector.broadcast %cst_22 : f32 to vector<8x128xf32>
    %34 = arith.mulf %33, %32 : vector<8x128xf32>
    %cst_23 = arith.constant 5.000000e-01 : f32
    %35 = vector.broadcast %cst_23 : f32 to vector<8x128xf32>
    %36 = arith.addf %34, %35 : vector<8x128xf32>
    %37 = vector.extract_strided_slice %20 {offsets = [0, 256], sizes = [8, 128], strides = [1, 1]} : vector<8x512xf32> to vector<8x128xf32>
    %38 = math.tanh %37 : vector<8x128xf32>
    %39 = vector.extract_strided_slice %20 {offsets = [0, 384], sizes = [8, 128], strides = [1, 1]} : vector<8x512xf32> to vector<8x128xf32>
    %cst_24 = arith.constant 5.000000e-01 : f32
    %40 = vector.broadcast %cst_24 : f32 to vector<8x128xf32>
    %41 = arith.mulf %40, %39 : vector<8x128xf32>
    %42 = math.tanh %41 : vector<8x128xf32>
    %cst_25 = arith.constant 5.000000e-01 : f32
    %43 = vector.broadcast %cst_25 : f32 to vector<8x128xf32>
    %44 = arith.mulf %43, %42 : vector<8x128xf32>
    %cst_26 = arith.constant 5.000000e-01 : f32
    %45 = vector.broadcast %cst_26 : f32 to vector<8x128xf32>
    %46 = arith.addf %44, %45 : vector<8x128xf32>
    %47 = arith.mulf %36, %12 : vector<8x128xf32>
    %48 = arith.mulf %28, %38 : vector<8x128xf32>
    %49 = arith.addf %47, %48 : vector<8x128xf32>
    %50 = math.tanh %49 : vector<8x128xf32>
    %51 = arith.mulf %46, %50 : vector<8x128xf32>
    %52 = arith.truncf %51 : vector<8x128xf32> to vector<8x128xbf16>
    %c0_27 = arith.constant 0 : index
    %53 = arith.index_cast %14 : i32 to index
    %c0_28 = arith.constant 0 : index
    %54 = vector.load %arg6[%c0_27, %53, %c0_28] : memref<1x64x128xbf16, #tpu.memory_space<vmem>>, vector<1x8x128xbf16>
    %55 = vector.shape_cast %54 : vector<1x8x128xbf16> to vector<8x128xbf16>
    %56 = vector.shape_cast %52 : vector<8x128xbf16> to vector<1x8x128xbf16>
    tpu.vector_store %arg6[%c0_27, %53, %c0_28], %56 {strides = array<i32>} : memref<1x64x128xbf16, #tpu.memory_space<vmem>>, vector<1x8x128xbf16>,
    %c1_i32 = arith.constant 1 : i32
    %c8_i32_29 = arith.constant 8 : i32
    %57 = arith.muli %c1_i32, %c8_i32_29 : i32
    %58 = tpu.assume_multiple %57, 8 : i32
    %59 = arith.index_cast %58 : i32 to index
    %c0_30 = arith.constant 0 : index
    %60 = vector.load %arg7[%59, %c0_30] : memref<64x512xf32, #tpu.memory_space<vmem>>, vector<8x512xf32>
    %61 = arith.truncf %51 : vector<8x128xf32> to vector<8x128xbf16>
    %c0_31 = arith.constant 0 : index
    %c0_32 = arith.constant 0 : index
    %62 = vector.load %arg4[%c0_31, %c0_32] : memref<128x512xbf16, #tpu.memory_space<vmem>>, vector<128x512xbf16>
    %cst_33 = arith.constant dense<0.000000e+00> : vector<8x512xf32>
    %63 = tpu.matmul %61, %62, %cst_33 {dimension_numbers = #tpu.dot_dimension_numbers<[1], [0], [0], [1], [0, 0, 1, 1], [], []>} : vector<8x128xbf16>, vector<128x512xbf16>, vector<8x512xf32> -> vector<8x512xf32>
    %64 = arith.addf %60, %63 : vector<8x512xf32>
    %65 = vector.extract_strided_slice %64 {offsets = [0, 0], sizes = [8, 128], strides = [1, 1]} : vector<8x512xf32> to vector<8x128xf32>
    %cst_34 = arith.constant 5.000000e-01 : f32
    %66 = vector.broadcast %cst_34 : f32 to vector<8x128xf32>
    %67 = arith.mulf %66, %65 : vector<8x128xf32>
    %68 = math.tanh %67 : vector<8x128xf32>
    %cst_35 = arith.constant 5.000000e-01 : f32
    %69 = vector.broadcast %cst_35 : f32 to vector<8x128xf32>
    %70 = arith.mulf %69, %68 : vector<8x128xf32>
    %cst_36 = arith.constant 5.000000e-01 : f32
    %71 = vector.broadcast %cst_36 : f32 to vector<8x128xf32>
    %72 = arith.addf %70, %71 : vector<8x128xf32>
    %73 = vector.extract_strided_slice %64 {offsets = [0, 128], sizes = [8, 128], strides = [1, 1]} : vector<8x512xf32> to vector<8x128xf32>
    %cst_37 = arith.constant 5.000000e-01 : f32
    %74 = vector.broadcast %cst_37 : f32 to vector<8x128xf32>
    %75 = arith.mulf %74, %73 : vector<8x128xf32>
    %76 = math.tanh %75 : vector<8x128xf32>
    %cst_38 = arith.constant 5.000000e-01 : f32
    %77 = vector.broadcast %cst_38 : f32 to vector<8x128xf32>
    %78 = arith.mulf %77, %76 : vector<8x128xf32>
    %cst_39 = arith.constant 5.000000e-01 : f32
    %79 = vector.broadcast %cst_39 : f32 to vector<8x128xf32>
    %80 = arith.addf %78, %79 : vector<8x128xf32>
    %81 = vector.extract_strided_slice %64 {offsets = [0, 256], sizes = [8, 128], strides = [1, 1]} : vector<8x512xf32> to vector<8x128xf32>
    %82 = math.tanh %81 : vector<8x128xf32>
    %83 = vector.extract_strided_slice %64 {offsets = [0, 384], sizes = [8, 128], strides = [1, 1]} : vector<8x512xf32> to vector<8x128xf32>
    %cst_40 = arith.constant 5.000000e-01 : f32
    %84 = vector.broadcast %cst_40 : f32 to vector<8x128xf32>
    %85 = arith.mulf %84, %83 : vector<8x128xf32>
    %86 = math.tanh %85 : vector<8x128xf32>
    %cst_41 = arith.constant 5.000000e-01 : f32
    %87 = vector.broadcast %cst_41 : f32 to vector<8x128xf32>
    %88 = arith.mulf %87, %86 : vector<8x128xf32>
    %cst_42 = arith.constant 5.000000e-01 : f32
    %89 = vector.broadcast %cst_42 : f32 to vector<8x128xf32>
    %90 = arith.addf %88, %89 : vector<8x128xf32>
    %91 = arith.mulf %80, %49 : vector<8x128xf32>
    %92 = arith.mulf %72, %82 : vector<8x128xf32>
    %93 = arith.addf %91, %92 : vector<8x128xf32>
    %94 = math.tanh %93 : vector<8x128xf32>
    %95 = arith.mulf %90, %94 : vector<8x128xf32>
    %96 = arith.truncf %95 : vector<8x128xf32> to vector<8x128xbf16>
    %c0_43 = arith.constant 0 : index
    %97 = arith.index_cast %58 : i32 to index
    %c0_44 = arith.constant 0 : index
    %98 = vector.load %arg6[%c0_43, %97, %c0_44] : memref<1x64x128xbf16, #tpu.memory_space<vmem>>, vector<1x8x128xbf16>
    %99 = vector.shape_cast %98 : vector<1x8x128xbf16> to vector<8x128xbf16>
    %100 = vector.shape_cast %96 : vector<8x128xbf16> to vector<1x8x128xbf16>
    tpu.vector_store %arg6[%c0_43, %97, %c0_44], %100 {strides = array<i32>} : memref<1x64x128xbf16, #tpu.memory_space<vmem>>, vector<1x8x128xbf16>,
    %c2_i32 = arith.constant 2 : i32
    %c8_i32_45 = arith.constant 8 : i32
    %101 = arith.muli %c2_i32, %c8_i32_45 : i32
    %102 = tpu.assume_multiple %101, 8 : i32
    %103 = arith.index_cast %102 : i32 to index
    %c0_46 = arith.constant 0 : index
    %104 = vector.load %arg7[%103, %c0_46] : memref<64x512xf32, #tpu.memory_space<vmem>>, vector<8x512xf32>
    %105 = arith.truncf %95 : vector<8x128xf32> to vector<8x128xbf16>
    %c0_47 = arith.constant 0 : index
    %c0_48 = arith.constant 0 : index
    %106 = vector.load %arg4[%c0_47, %c0_48] : memref<128x512xbf16, #tpu.memory_space<vmem>>, vector<128x512xbf16>
    %cst_49 = arith.constant dense<0.000000e+00> : vector<8x512xf32>
    %107 = tpu.matmul %105, %106, %cst_49 {dimension_numbers = #tpu.dot_dimension_numbers<[1], [0], [0], [1], [0, 0, 1, 1], [], []>} : vector<8x128xbf16>, vector<128x512xbf16>, vector<8x512xf32> -> vector<8x512xf32>
    %108 = arith.addf %104, %107 : vector<8x512xf32>
    %109 = vector.extract_strided_slice %108 {offsets = [0, 0], sizes = [8, 128], strides = [1, 1]} : vector<8x512xf32> to vector<8x128xf32>
    %cst_50 = arith.constant 5.000000e-01 : f32
    %110 = vector.broadcast %cst_50 : f32 to vector<8x128xf32>
    %111 = arith.mulf %110, %109 : vector<8x128xf32>
    %112 = math.tanh %111 : vector<8x128xf32>
    %cst_51 = arith.constant 5.000000e-01 : f32
    %113 = vector.broadcast %cst_51 : f32 to vector<8x128xf32>
    %114 = arith.mulf %113, %112 : vector<8x128xf32>
    %cst_52 = arith.constant 5.000000e-01 : f32
    %115 = vector.broadcast %cst_52 : f32 to vector<8x128xf32>
    %116 = arith.addf %114, %115 : vector<8x128xf32>
    %117 = vector.extract_strided_slice %108 {offsets = [0, 128], sizes = [8, 128], strides = [1, 1]} : vector<8x512xf32> to vector<8x128xf32>
    %cst_53 = arith.constant 5.000000e-01 : f32
    %118 = vector.broadcast %cst_53 : f32 to vector<8x128xf32>
    %119 = arith.mulf %118, %117 : vector<8x128xf32>
    %120 = math.tanh %119 : vector<8x128xf32>
    %cst_54 = arith.constant 5.000000e-01 : f32
    %121 = vector.broadcast %cst_54 : f32 to vector<8x128xf32>
    %122 = arith.mulf %121, %120 : vector<8x128xf32>
    %cst_55 = arith.constant 5.000000e-01 : f32
    %123 = vector.broadcast %cst_55 : f32 to vector<8x128xf32>
    %124 = arith.addf %122, %123 : vector<8x128xf32>
    %125 = vector.extract_strided_slice %108 {offsets = [0, 256], sizes = [8, 128], strides = [1, 1]} : vector<8x512xf32> to vector<8x128xf32>
    %126 = math.tanh %125 : vector<8x128xf32>
    %127 = vector.extract_strided_slice %108 {offsets = [0, 384], sizes = [8, 128], strides = [1, 1]} : vector<8x512xf32> to vector<8x128xf32>
    %cst_56 = arith.constant 5.000000e-01 : f32
    %128 = vector.broadcast %cst_56 : f32 to vector<8x128xf32>
    %129 = arith.mulf %128, %127 : vector<8x128xf32>
    %130 = math.tanh %129 : vector<8x128xf32>
    %cst_57 = arith.constant 5.000000e-01 : f32
    %131 = vector.broadcast %cst_57 : f32 to vector<8x128xf32>
    %132 = arith.mulf %131, %130 : vector<8x128xf32>
    %cst_58 = arith.constant 5.000000e-01 : f32
    %133 = vector.broadcast %cst_58 : f32 to vector<8x128xf32>
    %134 = arith.addf %132, %133 : vector<8x128xf32>
    %135 = arith.mulf %124, %93 : vector<8x128xf32>
    %136 = arith.mulf %116, %126 : vector<8x128xf32>
    %137 = arith.addf %135, %136 : vector<8x128xf32>
    %138 = math.tanh %137 : vector<8x128xf32>
    %139 = arith.mulf %134, %138 : vector<8x128xf32>
    %140 = arith.truncf %139 : vector<8x128xf32> to vector<8x128xbf16>
    %c0_59 = arith.constant 0 : index
    %141 = arith.index_cast %102 : i32 to index
    %c0_60 = arith.constant 0 : index
    %142 = vector.load %arg6[%c0_59, %141, %c0_60] : memref<1x64x128xbf16, #tpu.memory_space<vmem>>, vector<1x8x128xbf16>
    %143 = vector.shape_cast %142 : vector<1x8x128xbf16> to vector<8x128xbf16>
    %144 = vector.shape_cast %140 : vector<8x128xbf16> to vector<1x8x128xbf16>
    tpu.vector_store %arg6[%c0_59, %141, %c0_60], %144 {strides = array<i32>} : memref<1x64x128xbf16, #tpu.memory_space<vmem>>, vector<1x8x128xbf16>,
    %c3_i32 = arith.constant 3 : i32
    %c8_i32_61 = arith.constant 8 : i32
    %145 = arith.muli %c3_i32, %c8_i32_61 : i32
    %146 = tpu.assume_multiple %145, 8 : i32
    %147 = arith.index_cast %146 : i32 to index
    %c0_62 = arith.constant 0 : index
    %148 = vector.load %arg7[%147, %c0_62] : memref<64x512xf32, #tpu.memory_space<vmem>>, vector<8x512xf32>
    %149 = arith.truncf %139 : vector<8x128xf32> to vector<8x128xbf16>
    %c0_63 = arith.constant 0 : index
    %c0_64 = arith.constant 0 : index
    %150 = vector.load %arg4[%c0_63, %c0_64] : memref<128x512xbf16, #tpu.memory_space<vmem>>, vector<128x512xbf16>
    %cst_65 = arith.constant dense<0.000000e+00> : vector<8x512xf32>
    %151 = tpu.matmul %149, %150, %cst_65 {dimension_numbers = #tpu.dot_dimension_numbers<[1], [0], [0], [1], [0, 0, 1, 1], [], []>} : vector<8x128xbf16>, vector<128x512xbf16>, vector<8x512xf32> -> vector<8x512xf32>
    %152 = arith.addf %148, %151 : vector<8x512xf32>
    %153 = vector.extract_strided_slice %152 {offsets = [0, 0], sizes = [8, 128], strides = [1, 1]} : vector<8x512xf32> to vector<8x128xf32>
    %cst_66 = arith.constant 5.000000e-01 : f32
    %154 = vector.broadcast %cst_66 : f32 to vector<8x128xf32>
    %155 = arith.mulf %154, %153 : vector<8x128xf32>
    %156 = math.tanh %155 : vector<8x128xf32>
    %cst_67 = arith.constant 5.000000e-01 : f32
    %157 = vector.broadcast %cst_67 : f32 to vector<8x128xf32>
    %158 = arith.mulf %157, %156 : vector<8x128xf32>
    %cst_68 = arith.constant 5.000000e-01 : f32
    %159 = vector.broadcast %cst_68 : f32 to vector<8x128xf32>
    %160 = arith.addf %158, %159 : vector<8x128xf32>
    %161 = vector.extract_strided_slice %152 {offsets = [0, 128], sizes = [8, 128], strides = [1, 1]} : vector<8x512xf32> to vector<8x128xf32>
    %cst_69 = arith.constant 5.000000e-01 : f32
    %162 = vector.broadcast %cst_69 : f32 to vector<8x128xf32>
    %163 = arith.mulf %162, %161 : vector<8x128xf32>
    %164 = math.tanh %163 : vector<8x128xf32>
    %cst_70 = arith.constant 5.000000e-01 : f32
    %165 = vector.broadcast %cst_70 : f32 to vector<8x128xf32>
    %166 = arith.mulf %165, %164 : vector<8x128xf32>
    %cst_71 = arith.constant 5.000000e-01 : f32
    %167 = vector.broadcast %cst_71 : f32 to vector<8x128xf32>
    %168 = arith.addf %166, %167 : vector<8x128xf32>
    %169 = vector.extract_strided_slice %152 {offsets = [0, 256], sizes = [8, 128], strides = [1, 1]} : vector<8x512xf32> to vector<8x128xf32>
    %170 = math.tanh %169 : vector<8x128xf32>
    %171 = vector.extract_strided_slice %152 {offsets = [0, 384], sizes = [8, 128], strides = [1, 1]} : vector<8x512xf32> to vector<8x128xf32>
    %cst_72 = arith.constant 5.000000e-01 : f32
    %172 = vector.broadcast %cst_72 : f32 to vector<8x128xf32>
    %173 = arith.mulf %172, %171 : vector<8x128xf32>
    %174 = math.tanh %173 : vector<8x128xf32>
    %cst_73 = arith.constant 5.000000e-01 : f32
    %175 = vector.broadcast %cst_73 : f32 to vector<8x128xf32>
    %176 = arith.mulf %175, %174 : vector<8x128xf32>
    %cst_74 = arith.constant 5.000000e-01 : f32
    %177 = vector.broadcast %cst_74 : f32 to vector<8x128xf32>
    %178 = arith.addf %176, %177 : vector<8x128xf32>
    %179 = arith.mulf %168, %137 : vector<8x128xf32>
    %180 = arith.mulf %160, %170 : vector<8x128xf32>
    %181 = arith.addf %179, %180 : vector<8x128xf32>
    %182 = math.tanh %181 : vector<8x128xf32>
    %183 = arith.mulf %178, %182 : vector<8x128xf32>
    %184 = arith.truncf %183 : vector<8x128xf32> to vector<8x128xbf16>
    %c0_75 = arith.constant 0 : index
    %185 = arith.index_cast %146 : i32 to index
    %c0_76 = arith.constant 0 : index
    %186 = vector.load %arg6[%c0_75, %185, %c0_76] : memref<1x64x128xbf16, #tpu.memory_space<vmem>>, vector<1x8x128xbf16>
    %187 = vector.shape_cast %186 : vector<1x8x128xbf16> to vector<8x128xbf16>
    %188 = vector.shape_cast %184 : vector<8x128xbf16> to vector<1x8x128xbf16>
    tpu.vector_store %arg6[%c0_75, %185, %c0_76], %188 {strides = array<i32>} : memref<1x64x128xbf16, #tpu.memory_space<vmem>>, vector<1x8x128xbf16>,
    %c4_i32 = arith.constant 4 : i32
    %c8_i32_77 = arith.constant 8 : i32
    %189 = arith.muli %c4_i32, %c8_i32_77 : i32
    %190 = tpu.assume_multiple %189, 8 : i32
    %191 = arith.index_cast %190 : i32 to index
    %c0_78 = arith.constant 0 : index
    %192 = vector.load %arg7[%191, %c0_78] : memref<64x512xf32, #tpu.memory_space<vmem>>, vector<8x512xf32>
    %193 = arith.truncf %183 : vector<8x128xf32> to vector<8x128xbf16>
    %c0_79 = arith.constant 0 : index
    %c0_80 = arith.constant 0 : index
    %194 = vector.load %arg4[%c0_79, %c0_80] : memref<128x512xbf16, #tpu.memory_space<vmem>>, vector<128x512xbf16>
    %cst_81 = arith.constant dense<0.000000e+00> : vector<8x512xf32>
    %195 = tpu.matmul %193, %194, %cst_81 {dimension_numbers = #tpu.dot_dimension_numbers<[1], [0], [0], [1], [0, 0, 1, 1], [], []>} : vector<8x128xbf16>, vector<128x512xbf16>, vector<8x512xf32> -> vector<8x512xf32>
    %196 = arith.addf %192, %195 : vector<8x512xf32>
    %197 = vector.extract_strided_slice %196 {offsets = [0, 0], sizes = [8, 128], strides = [1, 1]} : vector<8x512xf32> to vector<8x128xf32>
    %cst_82 = arith.constant 5.000000e-01 : f32
    %198 = vector.broadcast %cst_82 : f32 to vector<8x128xf32>
    %199 = arith.mulf %198, %197 : vector<8x128xf32>
    %200 = math.tanh %199 : vector<8x128xf32>
    %cst_83 = arith.constant 5.000000e-01 : f32
    %201 = vector.broadcast %cst_83 : f32 to vector<8x128xf32>
    %202 = arith.mulf %201, %200 : vector<8x128xf32>
    %cst_84 = arith.constant 5.000000e-01 : f32
    %203 = vector.broadcast %cst_84 : f32 to vector<8x128xf32>
    %204 = arith.addf %202, %203 : vector<8x128xf32>
    %205 = vector.extract_strided_slice %196 {offsets = [0, 128], sizes = [8, 128], strides = [1, 1]} : vector<8x512xf32> to vector<8x128xf32>
    %cst_85 = arith.constant 5.000000e-01 : f32
    %206 = vector.broadcast %cst_85 : f32 to vector<8x128xf32>
    %207 = arith.mulf %206, %205 : vector<8x128xf32>
    %208 = math.tanh %207 : vector<8x128xf32>
    %cst_86 = arith.constant 5.000000e-01 : f32
    %209 = vector.broadcast %cst_86 : f32 to vector<8x128xf32>
    %210 = arith.mulf %209, %208 : vector<8x128xf32>
    %cst_87 = arith.constant 5.000000e-01 : f32
    %211 = vector.broadcast %cst_87 : f32 to vector<8x128xf32>
    %212 = arith.addf %210, %211 : vector<8x128xf32>
    %213 = vector.extract_strided_slice %196 {offsets = [0, 256], sizes = [8, 128], strides = [1, 1]} : vector<8x512xf32> to vector<8x128xf32>
    %214 = math.tanh %213 : vector<8x128xf32>
    %215 = vector.extract_strided_slice %196 {offsets = [0, 384], sizes = [8, 128], strides = [1, 1]} : vector<8x512xf32> to vector<8x128xf32>
    %cst_88 = arith.constant 5.000000e-01 : f32
    %216 = vector.broadcast %cst_88 : f32 to vector<8x128xf32>
    %217 = arith.mulf %216, %215 : vector<8x128xf32>
    %218 = math.tanh %217 : vector<8x128xf32>
    %cst_89 = arith.constant 5.000000e-01 : f32
    %219 = vector.broadcast %cst_89 : f32 to vector<8x128xf32>
    %220 = arith.mulf %219, %218 : vector<8x128xf32>
    %cst_90 = arith.constant 5.000000e-01 : f32
    %221 = vector.broadcast %cst_90 : f32 to vector<8x128xf32>
    %222 = arith.addf %220, %221 : vector<8x128xf32>
    %223 = arith.mulf %212, %181 : vector<8x128xf32>
    %224 = arith.mulf %204, %214 : vector<8x128xf32>
    %225 = arith.addf %223, %224 : vector<8x128xf32>
    %226 = math.tanh %225 : vector<8x128xf32>
    %227 = arith.mulf %222, %226 : vector<8x128xf32>
    %228 = arith.truncf %227 : vector<8x128xf32> to vector<8x128xbf16>
    %c0_91 = arith.constant 0 : index
    %229 = arith.index_cast %190 : i32 to index
    %c0_92 = arith.constant 0 : index
    %230 = vector.load %arg6[%c0_91, %229, %c0_92] : memref<1x64x128xbf16, #tpu.memory_space<vmem>>, vector<1x8x128xbf16>
    %231 = vector.shape_cast %230 : vector<1x8x128xbf16> to vector<8x128xbf16>
    %232 = vector.shape_cast %228 : vector<8x128xbf16> to vector<1x8x128xbf16>
    tpu.vector_store %arg6[%c0_91, %229, %c0_92], %232 {strides = array<i32>} : memref<1x64x128xbf16, #tpu.memory_space<vmem>>, vector<1x8x128xbf16>,
    %c5_i32 = arith.constant 5 : i32
    %c8_i32_93 = arith.constant 8 : i32
    %233 = arith.muli %c5_i32, %c8_i32_93 : i32
    %234 = tpu.assume_multiple %233, 8 : i32
    %235 = arith.index_cast %234 : i32 to index
    %c0_94 = arith.constant 0 : index
    %236 = vector.load %arg7[%235, %c0_94] : memref<64x512xf32, #tpu.memory_space<vmem>>, vector<8x512xf32>
    %237 = arith.truncf %227 : vector<8x128xf32> to vector<8x128xbf16>
    %c0_95 = arith.constant 0 : index
    %c0_96 = arith.constant 0 : index
    %238 = vector.load %arg4[%c0_95, %c0_96] : memref<128x512xbf16, #tpu.memory_space<vmem>>, vector<128x512xbf16>
    %cst_97 = arith.constant dense<0.000000e+00> : vector<8x512xf32>
    %239 = tpu.matmul %237, %238, %cst_97 {dimension_numbers = #tpu.dot_dimension_numbers<[1], [0], [0], [1], [0, 0, 1, 1], [], []>} : vector<8x128xbf16>, vector<128x512xbf16>, vector<8x512xf32> -> vector<8x512xf32>
    %240 = arith.addf %236, %239 : vector<8x512xf32>
    %241 = vector.extract_strided_slice %240 {offsets = [0, 0], sizes = [8, 128], strides = [1, 1]} : vector<8x512xf32> to vector<8x128xf32>
    %cst_98 = arith.constant 5.000000e-01 : f32
    %242 = vector.broadcast %cst_98 : f32 to vector<8x128xf32>
    %243 = arith.mulf %242, %241 : vector<8x128xf32>
    %244 = math.tanh %243 : vector<8x128xf32>
    %cst_99 = arith.constant 5.000000e-01 : f32
    %245 = vector.broadcast %cst_99 : f32 to vector<8x128xf32>
    %246 = arith.mulf %245, %244 : vector<8x128xf32>
    %cst_100 = arith.constant 5.000000e-01 : f32
    %247 = vector.broadcast %cst_100 : f32 to vector<8x128xf32>
    %248 = arith.addf %246, %247 : vector<8x128xf32>
    %249 = vector.extract_strided_slice %240 {offsets = [0, 128], sizes = [8, 128], strides = [1, 1]} : vector<8x512xf32> to vector<8x128xf32>
    %cst_101 = arith.constant 5.000000e-01 : f32
    %250 = vector.broadcast %cst_101 : f32 to vector<8x128xf32>
    %251 = arith.mulf %250, %249 : vector<8x128xf32>
    %252 = math.tanh %251 : vector<8x128xf32>
    %cst_102 = arith.constant 5.000000e-01 : f32
    %253 = vector.broadcast %cst_102 : f32 to vector<8x128xf32>
    %254 = arith.mulf %253, %252 : vector<8x128xf32>
    %cst_103 = arith.constant 5.000000e-01 : f32
    %255 = vector.broadcast %cst_103 : f32 to vector<8x128xf32>
    %256 = arith.addf %254, %255 : vector<8x128xf32>
    %257 = vector.extract_strided_slice %240 {offsets = [0, 256], sizes = [8, 128], strides = [1, 1]} : vector<8x512xf32> to vector<8x128xf32>
    %258 = math.tanh %257 : vector<8x128xf32>
    %259 = vector.extract_strided_slice %240 {offsets = [0, 384], sizes = [8, 128], strides = [1, 1]} : vector<8x512xf32> to vector<8x128xf32>
    %cst_104 = arith.constant 5.000000e-01 : f32
    %260 = vector.broadcast %cst_104 : f32 to vector<8x128xf32>
    %261 = arith.mulf %260, %259 : vector<8x128xf32>
    %262 = math.tanh %261 : vector<8x128xf32>
    %cst_105 = arith.constant 5.000000e-01 : f32
    %263 = vector.broadcast %cst_105 : f32 to vector<8x128xf32>
    %264 = arith.mulf %263, %262 : vector<8x128xf32>
    %cst_106 = arith.constant 5.000000e-01 : f32
    %265 = vector.broadcast %cst_106 : f32 to vector<8x128xf32>
    %266 = arith.addf %264, %265 : vector<8x128xf32>
    %267 = arith.mulf %256, %225 : vector<8x128xf32>
    %268 = arith.mulf %248, %258 : vector<8x128xf32>
    %269 = arith.addf %267, %268 : vector<8x128xf32>
    %270 = math.tanh %269 : vector<8x128xf32>
    %271 = arith.mulf %266, %270 : vector<8x128xf32>
    %272 = arith.truncf %271 : vector<8x128xf32> to vector<8x128xbf16>
    %c0_107 = arith.constant 0 : index
    %273 = arith.index_cast %234 : i32 to index
    %c0_108 = arith.constant 0 : index
    %274 = vector.load %arg6[%c0_107, %273, %c0_108] : memref<1x64x128xbf16, #tpu.memory_space<vmem>>, vector<1x8x128xbf16>
    %275 = vector.shape_cast %274 : vector<1x8x128xbf16> to vector<8x128xbf16>
    %276 = vector.shape_cast %272 : vector<8x128xbf16> to vector<1x8x128xbf16>
    tpu.vector_store %arg6[%c0_107, %273, %c0_108], %276 {strides = array<i32>} : memref<1x64x128xbf16, #tpu.memory_space<vmem>>, vector<1x8x128xbf16>,
    %c6_i32 = arith.constant 6 : i32
    %c8_i32_109 = arith.constant 8 : i32
    %277 = arith.muli %c6_i32, %c8_i32_109 : i32
    %278 = tpu.assume_multiple %277, 8 : i32
    %279 = arith.index_cast %278 : i32 to index
    %c0_110 = arith.constant 0 : index
    %280 = vector.load %arg7[%279, %c0_110] : memref<64x512xf32, #tpu.memory_space<vmem>>, vector<8x512xf32>
    %281 = arith.truncf %271 : vector<8x128xf32> to vector<8x128xbf16>
    %c0_111 = arith.constant 0 : index
    %c0_112 = arith.constant 0 : index
    %282 = vector.load %arg4[%c0_111, %c0_112] : memref<128x512xbf16, #tpu.memory_space<vmem>>, vector<128x512xbf16>
    %cst_113 = arith.constant dense<0.000000e+00> : vector<8x512xf32>
    %283 = tpu.matmul %281, %282, %cst_113 {dimension_numbers = #tpu.dot_dimension_numbers<[1], [0], [0], [1], [0, 0, 1, 1], [], []>} : vector<8x128xbf16>, vector<128x512xbf16>, vector<8x512xf32> -> vector<8x512xf32>
    %284 = arith.addf %280, %283 : vector<8x512xf32>
    %285 = vector.extract_strided_slice %284 {offsets = [0, 0], sizes = [8, 128], strides = [1, 1]} : vector<8x512xf32> to vector<8x128xf32>
    %cst_114 = arith.constant 5.000000e-01 : f32
    %286 = vector.broadcast %cst_114 : f32 to vector<8x128xf32>
    %287 = arith.mulf %286, %285 : vector<8x128xf32>
    %288 = math.tanh %287 : vector<8x128xf32>
    %cst_115 = arith.constant 5.000000e-01 : f32
    %289 = vector.broadcast %cst_115 : f32 to vector<8x128xf32>
    %290 = arith.mulf %289, %288 : vector<8x128xf32>
    %cst_116 = arith.constant 5.000000e-01 : f32
    %291 = vector.broadcast %cst_116 : f32 to vector<8x128xf32>
    %292 = arith.addf %290, %291 : vector<8x128xf32>
    %293 = vector.extract_strided_slice %284 {offsets = [0, 128], sizes = [8, 128], strides = [1, 1]} : vector<8x512xf32> to vector<8x128xf32>
    %cst_117 = arith.constant 5.000000e-01 : f32
    %294 = vector.broadcast %cst_117 : f32 to vector<8x128xf32>
    %295 = arith.mulf %294, %293 : vector<8x128xf32>
    %296 = math.tanh %295 : vector<8x128xf32>
    %cst_118 = arith.constant 5.000000e-01 : f32
    %297 = vector.broadcast %cst_118 : f32 to vector<8x128xf32>
    %298 = arith.mulf %297, %296 : vector<8x128xf32>
    %cst_119 = arith.constant 5.000000e-01 : f32
    %299 = vector.broadcast %cst_119 : f32 to vector<8x128xf32>
    %300 = arith.addf %298, %299 : vector<8x128xf32>
    %301 = vector.extract_strided_slice %284 {offsets = [0, 256], sizes = [8, 128], strides = [1, 1]} : vector<8x512xf32> to vector<8x128xf32>
    %302 = math.tanh %301 : vector<8x128xf32>
    %303 = vector.extract_strided_slice %284 {offsets = [0, 384], sizes = [8, 128], strides = [1, 1]} : vector<8x512xf32> to vector<8x128xf32>
    %cst_120 = arith.constant 5.000000e-01 : f32
    %304 = vector.broadcast %cst_120 : f32 to vector<8x128xf32>
    %305 = arith.mulf %304, %303 : vector<8x128xf32>
    %306 = math.tanh %305 : vector<8x128xf32>
    %cst_121 = arith.constant 5.000000e-01 : f32
    %307 = vector.broadcast %cst_121 : f32 to vector<8x128xf32>
    %308 = arith.mulf %307, %306 : vector<8x128xf32>
    %cst_122 = arith.constant 5.000000e-01 : f32
    %309 = vector.broadcast %cst_122 : f32 to vector<8x128xf32>
    %310 = arith.addf %308, %309 : vector<8x128xf32>
    %311 = arith.mulf %300, %269 : vector<8x128xf32>
    %312 = arith.mulf %292, %302 : vector<8x128xf32>
    %313 = arith.addf %311, %312 : vector<8x128xf32>
    %314 = math.tanh %313 : vector<8x128xf32>
    %315 = arith.mulf %310, %314 : vector<8x128xf32>
    %316 = arith.truncf %315 : vector<8x128xf32> to vector<8x128xbf16>
    %c0_123 = arith.constant 0 : index
    %317 = arith.index_cast %278 : i32 to index
    %c0_124 = arith.constant 0 : index
    %318 = vector.load %arg6[%c0_123, %317, %c0_124] : memref<1x64x128xbf16, #tpu.memory_space<vmem>>, vector<1x8x128xbf16>
    %319 = vector.shape_cast %318 : vector<1x8x128xbf16> to vector<8x128xbf16>
    %320 = vector.shape_cast %316 : vector<8x128xbf16> to vector<1x8x128xbf16>
    tpu.vector_store %arg6[%c0_123, %317, %c0_124], %320 {strides = array<i32>} : memref<1x64x128xbf16, #tpu.memory_space<vmem>>, vector<1x8x128xbf16>,
    %c7_i32 = arith.constant 7 : i32
    %c8_i32_125 = arith.constant 8 : i32
    %321 = arith.muli %c7_i32, %c8_i32_125 : i32
    %322 = tpu.assume_multiple %321, 8 : i32
    %323 = arith.index_cast %322 : i32 to index
    %c0_126 = arith.constant 0 : index
    %324 = vector.load %arg7[%323, %c0_126] : memref<64x512xf32, #tpu.memory_space<vmem>>, vector<8x512xf32>
    %325 = arith.truncf %315 : vector<8x128xf32> to vector<8x128xbf16>
    %c0_127 = arith.constant 0 : index
    %c0_128 = arith.constant 0 : index
    %326 = vector.load %arg4[%c0_127, %c0_128] : memref<128x512xbf16, #tpu.memory_space<vmem>>, vector<128x512xbf16>
    %cst_129 = arith.constant dense<0.000000e+00> : vector<8x512xf32>
    %327 = tpu.matmul %325, %326, %cst_129 {dimension_numbers = #tpu.dot_dimension_numbers<[1], [0], [0], [1], [0, 0, 1, 1], [], []>} : vector<8x128xbf16>, vector<128x512xbf16>, vector<8x512xf32> -> vector<8x512xf32>
    %328 = arith.addf %324, %327 : vector<8x512xf32>
    %329 = vector.extract_strided_slice %328 {offsets = [0, 0], sizes = [8, 128], strides = [1, 1]} : vector<8x512xf32> to vector<8x128xf32>
    %cst_130 = arith.constant 5.000000e-01 : f32
    %330 = vector.broadcast %cst_130 : f32 to vector<8x128xf32>
    %331 = arith.mulf %330, %329 : vector<8x128xf32>
    %332 = math.tanh %331 : vector<8x128xf32>
    %cst_131 = arith.constant 5.000000e-01 : f32
    %333 = vector.broadcast %cst_131 : f32 to vector<8x128xf32>
    %334 = arith.mulf %333, %332 : vector<8x128xf32>
    %cst_132 = arith.constant 5.000000e-01 : f32
    %335 = vector.broadcast %cst_132 : f32 to vector<8x128xf32>
    %336 = arith.addf %334, %335 : vector<8x128xf32>
    %337 = vector.extract_strided_slice %328 {offsets = [0, 128], sizes = [8, 128], strides = [1, 1]} : vector<8x512xf32> to vector<8x128xf32>
    %cst_133 = arith.constant 5.000000e-01 : f32
    %338 = vector.broadcast %cst_133 : f32 to vector<8x128xf32>
    %339 = arith.mulf %338, %337 : vector<8x128xf32>
    %340 = math.tanh %339 : vector<8x128xf32>
    %cst_134 = arith.constant 5.000000e-01 : f32
    %341 = vector.broadcast %cst_134 : f32 to vector<8x128xf32>
    %342 = arith.mulf %341, %340 : vector<8x128xf32>
    %cst_135 = arith.constant 5.000000e-01 : f32
    %343 = vector.broadcast %cst_135 : f32 to vector<8x128xf32>
    %344 = arith.addf %342, %343 : vector<8x128xf32>
    %345 = vector.extract_strided_slice %328 {offsets = [0, 256], sizes = [8, 128], strides = [1, 1]} : vector<8x512xf32> to vector<8x128xf32>
    %346 = math.tanh %345 : vector<8x128xf32>
    %347 = vector.extract_strided_slice %328 {offsets = [0, 384], sizes = [8, 128], strides = [1, 1]} : vector<8x512xf32> to vector<8x128xf32>
    %cst_136 = arith.constant 5.000000e-01 : f32
    %348 = vector.broadcast %cst_136 : f32 to vector<8x128xf32>
    %349 = arith.mulf %348, %347 : vector<8x128xf32>
    %350 = math.tanh %349 : vector<8x128xf32>
    %cst_137 = arith.constant 5.000000e-01 : f32
    %351 = vector.broadcast %cst_137 : f32 to vector<8x128xf32>
    %352 = arith.mulf %351, %350 : vector<8x128xf32>
    %cst_138 = arith.constant 5.000000e-01 : f32
    %353 = vector.broadcast %cst_138 : f32 to vector<8x128xf32>
    %354 = arith.addf %352, %353 : vector<8x128xf32>
    %355 = arith.mulf %344, %313 : vector<8x128xf32>
    %356 = arith.mulf %336, %346 : vector<8x128xf32>
    %357 = arith.addf %355, %356 : vector<8x128xf32>
    %358 = math.tanh %357 : vector<8x128xf32>
    %359 = arith.mulf %354, %358 : vector<8x128xf32>
    %360 = arith.truncf %359 : vector<8x128xf32> to vector<8x128xbf16>
    %c0_139 = arith.constant 0 : index
    %361 = arith.index_cast %322 : i32 to index
    %c0_140 = arith.constant 0 : index
    %362 = vector.load %arg6[%c0_139, %361, %c0_140] : memref<1x64x128xbf16, #tpu.memory_space<vmem>>, vector<1x8x128xbf16>
    %363 = vector.shape_cast %362 : vector<1x8x128xbf16> to vector<8x128xbf16>
    %364 = vector.shape_cast %360 : vector<8x128xbf16> to vector<1x8x128xbf16>
    tpu.vector_store %arg6[%c0_139, %361, %c0_140], %364 {strides = array<i32>} : memref<1x64x128xbf16, #tpu.memory_space<vmem>>, vector<1x8x128xbf16>,
    %c8_i32_141 = arith.constant 8 : i32
    %c0_142 = arith.constant 0 : index
    %c0_143 = arith.constant 0 : index
    %365 = vector.load %arg8[%c0_142, %c0_143] : memref<8x128xf32, #tpu.memory_space<vmem>>, vector<8x128xf32>
    tpu.vector_store %arg8[%c0_142, %c0_143], %359 {strides = array<i32>} : memref<8x128xf32, #tpu.memory_space<vmem>>, vector<8x128xf32>,
    %c0_144 = arith.constant 0 : index
    %c0_145 = arith.constant 0 : index
    %366 = vector.load %arg9[%c0_144, %c0_145] : memref<8x128xf32, #tpu.memory_space<vmem>>, vector<8x128xf32>
    tpu.vector_store %arg9[%c0_144, %c0_145], %357 {strides = array<i32>} : memref<8x128xf32, #tpu.memory_space<vmem>>, vector<8x128xf32>,
    return
  }
  func.func @transform_0(%arg0: i32, %arg1: i32) -> (i32, i32, i32) {
    %c0_i32 = arith.constant 0 : i32
    %c0_i32_0 = arith.constant 0 : i32
    return %arg0, %arg1, %c0_i32 : i32, i32, i32
  }
  func.func @transform_1(%arg0: i32, %arg1: i32) -> (i32, i32) {
    %c0_i32 = arith.constant 0 : i32
    %c0_i32_0 = arith.constant 0 : i32
    %c0_i32_1 = arith.constant 0 : i32
    return %c0_i32, %c0_i32_0 : i32, i32
  }
  func.func @transform_2(%arg0: i32, %arg1: i32) -> (i32, i32) {
    %c0_i32 = arith.constant 0 : i32
    %c0_i32_0 = arith.constant 0 : i32
    %c0_i32_1 = arith.constant 0 : i32
    return %c0_i32, %c0_i32_0 : i32, i32
  }
  func.func @transform_3(%arg0: i32, %arg1: i32) -> (i32, i32) {
    %c0_i32 = arith.constant 0 : i32
    %c0_i32_0 = arith.constant 0 : i32
    %c0_i32_1 = arith.constant 0 : i32
    return %c0_i32, %c0_i32_0 : i32, i32
  }
  func.func @transform_4(%arg0: i32, %arg1: i32) -> (i32, i32, i32) {
    %c0_i32 = arith.constant 0 : i32
    %c0_i32_0 = arith.constant 0 : i32
    return %arg0, %arg1, %c0_i32 : i32, i32, i32
  }
}

module attributes {stable_mosaic.version = 11 : i64} {
  func.func @_lstm_last_fc_kernel(%arg0: i32, %arg1: i32, %arg2: memref<1x64x128xbf16, #tpu.memory_space<vmem>>, %arg3: memref<128x512xbf16, #tpu.memory_space<vmem>>, %arg4: memref<128x512xbf16, #tpu.memory_space<vmem>>, %arg5: memref<1x512xf32, #tpu.memory_space<vmem>>, %arg6: memref<128x128xbf16, #tpu.memory_space<vmem>>, %arg7: memref<1x128xf32, #tpu.memory_space<vmem>>, %arg8: memref<8x128xf32, #tpu.memory_space<vmem>>, %arg9: memref<64x512xf32, #tpu.memory_space<vmem>>, %arg10: memref<8x128xf32, #tpu.memory_space<vmem>>, %arg11: memref<8x128xf32, #tpu.memory_space<vmem>>) attributes {dimension_semantics = [#tpu.dimension_semantics<parallel>, #tpu.dimension_semantics<arbitrary>], iteration_bounds = array<i64: 1, 1>, scalar_prefetch = 0 : i64, scratch_operands = 3 : i64, tpu.core_type = #tpu.core_type<tc>, window_params = [{transform_indices = @transform_0, window_bounds = array<i64: 1, 64, 128>}, {pipeline_mode = #tpu.pipeline_mode<synchronous>, transform_indices = @transform_1, window_bounds = array<i64: 128, 512>}, {pipeline_mode = #tpu.pipeline_mode<synchronous>, transform_indices = @transform_2, window_bounds = array<i64: 128, 512>}, {pipeline_mode = #tpu.pipeline_mode<synchronous>, transform_indices = @transform_3, window_bounds = array<i64: 1, 512>}, {pipeline_mode = #tpu.pipeline_mode<synchronous>, transform_indices = @transform_4, window_bounds = array<i64: 128, 128>}, {pipeline_mode = #tpu.pipeline_mode<synchronous>, transform_indices = @transform_5, window_bounds = array<i64: 1, 128>}, {transform_indices = @transform_6, window_bounds = array<i64: 8, 128>}]} {
    %c0_i32 = arith.constant 0 : i32
    %0 = arith.cmpi eq, %arg1, %c0_i32 : i32
    %1 = arith.extui %0 : i1 to i32
    %c0_i32_0 = arith.constant 0 : i32
    %2 = arith.cmpi ne, %1, %c0_i32_0 : i32
    scf.if %2 {
      %cst_132 = arith.constant 0.000000e+00 : f32
      %330 = vector.broadcast %cst_132 : f32 to vector<8x128xf32>
      %c0_133 = arith.constant 0 : index
      %c0_134 = arith.constant 0 : index
      %331 = vector.load %arg10[%c0_133, %c0_134] : memref<8x128xf32, #tpu.memory_space<vmem>>, vector<8x128xf32>
      tpu.vector_store %arg10[%c0_133, %c0_134], %330 {strides = array<i32>} : memref<8x128xf32, #tpu.memory_space<vmem>>, vector<8x128xf32>,
      %cst_135 = arith.constant 0.000000e+00 : f32
      %332 = vector.broadcast %cst_135 : f32 to vector<8x128xf32>
      %c0_136 = arith.constant 0 : index
      %c0_137 = arith.constant 0 : index
      %333 = vector.load %arg11[%c0_136, %c0_137] : memref<8x128xf32, #tpu.memory_space<vmem>>, vector<8x128xf32>
      tpu.vector_store %arg11[%c0_136, %c0_137], %332 {strides = array<i32>} : memref<8x128xf32, #tpu.memory_space<vmem>>, vector<8x128xf32>,
    } else {
    }
    %c0 = arith.constant 0 : index
    %c0_1 = arith.constant 0 : index
    %c0_2 = arith.constant 0 : index
    %3 = vector.load %arg2[%c0, %c0_1, %c0_2] : memref<1x64x128xbf16, #tpu.memory_space<vmem>>, vector<1x64x128xbf16>
    %4 = vector.shape_cast %3 : vector<1x64x128xbf16> to vector<64x128xbf16>
    %c0_3 = arith.constant 0 : index
    %c0_4 = arith.constant 0 : index
    %5 = vector.load %arg3[%c0_3, %c0_4] : memref<128x512xbf16, #tpu.memory_space<vmem>>, vector<128x512xbf16>
    %cst = arith.constant dense<0.000000e+00> : vector<64x512xf32>
    %6 = tpu.matmul %4, %5, %cst {dimension_numbers = #tpu.dot_dimension_numbers<[1], [0], [0], [1], [0, 0, 1, 1], [], []>} : vector<64x128xbf16>, vector<128x512xbf16>, vector<64x512xf32> -> vector<64x512xf32>
    %c0_5 = arith.constant 0 : index
    %c0_6 = arith.constant 0 : index
    %7 = vector.load %arg5[%c0_5, %c0_6] : memref<1x512xf32, #tpu.memory_space<vmem>>, vector<1x512xf32>
    %8 = vector.broadcast %7 : vector<1x512xf32> to vector<64x512xf32>
    %9 = arith.addf %6, %8 : vector<64x512xf32>
    %c0_7 = arith.constant 0 : index
    %c0_8 = arith.constant 0 : index
    %10 = vector.load %arg9[%c0_7, %c0_8] : memref<64x512xf32, #tpu.memory_space<vmem>>, vector<64x512xf32>
    tpu.vector_store %arg9[%c0_7, %c0_8], %9 {strides = array<i32>} : memref<64x512xf32, #tpu.memory_space<vmem>>, vector<64x512xf32>,
    %c0_9 = arith.constant 0 : index
    %c0_10 = arith.constant 0 : index
    %11 = vector.load %arg10[%c0_9, %c0_10] : memref<8x128xf32, #tpu.memory_space<vmem>>, vector<8x128xf32>
    %c0_11 = arith.constant 0 : index
    %c0_12 = arith.constant 0 : index
    %12 = vector.load %arg11[%c0_11, %c0_12] : memref<8x128xf32, #tpu.memory_space<vmem>>, vector<8x128xf32>
    %c0_i32_13 = arith.constant 0 : i32
    %c8_i32 = arith.constant 8 : i32
    %13 = arith.muli %c0_i32_13, %c8_i32 : i32
    %14 = tpu.assume_multiple %13, 8 : i32
    %15 = arith.index_cast %14 : i32 to index
    %c0_14 = arith.constant 0 : index
    %16 = vector.load %arg9[%15, %c0_14] : memref<64x512xf32, #tpu.memory_space<vmem>>, vector<8x512xf32>
    %17 = arith.truncf %11 : vector<8x128xf32> to vector<8x128xbf16>
    %c0_15 = arith.constant 0 : index
    %c0_16 = arith.constant 0 : index
    %18 = vector.load %arg4[%c0_15, %c0_16] : memref<128x512xbf16, #tpu.memory_space<vmem>>, vector<128x512xbf16>
    %cst_17 = arith.constant dense<0.000000e+00> : vector<8x512xf32>
    %19 = tpu.matmul %17, %18, %cst_17 {dimension_numbers = #tpu.dot_dimension_numbers<[1], [0], [0], [1], [0, 0, 1, 1], [], []>} : vector<8x128xbf16>, vector<128x512xbf16>, vector<8x512xf32> -> vector<8x512xf32>
    %20 = arith.addf %16, %19 : vector<8x512xf32>
    %21 = vector.extract_strided_slice %20 {offsets = [0, 0], sizes = [8, 128], strides = [1, 1]} : vector<8x512xf32> to vector<8x128xf32>
    %cst_18 = arith.constant 5.000000e-01 : f32
    %22 = vector.broadcast %cst_18 : f32 to vector<8x128xf32>
    %23 = arith.mulf %22, %21 : vector<8x128xf32>
    %24 = math.tanh %23 : vector<8x128xf32>
    %cst_19 = arith.constant 5.000000e-01 : f32
    %25 = vector.broadcast %cst_19 : f32 to vector<8x128xf32>
    %26 = arith.mulf %25, %24 : vector<8x128xf32>
    %cst_20 = arith.constant 5.000000e-01 : f32
    %27 = vector.broadcast %cst_20 : f32 to vector<8x128xf32>
    %28 = arith.addf %26, %27 : vector<8x128xf32>
    %29 = vector.extract_strided_slice %20 {offsets = [0, 128], sizes = [8, 128], strides = [1, 1]} : vector<8x512xf32> to vector<8x128xf32>
    %cst_21 = arith.constant 5.000000e-01 : f32
    %30 = vector.broadcast %cst_21 : f32 to vector<8x128xf32>
    %31 = arith.mulf %30, %29 : vector<8x128xf32>
    %32 = math.tanh %31 : vector<8x128xf32>
    %cst_22 = arith.constant 5.000000e-01 : f32
    %33 = vector.broadcast %cst_22 : f32 to vector<8x128xf32>
    %34 = arith.mulf %33, %32 : vector<8x128xf32>
    %cst_23 = arith.constant 5.000000e-01 : f32
    %35 = vector.broadcast %cst_23 : f32 to vector<8x128xf32>
    %36 = arith.addf %34, %35 : vector<8x128xf32>
    %37 = vector.extract_strided_slice %20 {offsets = [0, 256], sizes = [8, 128], strides = [1, 1]} : vector<8x512xf32> to vector<8x128xf32>
    %38 = math.tanh %37 : vector<8x128xf32>
    %39 = vector.extract_strided_slice %20 {offsets = [0, 384], sizes = [8, 128], strides = [1, 1]} : vector<8x512xf32> to vector<8x128xf32>
    %cst_24 = arith.constant 5.000000e-01 : f32
    %40 = vector.broadcast %cst_24 : f32 to vector<8x128xf32>
    %41 = arith.mulf %40, %39 : vector<8x128xf32>
    %42 = math.tanh %41 : vector<8x128xf32>
    %cst_25 = arith.constant 5.000000e-01 : f32
    %43 = vector.broadcast %cst_25 : f32 to vector<8x128xf32>
    %44 = arith.mulf %43, %42 : vector<8x128xf32>
    %cst_26 = arith.constant 5.000000e-01 : f32
    %45 = vector.broadcast %cst_26 : f32 to vector<8x128xf32>
    %46 = arith.addf %44, %45 : vector<8x128xf32>
    %47 = arith.mulf %36, %12 : vector<8x128xf32>
    %48 = arith.mulf %28, %38 : vector<8x128xf32>
    %49 = arith.addf %47, %48 : vector<8x128xf32>
    %50 = math.tanh %49 : vector<8x128xf32>
    %51 = arith.mulf %46, %50 : vector<8x128xf32>
    %c1_i32 = arith.constant 1 : i32
    %c8_i32_27 = arith.constant 8 : i32
    %52 = arith.muli %c1_i32, %c8_i32_27 : i32
    %53 = tpu.assume_multiple %52, 8 : i32
    %54 = arith.index_cast %53 : i32 to index
    %c0_28 = arith.constant 0 : index
    %55 = vector.load %arg9[%54, %c0_28] : memref<64x512xf32, #tpu.memory_space<vmem>>, vector<8x512xf32>
    %56 = arith.truncf %51 : vector<8x128xf32> to vector<8x128xbf16>
    %c0_29 = arith.constant 0 : index
    %c0_30 = arith.constant 0 : index
    %57 = vector.load %arg4[%c0_29, %c0_30] : memref<128x512xbf16, #tpu.memory_space<vmem>>, vector<128x512xbf16>
    %cst_31 = arith.constant dense<0.000000e+00> : vector<8x512xf32>
    %58 = tpu.matmul %56, %57, %cst_31 {dimension_numbers = #tpu.dot_dimension_numbers<[1], [0], [0], [1], [0, 0, 1, 1], [], []>} : vector<8x128xbf16>, vector<128x512xbf16>, vector<8x512xf32> -> vector<8x512xf32>
    %59 = arith.addf %55, %58 : vector<8x512xf32>
    %60 = vector.extract_strided_slice %59 {offsets = [0, 0], sizes = [8, 128], strides = [1, 1]} : vector<8x512xf32> to vector<8x128xf32>
    %cst_32 = arith.constant 5.000000e-01 : f32
    %61 = vector.broadcast %cst_32 : f32 to vector<8x128xf32>
    %62 = arith.mulf %61, %60 : vector<8x128xf32>
    %63 = math.tanh %62 : vector<8x128xf32>
    %cst_33 = arith.constant 5.000000e-01 : f32
    %64 = vector.broadcast %cst_33 : f32 to vector<8x128xf32>
    %65 = arith.mulf %64, %63 : vector<8x128xf32>
    %cst_34 = arith.constant 5.000000e-01 : f32
    %66 = vector.broadcast %cst_34 : f32 to vector<8x128xf32>
    %67 = arith.addf %65, %66 : vector<8x128xf32>
    %68 = vector.extract_strided_slice %59 {offsets = [0, 128], sizes = [8, 128], strides = [1, 1]} : vector<8x512xf32> to vector<8x128xf32>
    %cst_35 = arith.constant 5.000000e-01 : f32
    %69 = vector.broadcast %cst_35 : f32 to vector<8x128xf32>
    %70 = arith.mulf %69, %68 : vector<8x128xf32>
    %71 = math.tanh %70 : vector<8x128xf32>
    %cst_36 = arith.constant 5.000000e-01 : f32
    %72 = vector.broadcast %cst_36 : f32 to vector<8x128xf32>
    %73 = arith.mulf %72, %71 : vector<8x128xf32>
    %cst_37 = arith.constant 5.000000e-01 : f32
    %74 = vector.broadcast %cst_37 : f32 to vector<8x128xf32>
    %75 = arith.addf %73, %74 : vector<8x128xf32>
    %76 = vector.extract_strided_slice %59 {offsets = [0, 256], sizes = [8, 128], strides = [1, 1]} : vector<8x512xf32> to vector<8x128xf32>
    %77 = math.tanh %76 : vector<8x128xf32>
    %78 = vector.extract_strided_slice %59 {offsets = [0, 384], sizes = [8, 128], strides = [1, 1]} : vector<8x512xf32> to vector<8x128xf32>
    %cst_38 = arith.constant 5.000000e-01 : f32
    %79 = vector.broadcast %cst_38 : f32 to vector<8x128xf32>
    %80 = arith.mulf %79, %78 : vector<8x128xf32>
    %81 = math.tanh %80 : vector<8x128xf32>
    %cst_39 = arith.constant 5.000000e-01 : f32
    %82 = vector.broadcast %cst_39 : f32 to vector<8x128xf32>
    %83 = arith.mulf %82, %81 : vector<8x128xf32>
    %cst_40 = arith.constant 5.000000e-01 : f32
    %84 = vector.broadcast %cst_40 : f32 to vector<8x128xf32>
    %85 = arith.addf %83, %84 : vector<8x128xf32>
    %86 = arith.mulf %75, %49 : vector<8x128xf32>
    %87 = arith.mulf %67, %77 : vector<8x128xf32>
    %88 = arith.addf %86, %87 : vector<8x128xf32>
    %89 = math.tanh %88 : vector<8x128xf32>
    %90 = arith.mulf %85, %89 : vector<8x128xf32>
    %c2_i32 = arith.constant 2 : i32
    %c8_i32_41 = arith.constant 8 : i32
    %91 = arith.muli %c2_i32, %c8_i32_41 : i32
    %92 = tpu.assume_multiple %91, 8 : i32
    %93 = arith.index_cast %92 : i32 to index
    %c0_42 = arith.constant 0 : index
    %94 = vector.load %arg9[%93, %c0_42] : memref<64x512xf32, #tpu.memory_space<vmem>>, vector<8x512xf32>
    %95 = arith.truncf %90 : vector<8x128xf32> to vector<8x128xbf16>
    %c0_43 = arith.constant 0 : index
    %c0_44 = arith.constant 0 : index
    %96 = vector.load %arg4[%c0_43, %c0_44] : memref<128x512xbf16, #tpu.memory_space<vmem>>, vector<128x512xbf16>
    %cst_45 = arith.constant dense<0.000000e+00> : vector<8x512xf32>
    %97 = tpu.matmul %95, %96, %cst_45 {dimension_numbers = #tpu.dot_dimension_numbers<[1], [0], [0], [1], [0, 0, 1, 1], [], []>} : vector<8x128xbf16>, vector<128x512xbf16>, vector<8x512xf32> -> vector<8x512xf32>
    %98 = arith.addf %94, %97 : vector<8x512xf32>
    %99 = vector.extract_strided_slice %98 {offsets = [0, 0], sizes = [8, 128], strides = [1, 1]} : vector<8x512xf32> to vector<8x128xf32>
    %cst_46 = arith.constant 5.000000e-01 : f32
    %100 = vector.broadcast %cst_46 : f32 to vector<8x128xf32>
    %101 = arith.mulf %100, %99 : vector<8x128xf32>
    %102 = math.tanh %101 : vector<8x128xf32>
    %cst_47 = arith.constant 5.000000e-01 : f32
    %103 = vector.broadcast %cst_47 : f32 to vector<8x128xf32>
    %104 = arith.mulf %103, %102 : vector<8x128xf32>
    %cst_48 = arith.constant 5.000000e-01 : f32
    %105 = vector.broadcast %cst_48 : f32 to vector<8x128xf32>
    %106 = arith.addf %104, %105 : vector<8x128xf32>
    %107 = vector.extract_strided_slice %98 {offsets = [0, 128], sizes = [8, 128], strides = [1, 1]} : vector<8x512xf32> to vector<8x128xf32>
    %cst_49 = arith.constant 5.000000e-01 : f32
    %108 = vector.broadcast %cst_49 : f32 to vector<8x128xf32>
    %109 = arith.mulf %108, %107 : vector<8x128xf32>
    %110 = math.tanh %109 : vector<8x128xf32>
    %cst_50 = arith.constant 5.000000e-01 : f32
    %111 = vector.broadcast %cst_50 : f32 to vector<8x128xf32>
    %112 = arith.mulf %111, %110 : vector<8x128xf32>
    %cst_51 = arith.constant 5.000000e-01 : f32
    %113 = vector.broadcast %cst_51 : f32 to vector<8x128xf32>
    %114 = arith.addf %112, %113 : vector<8x128xf32>
    %115 = vector.extract_strided_slice %98 {offsets = [0, 256], sizes = [8, 128], strides = [1, 1]} : vector<8x512xf32> to vector<8x128xf32>
    %116 = math.tanh %115 : vector<8x128xf32>
    %117 = vector.extract_strided_slice %98 {offsets = [0, 384], sizes = [8, 128], strides = [1, 1]} : vector<8x512xf32> to vector<8x128xf32>
    %cst_52 = arith.constant 5.000000e-01 : f32
    %118 = vector.broadcast %cst_52 : f32 to vector<8x128xf32>
    %119 = arith.mulf %118, %117 : vector<8x128xf32>
    %120 = math.tanh %119 : vector<8x128xf32>
    %cst_53 = arith.constant 5.000000e-01 : f32
    %121 = vector.broadcast %cst_53 : f32 to vector<8x128xf32>
    %122 = arith.mulf %121, %120 : vector<8x128xf32>
    %cst_54 = arith.constant 5.000000e-01 : f32
    %123 = vector.broadcast %cst_54 : f32 to vector<8x128xf32>
    %124 = arith.addf %122, %123 : vector<8x128xf32>
    %125 = arith.mulf %114, %88 : vector<8x128xf32>
    %126 = arith.mulf %106, %116 : vector<8x128xf32>
    %127 = arith.addf %125, %126 : vector<8x128xf32>
    %128 = math.tanh %127 : vector<8x128xf32>
    %129 = arith.mulf %124, %128 : vector<8x128xf32>
    %c3_i32 = arith.constant 3 : i32
    %c8_i32_55 = arith.constant 8 : i32
    %130 = arith.muli %c3_i32, %c8_i32_55 : i32
    %131 = tpu.assume_multiple %130, 8 : i32
    %132 = arith.index_cast %131 : i32 to index
    %c0_56 = arith.constant 0 : index
    %133 = vector.load %arg9[%132, %c0_56] : memref<64x512xf32, #tpu.memory_space<vmem>>, vector<8x512xf32>
    %134 = arith.truncf %129 : vector<8x128xf32> to vector<8x128xbf16>
    %c0_57 = arith.constant 0 : index
    %c0_58 = arith.constant 0 : index
    %135 = vector.load %arg4[%c0_57, %c0_58] : memref<128x512xbf16, #tpu.memory_space<vmem>>, vector<128x512xbf16>
    %cst_59 = arith.constant dense<0.000000e+00> : vector<8x512xf32>
    %136 = tpu.matmul %134, %135, %cst_59 {dimension_numbers = #tpu.dot_dimension_numbers<[1], [0], [0], [1], [0, 0, 1, 1], [], []>} : vector<8x128xbf16>, vector<128x512xbf16>, vector<8x512xf32> -> vector<8x512xf32>
    %137 = arith.addf %133, %136 : vector<8x512xf32>
    %138 = vector.extract_strided_slice %137 {offsets = [0, 0], sizes = [8, 128], strides = [1, 1]} : vector<8x512xf32> to vector<8x128xf32>
    %cst_60 = arith.constant 5.000000e-01 : f32
    %139 = vector.broadcast %cst_60 : f32 to vector<8x128xf32>
    %140 = arith.mulf %139, %138 : vector<8x128xf32>
    %141 = math.tanh %140 : vector<8x128xf32>
    %cst_61 = arith.constant 5.000000e-01 : f32
    %142 = vector.broadcast %cst_61 : f32 to vector<8x128xf32>
    %143 = arith.mulf %142, %141 : vector<8x128xf32>
    %cst_62 = arith.constant 5.000000e-01 : f32
    %144 = vector.broadcast %cst_62 : f32 to vector<8x128xf32>
    %145 = arith.addf %143, %144 : vector<8x128xf32>
    %146 = vector.extract_strided_slice %137 {offsets = [0, 128], sizes = [8, 128], strides = [1, 1]} : vector<8x512xf32> to vector<8x128xf32>
    %cst_63 = arith.constant 5.000000e-01 : f32
    %147 = vector.broadcast %cst_63 : f32 to vector<8x128xf32>
    %148 = arith.mulf %147, %146 : vector<8x128xf32>
    %149 = math.tanh %148 : vector<8x128xf32>
    %cst_64 = arith.constant 5.000000e-01 : f32
    %150 = vector.broadcast %cst_64 : f32 to vector<8x128xf32>
    %151 = arith.mulf %150, %149 : vector<8x128xf32>
    %cst_65 = arith.constant 5.000000e-01 : f32
    %152 = vector.broadcast %cst_65 : f32 to vector<8x128xf32>
    %153 = arith.addf %151, %152 : vector<8x128xf32>
    %154 = vector.extract_strided_slice %137 {offsets = [0, 256], sizes = [8, 128], strides = [1, 1]} : vector<8x512xf32> to vector<8x128xf32>
    %155 = math.tanh %154 : vector<8x128xf32>
    %156 = vector.extract_strided_slice %137 {offsets = [0, 384], sizes = [8, 128], strides = [1, 1]} : vector<8x512xf32> to vector<8x128xf32>
    %cst_66 = arith.constant 5.000000e-01 : f32
    %157 = vector.broadcast %cst_66 : f32 to vector<8x128xf32>
    %158 = arith.mulf %157, %156 : vector<8x128xf32>
    %159 = math.tanh %158 : vector<8x128xf32>
    %cst_67 = arith.constant 5.000000e-01 : f32
    %160 = vector.broadcast %cst_67 : f32 to vector<8x128xf32>
    %161 = arith.mulf %160, %159 : vector<8x128xf32>
    %cst_68 = arith.constant 5.000000e-01 : f32
    %162 = vector.broadcast %cst_68 : f32 to vector<8x128xf32>
    %163 = arith.addf %161, %162 : vector<8x128xf32>
    %164 = arith.mulf %153, %127 : vector<8x128xf32>
    %165 = arith.mulf %145, %155 : vector<8x128xf32>
    %166 = arith.addf %164, %165 : vector<8x128xf32>
    %167 = math.tanh %166 : vector<8x128xf32>
    %168 = arith.mulf %163, %167 : vector<8x128xf32>
    %c4_i32 = arith.constant 4 : i32
    %c8_i32_69 = arith.constant 8 : i32
    %169 = arith.muli %c4_i32, %c8_i32_69 : i32
    %170 = tpu.assume_multiple %169, 8 : i32
    %171 = arith.index_cast %170 : i32 to index
    %c0_70 = arith.constant 0 : index
    %172 = vector.load %arg9[%171, %c0_70] : memref<64x512xf32, #tpu.memory_space<vmem>>, vector<8x512xf32>
    %173 = arith.truncf %168 : vector<8x128xf32> to vector<8x128xbf16>
    %c0_71 = arith.constant 0 : index
    %c0_72 = arith.constant 0 : index
    %174 = vector.load %arg4[%c0_71, %c0_72] : memref<128x512xbf16, #tpu.memory_space<vmem>>, vector<128x512xbf16>
    %cst_73 = arith.constant dense<0.000000e+00> : vector<8x512xf32>
    %175 = tpu.matmul %173, %174, %cst_73 {dimension_numbers = #tpu.dot_dimension_numbers<[1], [0], [0], [1], [0, 0, 1, 1], [], []>} : vector<8x128xbf16>, vector<128x512xbf16>, vector<8x512xf32> -> vector<8x512xf32>
    %176 = arith.addf %172, %175 : vector<8x512xf32>
    %177 = vector.extract_strided_slice %176 {offsets = [0, 0], sizes = [8, 128], strides = [1, 1]} : vector<8x512xf32> to vector<8x128xf32>
    %cst_74 = arith.constant 5.000000e-01 : f32
    %178 = vector.broadcast %cst_74 : f32 to vector<8x128xf32>
    %179 = arith.mulf %178, %177 : vector<8x128xf32>
    %180 = math.tanh %179 : vector<8x128xf32>
    %cst_75 = arith.constant 5.000000e-01 : f32
    %181 = vector.broadcast %cst_75 : f32 to vector<8x128xf32>
    %182 = arith.mulf %181, %180 : vector<8x128xf32>
    %cst_76 = arith.constant 5.000000e-01 : f32
    %183 = vector.broadcast %cst_76 : f32 to vector<8x128xf32>
    %184 = arith.addf %182, %183 : vector<8x128xf32>
    %185 = vector.extract_strided_slice %176 {offsets = [0, 128], sizes = [8, 128], strides = [1, 1]} : vector<8x512xf32> to vector<8x128xf32>
    %cst_77 = arith.constant 5.000000e-01 : f32
    %186 = vector.broadcast %cst_77 : f32 to vector<8x128xf32>
    %187 = arith.mulf %186, %185 : vector<8x128xf32>
    %188 = math.tanh %187 : vector<8x128xf32>
    %cst_78 = arith.constant 5.000000e-01 : f32
    %189 = vector.broadcast %cst_78 : f32 to vector<8x128xf32>
    %190 = arith.mulf %189, %188 : vector<8x128xf32>
    %cst_79 = arith.constant 5.000000e-01 : f32
    %191 = vector.broadcast %cst_79 : f32 to vector<8x128xf32>
    %192 = arith.addf %190, %191 : vector<8x128xf32>
    %193 = vector.extract_strided_slice %176 {offsets = [0, 256], sizes = [8, 128], strides = [1, 1]} : vector<8x512xf32> to vector<8x128xf32>
    %194 = math.tanh %193 : vector<8x128xf32>
    %195 = vector.extract_strided_slice %176 {offsets = [0, 384], sizes = [8, 128], strides = [1, 1]} : vector<8x512xf32> to vector<8x128xf32>
    %cst_80 = arith.constant 5.000000e-01 : f32
    %196 = vector.broadcast %cst_80 : f32 to vector<8x128xf32>
    %197 = arith.mulf %196, %195 : vector<8x128xf32>
    %198 = math.tanh %197 : vector<8x128xf32>
    %cst_81 = arith.constant 5.000000e-01 : f32
    %199 = vector.broadcast %cst_81 : f32 to vector<8x128xf32>
    %200 = arith.mulf %199, %198 : vector<8x128xf32>
    %cst_82 = arith.constant 5.000000e-01 : f32
    %201 = vector.broadcast %cst_82 : f32 to vector<8x128xf32>
    %202 = arith.addf %200, %201 : vector<8x128xf32>
    %203 = arith.mulf %192, %166 : vector<8x128xf32>
    %204 = arith.mulf %184, %194 : vector<8x128xf32>
    %205 = arith.addf %203, %204 : vector<8x128xf32>
    %206 = math.tanh %205 : vector<8x128xf32>
    %207 = arith.mulf %202, %206 : vector<8x128xf32>
    %c5_i32 = arith.constant 5 : i32
    %c8_i32_83 = arith.constant 8 : i32
    %208 = arith.muli %c5_i32, %c8_i32_83 : i32
    %209 = tpu.assume_multiple %208, 8 : i32
    %210 = arith.index_cast %209 : i32 to index
    %c0_84 = arith.constant 0 : index
    %211 = vector.load %arg9[%210, %c0_84] : memref<64x512xf32, #tpu.memory_space<vmem>>, vector<8x512xf32>
    %212 = arith.truncf %207 : vector<8x128xf32> to vector<8x128xbf16>
    %c0_85 = arith.constant 0 : index
    %c0_86 = arith.constant 0 : index
    %213 = vector.load %arg4[%c0_85, %c0_86] : memref<128x512xbf16, #tpu.memory_space<vmem>>, vector<128x512xbf16>
    %cst_87 = arith.constant dense<0.000000e+00> : vector<8x512xf32>
    %214 = tpu.matmul %212, %213, %cst_87 {dimension_numbers = #tpu.dot_dimension_numbers<[1], [0], [0], [1], [0, 0, 1, 1], [], []>} : vector<8x128xbf16>, vector<128x512xbf16>, vector<8x512xf32> -> vector<8x512xf32>
    %215 = arith.addf %211, %214 : vector<8x512xf32>
    %216 = vector.extract_strided_slice %215 {offsets = [0, 0], sizes = [8, 128], strides = [1, 1]} : vector<8x512xf32> to vector<8x128xf32>
    %cst_88 = arith.constant 5.000000e-01 : f32
    %217 = vector.broadcast %cst_88 : f32 to vector<8x128xf32>
    %218 = arith.mulf %217, %216 : vector<8x128xf32>
    %219 = math.tanh %218 : vector<8x128xf32>
    %cst_89 = arith.constant 5.000000e-01 : f32
    %220 = vector.broadcast %cst_89 : f32 to vector<8x128xf32>
    %221 = arith.mulf %220, %219 : vector<8x128xf32>
    %cst_90 = arith.constant 5.000000e-01 : f32
    %222 = vector.broadcast %cst_90 : f32 to vector<8x128xf32>
    %223 = arith.addf %221, %222 : vector<8x128xf32>
    %224 = vector.extract_strided_slice %215 {offsets = [0, 128], sizes = [8, 128], strides = [1, 1]} : vector<8x512xf32> to vector<8x128xf32>
    %cst_91 = arith.constant 5.000000e-01 : f32
    %225 = vector.broadcast %cst_91 : f32 to vector<8x128xf32>
    %226 = arith.mulf %225, %224 : vector<8x128xf32>
    %227 = math.tanh %226 : vector<8x128xf32>
    %cst_92 = arith.constant 5.000000e-01 : f32
    %228 = vector.broadcast %cst_92 : f32 to vector<8x128xf32>
    %229 = arith.mulf %228, %227 : vector<8x128xf32>
    %cst_93 = arith.constant 5.000000e-01 : f32
    %230 = vector.broadcast %cst_93 : f32 to vector<8x128xf32>
    %231 = arith.addf %229, %230 : vector<8x128xf32>
    %232 = vector.extract_strided_slice %215 {offsets = [0, 256], sizes = [8, 128], strides = [1, 1]} : vector<8x512xf32> to vector<8x128xf32>
    %233 = math.tanh %232 : vector<8x128xf32>
    %234 = vector.extract_strided_slice %215 {offsets = [0, 384], sizes = [8, 128], strides = [1, 1]} : vector<8x512xf32> to vector<8x128xf32>
    %cst_94 = arith.constant 5.000000e-01 : f32
    %235 = vector.broadcast %cst_94 : f32 to vector<8x128xf32>
    %236 = arith.mulf %235, %234 : vector<8x128xf32>
    %237 = math.tanh %236 : vector<8x128xf32>
    %cst_95 = arith.constant 5.000000e-01 : f32
    %238 = vector.broadcast %cst_95 : f32 to vector<8x128xf32>
    %239 = arith.mulf %238, %237 : vector<8x128xf32>
    %cst_96 = arith.constant 5.000000e-01 : f32
    %240 = vector.broadcast %cst_96 : f32 to vector<8x128xf32>
    %241 = arith.addf %239, %240 : vector<8x128xf32>
    %242 = arith.mulf %231, %205 : vector<8x128xf32>
    %243 = arith.mulf %223, %233 : vector<8x128xf32>
    %244 = arith.addf %242, %243 : vector<8x128xf32>
    %245 = math.tanh %244 : vector<8x128xf32>
    %246 = arith.mulf %241, %245 : vector<8x128xf32>
    %c6_i32 = arith.constant 6 : i32
    %c8_i32_97 = arith.constant 8 : i32
    %247 = arith.muli %c6_i32, %c8_i32_97 : i32
    %248 = tpu.assume_multiple %247, 8 : i32
    %249 = arith.index_cast %248 : i32 to index
    %c0_98 = arith.constant 0 : index
    %250 = vector.load %arg9[%249, %c0_98] : memref<64x512xf32, #tpu.memory_space<vmem>>, vector<8x512xf32>
    %251 = arith.truncf %246 : vector<8x128xf32> to vector<8x128xbf16>
    %c0_99 = arith.constant 0 : index
    %c0_100 = arith.constant 0 : index
    %252 = vector.load %arg4[%c0_99, %c0_100] : memref<128x512xbf16, #tpu.memory_space<vmem>>, vector<128x512xbf16>
    %cst_101 = arith.constant dense<0.000000e+00> : vector<8x512xf32>
    %253 = tpu.matmul %251, %252, %cst_101 {dimension_numbers = #tpu.dot_dimension_numbers<[1], [0], [0], [1], [0, 0, 1, 1], [], []>} : vector<8x128xbf16>, vector<128x512xbf16>, vector<8x512xf32> -> vector<8x512xf32>
    %254 = arith.addf %250, %253 : vector<8x512xf32>
    %255 = vector.extract_strided_slice %254 {offsets = [0, 0], sizes = [8, 128], strides = [1, 1]} : vector<8x512xf32> to vector<8x128xf32>
    %cst_102 = arith.constant 5.000000e-01 : f32
    %256 = vector.broadcast %cst_102 : f32 to vector<8x128xf32>
    %257 = arith.mulf %256, %255 : vector<8x128xf32>
    %258 = math.tanh %257 : vector<8x128xf32>
    %cst_103 = arith.constant 5.000000e-01 : f32
    %259 = vector.broadcast %cst_103 : f32 to vector<8x128xf32>
    %260 = arith.mulf %259, %258 : vector<8x128xf32>
    %cst_104 = arith.constant 5.000000e-01 : f32
    %261 = vector.broadcast %cst_104 : f32 to vector<8x128xf32>
    %262 = arith.addf %260, %261 : vector<8x128xf32>
    %263 = vector.extract_strided_slice %254 {offsets = [0, 128], sizes = [8, 128], strides = [1, 1]} : vector<8x512xf32> to vector<8x128xf32>
    %cst_105 = arith.constant 5.000000e-01 : f32
    %264 = vector.broadcast %cst_105 : f32 to vector<8x128xf32>
    %265 = arith.mulf %264, %263 : vector<8x128xf32>
    %266 = math.tanh %265 : vector<8x128xf32>
    %cst_106 = arith.constant 5.000000e-01 : f32
    %267 = vector.broadcast %cst_106 : f32 to vector<8x128xf32>
    %268 = arith.mulf %267, %266 : vector<8x128xf32>
    %cst_107 = arith.constant 5.000000e-01 : f32
    %269 = vector.broadcast %cst_107 : f32 to vector<8x128xf32>
    %270 = arith.addf %268, %269 : vector<8x128xf32>
    %271 = vector.extract_strided_slice %254 {offsets = [0, 256], sizes = [8, 128], strides = [1, 1]} : vector<8x512xf32> to vector<8x128xf32>
    %272 = math.tanh %271 : vector<8x128xf32>
    %273 = vector.extract_strided_slice %254 {offsets = [0, 384], sizes = [8, 128], strides = [1, 1]} : vector<8x512xf32> to vector<8x128xf32>
    %cst_108 = arith.constant 5.000000e-01 : f32
    %274 = vector.broadcast %cst_108 : f32 to vector<8x128xf32>
    %275 = arith.mulf %274, %273 : vector<8x128xf32>
    %276 = math.tanh %275 : vector<8x128xf32>
    %cst_109 = arith.constant 5.000000e-01 : f32
    %277 = vector.broadcast %cst_109 : f32 to vector<8x128xf32>
    %278 = arith.mulf %277, %276 : vector<8x128xf32>
    %cst_110 = arith.constant 5.000000e-01 : f32
    %279 = vector.broadcast %cst_110 : f32 to vector<8x128xf32>
    %280 = arith.addf %278, %279 : vector<8x128xf32>
    %281 = arith.mulf %270, %244 : vector<8x128xf32>
    %282 = arith.mulf %262, %272 : vector<8x128xf32>
    %283 = arith.addf %281, %282 : vector<8x128xf32>
    %284 = math.tanh %283 : vector<8x128xf32>
    %285 = arith.mulf %280, %284 : vector<8x128xf32>
    %c7_i32 = arith.constant 7 : i32
    %c8_i32_111 = arith.constant 8 : i32
    %286 = arith.muli %c7_i32, %c8_i32_111 : i32
    %287 = tpu.assume_multiple %286, 8 : i32
    %288 = arith.index_cast %287 : i32 to index
    %c0_112 = arith.constant 0 : index
    %289 = vector.load %arg9[%288, %c0_112] : memref<64x512xf32, #tpu.memory_space<vmem>>, vector<8x512xf32>
    %290 = arith.truncf %285 : vector<8x128xf32> to vector<8x128xbf16>
    %c0_113 = arith.constant 0 : index
    %c0_114 = arith.constant 0 : index
    %291 = vector.load %arg4[%c0_113, %c0_114] : memref<128x512xbf16, #tpu.memory_space<vmem>>, vector<128x512xbf16>
    %cst_115 = arith.constant dense<0.000000e+00> : vector<8x512xf32>
    %292 = tpu.matmul %290, %291, %cst_115 {dimension_numbers = #tpu.dot_dimension_numbers<[1], [0], [0], [1], [0, 0, 1, 1], [], []>} : vector<8x128xbf16>, vector<128x512xbf16>, vector<8x512xf32> -> vector<8x512xf32>
    %293 = arith.addf %289, %292 : vector<8x512xf32>
    %294 = vector.extract_strided_slice %293 {offsets = [0, 0], sizes = [8, 128], strides = [1, 1]} : vector<8x512xf32> to vector<8x128xf32>
    %cst_116 = arith.constant 5.000000e-01 : f32
    %295 = vector.broadcast %cst_116 : f32 to vector<8x128xf32>
    %296 = arith.mulf %295, %294 : vector<8x128xf32>
    %297 = math.tanh %296 : vector<8x128xf32>
    %cst_117 = arith.constant 5.000000e-01 : f32
    %298 = vector.broadcast %cst_117 : f32 to vector<8x128xf32>
    %299 = arith.mulf %298, %297 : vector<8x128xf32>
    %cst_118 = arith.constant 5.000000e-01 : f32
    %300 = vector.broadcast %cst_118 : f32 to vector<8x128xf32>
    %301 = arith.addf %299, %300 : vector<8x128xf32>
    %302 = vector.extract_strided_slice %293 {offsets = [0, 128], sizes = [8, 128], strides = [1, 1]} : vector<8x512xf32> to vector<8x128xf32>
    %cst_119 = arith.constant 5.000000e-01 : f32
    %303 = vector.broadcast %cst_119 : f32 to vector<8x128xf32>
    %304 = arith.mulf %303, %302 : vector<8x128xf32>
    %305 = math.tanh %304 : vector<8x128xf32>
    %cst_120 = arith.constant 5.000000e-01 : f32
    %306 = vector.broadcast %cst_120 : f32 to vector<8x128xf32>
    %307 = arith.mulf %306, %305 : vector<8x128xf32>
    %cst_121 = arith.constant 5.000000e-01 : f32
    %308 = vector.broadcast %cst_121 : f32 to vector<8x128xf32>
    %309 = arith.addf %307, %308 : vector<8x128xf32>
    %310 = vector.extract_strided_slice %293 {offsets = [0, 256], sizes = [8, 128], strides = [1, 1]} : vector<8x512xf32> to vector<8x128xf32>
    %311 = math.tanh %310 : vector<8x128xf32>
    %312 = vector.extract_strided_slice %293 {offsets = [0, 384], sizes = [8, 128], strides = [1, 1]} : vector<8x512xf32> to vector<8x128xf32>
    %cst_122 = arith.constant 5.000000e-01 : f32
    %313 = vector.broadcast %cst_122 : f32 to vector<8x128xf32>
    %314 = arith.mulf %313, %312 : vector<8x128xf32>
    %315 = math.tanh %314 : vector<8x128xf32>
    %cst_123 = arith.constant 5.000000e-01 : f32
    %316 = vector.broadcast %cst_123 : f32 to vector<8x128xf32>
    %317 = arith.mulf %316, %315 : vector<8x128xf32>
    %cst_124 = arith.constant 5.000000e-01 : f32
    %318 = vector.broadcast %cst_124 : f32 to vector<8x128xf32>
    %319 = arith.addf %317, %318 : vector<8x128xf32>
    %320 = arith.mulf %309, %283 : vector<8x128xf32>
    %321 = arith.mulf %301, %311 : vector<8x128xf32>
    %322 = arith.addf %320, %321 : vector<8x128xf32>
    %323 = math.tanh %322 : vector<8x128xf32>
    %324 = arith.mulf %319, %323 : vector<8x128xf32>
    %c8_i32_125 = arith.constant 8 : i32
    %c0_126 = arith.constant 0 : index
    %c0_127 = arith.constant 0 : index
    %325 = vector.load %arg10[%c0_126, %c0_127] : memref<8x128xf32, #tpu.memory_space<vmem>>, vector<8x128xf32>
    tpu.vector_store %arg10[%c0_126, %c0_127], %324 {strides = array<i32>} : memref<8x128xf32, #tpu.memory_space<vmem>>, vector<8x128xf32>,
    %c0_128 = arith.constant 0 : index
    %c0_129 = arith.constant 0 : index
    %326 = vector.load %arg11[%c0_128, %c0_129] : memref<8x128xf32, #tpu.memory_space<vmem>>, vector<8x128xf32>
    tpu.vector_store %arg11[%c0_128, %c0_129], %322 {strides = array<i32>} : memref<8x128xf32, #tpu.memory_space<vmem>>, vector<8x128xf32>,
    %c0_i32_130 = arith.constant 0 : i32
    %327 = arith.cmpi eq, %arg1, %c0_i32_130 : i32
    %328 = arith.extui %327 : i1 to i32
    %c0_i32_131 = arith.constant 0 : i32
    %329 = arith.cmpi ne, %328, %c0_i32_131 : i32
    scf.if %329 {
      %330 = arith.truncf %324 : vector<8x128xf32> to vector<8x128xbf16>
      %c0_132 = arith.constant 0 : index
      %c0_133 = arith.constant 0 : index
      %331 = vector.load %arg6[%c0_132, %c0_133] : memref<128x128xbf16, #tpu.memory_space<vmem>>, vector<128x128xbf16>
      %cst_134 = arith.constant dense<0.000000e+00> : vector<8x128xf32>
      %332 = tpu.matmul %330, %331, %cst_134 {dimension_numbers = #tpu.dot_dimension_numbers<[1], [0], [0], [1], [0, 0, 1, 1], [], []>} : vector<8x128xbf16>, vector<128x128xbf16>, vector<8x128xf32> -> vector<8x128xf32>
      %c0_135 = arith.constant 0 : index
      %c0_136 = arith.constant 0 : index
      %333 = vector.load %arg7[%c0_135, %c0_136] : memref<1x128xf32, #tpu.memory_space<vmem>>, vector<1x128xf32>
      %334 = vector.broadcast %333 : vector<1x128xf32> to vector<8x128xf32>
      %335 = arith.addf %332, %334 : vector<8x128xf32>
      %c0_137 = arith.constant 0 : index
      %c0_138 = arith.constant 0 : index
      %336 = vector.load %arg8[%c0_137, %c0_138] : memref<8x128xf32, #tpu.memory_space<vmem>>, vector<8x128xf32>
      tpu.vector_store %arg8[%c0_137, %c0_138], %335 {strides = array<i32>} : memref<8x128xf32, #tpu.memory_space<vmem>>, vector<8x128xf32>,
    } else {
    }
    return
  }
  func.func @transform_0(%arg0: i32, %arg1: i32) -> (i32, i32, i32) {
    %c0_i32 = arith.constant 0 : i32
    %c0_i32_0 = arith.constant 0 : i32
    return %arg0, %arg1, %c0_i32 : i32, i32, i32
  }
  func.func @transform_1(%arg0: i32, %arg1: i32) -> (i32, i32) {
    %c0_i32 = arith.constant 0 : i32
    %c0_i32_0 = arith.constant 0 : i32
    %c0_i32_1 = arith.constant 0 : i32
    return %c0_i32, %c0_i32_0 : i32, i32
  }
  func.func @transform_2(%arg0: i32, %arg1: i32) -> (i32, i32) {
    %c0_i32 = arith.constant 0 : i32
    %c0_i32_0 = arith.constant 0 : i32
    %c0_i32_1 = arith.constant 0 : i32
    return %c0_i32, %c0_i32_0 : i32, i32
  }
  func.func @transform_3(%arg0: i32, %arg1: i32) -> (i32, i32) {
    %c0_i32 = arith.constant 0 : i32
    %c0_i32_0 = arith.constant 0 : i32
    %c0_i32_1 = arith.constant 0 : i32
    return %c0_i32, %c0_i32_0 : i32, i32
  }
  func.func @transform_4(%arg0: i32, %arg1: i32) -> (i32, i32) {
    %c0_i32 = arith.constant 0 : i32
    %c0_i32_0 = arith.constant 0 : i32
    %c0_i32_1 = arith.constant 0 : i32
    return %c0_i32, %c0_i32_0 : i32, i32
  }
  func.func @transform_5(%arg0: i32, %arg1: i32) -> (i32, i32) {
    %c0_i32 = arith.constant 0 : i32
    %c0_i32_0 = arith.constant 0 : i32
    %c0_i32_1 = arith.constant 0 : i32
    return %c0_i32, %c0_i32_0 : i32, i32
  }
  func.func @transform_6(%arg0: i32, %arg1: i32) -> (i32, i32) {
    %c0_i32 = arith.constant 0 : i32
    %c0_i32_0 = arith.constant 0 : i32
    return %arg0, %c0_i32 : i32, i32
  }
}

</mosaic_0001>

<bundles_post_ra>
// kernel: lstm_model_forward.3
= control target key start
LH: loop header
LB: loop body
LE: loop exit
PB: predicated region body
PF: predicated region fallthrough
CT: control target
= control target key end

     0   :  { %11 = vsyncpa [#allocation6], 0  ;;  %s2045_s21 = smov [#allocation5]   ;;  %s2756_s0 = inlined_call_operand.vmem [shape: bf16[1,64,128], index: 0, kind: input, shape index: {}]   ;;  %s2757_s1 = inlined_call_operand.vmem [shape: bf16[128,512], index: 1, kind: input, shape index: {}]   ;;  %s2758_s2 = inlined_call_operand.hbm [shape: bf16[128,512], index: 2, kind: input, shape index: {}]   ;;  %s2759_s3 = inlined_call_operand.vmem [shape: f32[1,512], index: 3, kind: input, shape index: {}]   ;;  %s2760_s4 = inlined_call_operand.vmem [shape: bf16[128,128], index: 4, kind: input, shape index: {}]   ;;  %s2761_s5 = inlined_call_operand.vmem [shape: f32[1,128], index: 5, kind: input, shape index: {}]   ;;  %s2762_s6 = inlined_call_operand.vmem [shape: f32[8,128], index: 6, kind: output, shape index: {}]  }
   0x1   :  { %s21_s22 = sshll.u32 %s2045_s21, 4  ;;  %s2021_s25 = scalar_lea.hbm %s2758_s2, 4096  ;;  %s22_s22 = int_to_ptr.vmem [resolvable:$true] %s21_s22 }
   0x2   :  { %p2022_p0 = scmp.ne.s32.totalorder %s2758_s2, %s2021_s25  ;;  %p2025_p1 = scmp.lt.u32.totalorder %s2021_s25, %s2758_s2 }
   0x4   :  { %p2027_p2 = pnand %p2025_p1, %p2022_p0 }
   0x6   :  { %2030 = shalt.err (!%p2027_p2)
}
   0x7   :  { %s2031_s30 = scalar_lea.vmem %s22_s22, 4096  ;;  %p2036_p4 = scmp.lt.s32.totalorder %s22_s22, %s22_s22 }
   0x8   :  { %p2032_p3 = scmp.ne.s32.totalorder %s22_s22, %s2031_s30  ;;  %p2037_p5 = scmp.lt.s32.totalorder %s2031_s30, %s2031_s30 }
   0xa   :  { %p2038_p6 = por %p2037_p5, %p2036_p4 }
   0xc   :  { %p2039_p7 = pnand %p2038_p6, %p2032_p3 }
   0xe   :  { %2042 = shalt.err (!%p2039_p7)
}
   0xf   :  { %s2046_s7 = smov 256   ;;  %s2047_s8 = smov 16  }
  0x10   :  { %27 = dma.hbm_to_vmem [thread:$0]  %s2758_s2, 4096, %s22_s22, [#allocation6], %s2046_s7, %s2046_s7, %s2047_s8  }
  0x11   :  { %2043 = dma.done.wait [#allocation6], 4096  }
  0x12   :  { %2044 = vsyncadd [#allocation6], 4294963200  ;;  %v2763_v0 = vmov 0   ;;  %v1801_v1 = vld [vmem:[%s2757_s1 + $0x4] ss:$16 sps:$4 sm:$0xff]   ;;  %v1862_v44 = vld [vmem:[%s2756_s0 + $0x8] sm:$0xff]  }
  0x13   :  { %322 = vmatprep.mubr.bf16.mxu0 %v2763_v0  ;;  %395 = vmatprep.mubr.bf16.mxu1 %v2763_v0  ;;  %v1803_v2 = vld [vmem:[%s2757_s1 + $0xc] ss:$16 sps:$4 sm:$0xff]   ;;  %v1805_v3 = vld [vmem:[%s2757_s1] ss:$16 sps:$4 sm:$0xff]   ;;  %v1806_v4 = vld [vmem:[%s2757_s1 + $0x8] ss:$16 sps:$4 sm:$0xff]  }
  0x14   :  { %290 = vmatprep.subr.bf16.mxu0 %v1801_v1  ;;  %363 = vmatprep.subr.bf16.mxu1 %v1803_v2  ;;  %v1807_v5 = vld [vmem:[%s2757_s1 + $0x24] ss:$16 sps:$4 sm:$0xff]   ;;  %v1809_v6 = vld [vmem:[%s2757_s1 + $0x2c] ss:$16 sps:$4 sm:$0xff]   ;;  %v1811_v7 = vld [vmem:[%s2757_s1 + $0x20] ss:$16 sps:$4 sm:$0xff]  }
  0x15   :  { %291 = vmatpush1.bf16.msra.mxu0 %v1805_v3  ;;  %364 = vmatpush1.bf16.msra.mxu1 %v1806_v4  ;;  %v1812_v8 = vld [vmem:[%s2757_s1 + $0x28] ss:$16 sps:$4 sm:$0xff]   ;;  %v1813_v9 = vld [vmem:[%s2757_s1 + $0x44] ss:$16 sps:$4 sm:$0xff]   ;;  %v1815_v10 = vld [vmem:[%s2757_s1 + $0x4c] ss:$16 sps:$4 sm:$0xff]  }
  0x16   :  { %292 = vmatprep.subr.bf16.mxu0 %v1807_v5  ;;  %365 = vmatprep.subr.bf16.mxu1 %v1809_v6  ;;  %v1817_v11 = vld [vmem:[%s2757_s1 + $0x40] ss:$16 sps:$4 sm:$0xff]   ;;  %v1818_v12 = vld [vmem:[%s2757_s1 + $0x48] ss:$16 sps:$4 sm:$0xff]   ;;  %v1819_v13 = vld [vmem:[%s2757_s1 + $0x64] ss:$16 sps:$4 sm:$0xff]  }
  0x17   :  { %v1821_v14 = vld [vmem:[%s2757_s1 + $0x6c] ss:$16 sps:$4 sm:$0xff]   ;;  %v1823_v15 = vld [vmem:[%s2757_s1 + $0x60] ss:$16 sps:$4 sm:$0xff]   ;;  %v1824_v16 = vld [vmem:[%s2757_s1 + $0x68] ss:$16 sps:$4 sm:$0xff]  }
  0x18   :  { %v1825_v17 = vld [vmem:[%s2757_s1 + $0x84] ss:$16 sps:$4 sm:$0xff]   ;;  %v1827_v18 = vld [vmem:[%s2757_s1 + $0x8c] ss:$16 sps:$4 sm:$0xff]   ;;  %v1829_v19 = vld [vmem:[%s2757_s1 + $0x80] ss:$16 sps:$4 sm:$0xff]  }
  0x19   :  { %293 = vmatpush1.bf16.msra.mxu0 %v1811_v7  ;;  %366 = vmatpush1.bf16.msra.mxu1 %v1812_v8  ;;  %v1830_v20 = vld [vmem:[%s2757_s1 + $0x88] ss:$16 sps:$4 sm:$0xff]   ;;  %v1831_v21 = vld [vmem:[%s2757_s1 + $0xa4] ss:$16 sps:$4 sm:$0xff]   ;;  %v1833_v22 = vld [vmem:[%s2757_s1 + $0xac] ss:$16 sps:$4 sm:$0xff]   ;;  %v86_v7 = vlaneseq }
  0x1a   :  { %294 = vmatprep.subr.bf16.mxu0 %v1813_v9  ;;  %367 = vmatprep.subr.bf16.mxu1 %v1815_v10  ;;  %v1835_v23 = vld [vmem:[%s2757_s1 + $0xa0] ss:$16 sps:$4 sm:$0xff]   ;;  %v1836_v24 = vld [vmem:[%s2757_s1 + $0xa8] ss:$16 sps:$4 sm:$0xff]   ;;  %v1837_v25 = vld [vmem:[%s2757_s1 + $0xc4] ss:$16 sps:$4 sm:$0xff]  }
  0x1b   :  { %v1839_v26 = vld [vmem:[%s2757_s1 + $0xcc] ss:$16 sps:$4 sm:$0xff]   ;;  %v1841_v27 = vld [vmem:[%s2757_s1 + $0xc0] ss:$16 sps:$4 sm:$0xff]   ;;  %v1842_v28 = vld [vmem:[%s2757_s1 + $0xc8] ss:$16 sps:$4 sm:$0xff]  }
  0x1c   :  { %v1843_v29 = vld [vmem:[%s2757_s1 + $0xe4] ss:$16 sps:$4 sm:$0xff]   ;;  %v1845_v30 = vld [vmem:[%s2757_s1 + $0xec] ss:$16 sps:$4 sm:$0xff]   ;;  %v1847_v31 = vld [vmem:[%s2757_s1 + $0xe0] ss:$16 sps:$4 sm:$0xff]  }
  0x1d   :  { %295 = vmatpush1.bf16.msra.mxu0 %v1817_v11  ;;  %368 = vmatpush1.bf16.msra.mxu1 %v1818_v12  ;;  %v1848_v32 = vld [vmem:[%s2757_s1 + $0xe8] ss:$16 sps:$4 sm:$0xff]   ;;  %v2197_v33 = vld [vmem:[#allocation5 + $0x4] ss:$16 sps:$4 sm:$0xff]   ;;  %v2199_v34 = vld [vmem:[#allocation5 + $0xc] ss:$16 sps:$4 sm:$0xff]  }
  0x1e   :  { %296 = vmatprep.subr.bf16.mxu0 %v1819_v13  ;;  %369 = vmatprep.subr.bf16.mxu1 %v1821_v14  ;;  %v1849_v35 = vld [vmem:[%s2756_s0] sm:$0xff]   ;;  %v2206_v37 = vld [vmem:[#allocation5 + $0x8] ss:$16 sps:$4 sm:$0xff]   ;;  %v2212_v39 = vld [vmem:[#allocation5 + $0x2c] ss:$16 sps:$4 sm:$0xff]   ;;  %v2049_v6 = vmov 0.0|0.0  }
  0x1f   :  { %v2204_v36 = vld [vmem:[#allocation5] ss:$16 sps:$4 sm:$0xff]   ;;  %v2210_v38 = vld [vmem:[#allocation5 + $0x24] ss:$16 sps:$4 sm:$0xff]   ;;  %v2218_v41 = vld [vmem:[#allocation5 + $0x28] ss:$16 sps:$4 sm:$0xff]  }
  0x20   :  { %v2214_v40 = vld [vmem:[#allocation5 + $0x20] ss:$16 sps:$4 sm:$0xff]   ;;  %v2222_v42 = vld [vmem:[#allocation5 + $0x44] ss:$16 sps:$4 sm:$0xff]   ;;  %v2224_v43 = vld [vmem:[#allocation5 + $0x4c] ss:$16 sps:$4 sm:$0xff]  }
  0x21   :  { %297 = vmatpush1.bf16.msra.mxu0 %v1823_v15  ;;  %370 = vmatpush1.bf16.msra.mxu1 %v1824_v16  ;;  %v2231_v45 = vld [vmem:[#allocation5 + $0x40] ss:$16 sps:$4 sm:$0xff]   ;;  %v2233_v46 = vld [vmem:[#allocation5 + $0x48] ss:$16 sps:$4 sm:$0xff]   ;;  %v2237_v47 = vld [vmem:[#allocation5 + $0x64] ss:$16 sps:$4 sm:$0xff]  }
  0x22   :  { %298 = vmatprep.subr.bf16.mxu0 %v1825_v17  ;;  %371 = vmatprep.subr.bf16.mxu1 %v1827_v18  ;;  %v2241_v48 = vld [vmem:[#allocation5 + $0x6c] ss:$16 sps:$4 sm:$0xff]   ;;  %v2243_v49 = vld [vmem:[#allocation5 + $0x60] ss:$16 sps:$4 sm:$0xff]   ;;  %v2245_v50 = vld [vmem:[#allocation5 + $0x68] ss:$16 sps:$4 sm:$0xff]  }
  0x23   :  { %v2249_v51 = vld [vmem:[#allocation5 + $0x84] ss:$16 sps:$4 sm:$0xff]   ;;  %v2253_v52 = vld [vmem:[#allocation5 + $0x8c] ss:$16 sps:$4 sm:$0xff]   ;;  %v2260_v54 = vld [vmem:[#allocation5 + $0x80] ss:$16 sps:$4 sm:$0xff]  }
  0x24   :  { %v1875_v53 = vld [vmem:[%s2756_s0 + $0x10] sm:$0xff]   ;;  %v2262_v55 = vld [vmem:[#allocation5 + $0x88] ss:$16 sps:$4 sm:$0xff]   ;;  %v2266_v57 = vld [vmem:[#allocation5 + $0xac] ss:$16 sps:$4 sm:$0xff]   ;;  %v87_v8 = vshrl.u32 %v86_v7, 7 }
  0x25   :  { %299 = vmatpush1.bf16.msra.mxu0 %v1829_v19  ;;  %372 = vmatpush1.bf16.msra.mxu1 %v1830_v20  ;;  %v2264_v56 = vld [vmem:[#allocation5 + $0xa4] ss:$16 sps:$4 sm:$0xff]   ;;  %v2274_v58 = vld [vmem:[#allocation5 + $0xa0] ss:$16 sps:$4 sm:$0xff]   ;;  %v2276_v59 = vld [vmem:[#allocation5 + $0xa8] ss:$16 sps:$4 sm:$0xff]  }
  0x26   :  { %300 = vmatprep.subr.bf16.mxu0 %v1831_v21  ;;  %373 = vmatprep.subr.bf16.mxu1 %v1833_v22  ;;  %v2280_v60 = vld [vmem:[#allocation5 + $0xc4] ss:$16 sps:$4 sm:$0xff]   ;;  %v2282_v61 = vld [vmem:[#allocation5 + $0xcc] ss:$16 sps:$4 sm:$0xff]   ;;  %v2291_v63 = vld [vmem:[#allocation5 + $0xc0] ss:$16 sps:$4 sm:$0xff]  }
  0x27   :  { %v1888_v62 = vld [vmem:[%s2756_s0 + $0x18] sm:$0xff]   ;;  %v2297_v2 = vld [vmem:[#allocation5 + $0xe4] ss:$16 sps:$4 sm:$0xff]   ;;  %v2303_v4 = vld [vmem:[#allocation5 + $0xe0] ss:$16 sps:$4 sm:$0xff]   ;;  %v96_v9 = vsub.s32 2, %v87_v8 }
  0x28   :  { %v2293_v1 = vld [vmem:[#allocation5 + $0xc8] ss:$16 sps:$4 sm:$0xff]   ;;  %v2299_v3 = vld [vmem:[#allocation5 + $0xec] ss:$16 sps:$4 sm:$0xff]   ;;  %v100_v10 = vsub.s32 3, %v87_v8  ;;  %v88_v11 = vsub.s32 0, %v87_v8 }
  0x29   :  { %301 = vmatpush1.bf16.msra.mxu0 %v1835_v23  ;;  %374 = vmatpush1.bf16.msra.mxu1 %v1836_v24  ;;  %v2305_v5 = vld [vmem:[#allocation5 + $0xe8] ss:$16 sps:$4 sm:$0xff]   ;;  %v84_v12 = vld [vmem:[%s2759_s3] sm:$0xf]  ;;  %v92_v13 = vsub.s32 1, %v87_v8  ;;  %vm2051_vm0 = vmmov 0  }
  0x2a   :  { %302 = vmatprep.subr.bf16.mxu0 %v1837_v25  ;;  %375 = vmatprep.subr.bf16.mxu1 %v1839_v26  ;;  %v2352_v14 = vrot.slane %v84_v12, %v96_v9  ;;  %v2358_v17 = vrot.slane %v84_v12, %v100_v10  ;;  %v89_v18 = vrot.slane %v84_v12, %v88_v11 }
  0x2b   :  { %v93_v21 = vrot.slane %v84_v12, %v92_v13 }
  0x2d   :  { %303 = vmatpush1.bf16.msra.mxu0 %v1841_v27  ;;  %376 = vmatpush1.bf16.msra.mxu1 %v1842_v28 }
  0x2e   :  { %304 = vmatprep.subr.bf16.mxu0 %v1843_v29  ;;  %377 = vmatprep.subr.bf16.mxu1 %v1845_v30 }
  0x31   :  { %305 = vmatpush1.bf16.msra.mxu0 %v1847_v31  ;;  %378 = vmatpush1.bf16.msra.mxu1 %v1848_v32 }
  0x32   :  { %670 = vmatprep.subr.bf16.mxu0 %v2197_v33  ;;  %711 = vmatprep.subr.bf16.mxu1 %v2199_v34 }
  0x34   :  { %323 = vmatmul.mubr.bf16.vlgmr.msra.gmra.mrb[0].mxu0 %v1849_v35  ;;  %396 = vmatmul.mubr.bf16.vlgmr.msra.gmra.mrb[0].mxu1 %v1849_v35 }
  0x35   :  { %671 = vmatpush1.bf16.msra.mxu0 %v2204_v36  ;;  %712 = vmatpush1.bf16.msra.mxu1 %v2206_v37 }
  0x36   :  { %672 = vmatprep.subr.bf16.mxu0 %v2210_v38  ;;  %713 = vmatprep.subr.bf16.mxu1 %v2212_v39 }
  0x37   :  { %332 = vmatprep.mubr.bf16.mxu0 %v2763_v0  ;;  %405 = vmatprep.mubr.bf16.mxu1 %v2763_v0 }
  0x39   :  { %673 = vmatpush1.bf16.msra.mxu0 %v2214_v40  ;;  %714 = vmatpush1.bf16.msra.mxu1 %v2218_v41 }
  0x3a   :  { %674 = vmatprep.subr.bf16.mxu0 %v2222_v42  ;;  %715 = vmatprep.subr.bf16.mxu1 %v2224_v43 }
  0x3c   :  { %333 = vmatmul.mubr.bf16.gmra.mrb[4].mxu0 %v1862_v44  ;;  %406 = vmatmul.mubr.bf16.gmra.mrb[4].mxu1 %v1862_v44 }
  0x3d   :  { %675 = vmatpush1.bf16.msra.mxu0 %v2231_v45  ;;  %716 = vmatpush1.bf16.msra.mxu1 %v2233_v46 }
  0x3e   :  { %676 = vmatprep.subr.bf16.mxu0 %v2237_v47  ;;  %717 = vmatprep.subr.bf16.mxu1 %v2241_v48 }
  0x3f   :  { %342 = vmatprep.mubr.bf16.mxu0 %v2763_v0  ;;  %415 = vmatprep.mubr.bf16.mxu1 %v2763_v0 }
  0x41   :  { %677 = vmatpush1.bf16.msra.mxu0 %v2243_v49  ;;  %718 = vmatpush1.bf16.msra.mxu1 %v2245_v50 }
  0x42   :  { %678 = vmatprep.subr.bf16.mxu0 %v2249_v51  ;;  %719 = vmatprep.subr.bf16.mxu1 %v2253_v52 }
  0x44   :  { %343 = vmatmul.mubr.bf16.gmra.mrb[8].mxu0 %v1875_v53  ;;  %416 = vmatmul.mubr.bf16.gmra.mrb[8].mxu1 %v1875_v53 }
  0x45   :  { %679 = vmatpush1.bf16.msra.mxu0 %v2260_v54  ;;  %720 = vmatpush1.bf16.msra.mxu1 %v2262_v55 }
  0x46   :  { %680 = vmatprep.subr.bf16.mxu0 %v2264_v56  ;;  %721 = vmatprep.subr.bf16.mxu1 %v2266_v57 }
  0x47   :  { %352 = vmatprep.mubr.bf16.mxu0 %v2763_v0  ;;  %425 = vmatprep.mubr.bf16.mxu1 %v2763_v0 }
  0x49   :  { %681 = vmatpush1.bf16.msra.mxu0 %v2274_v58  ;;  %722 = vmatpush1.bf16.msra.mxu1 %v2276_v59 }
  0x4a   :  { %682 = vmatprep.subr.bf16.mxu0 %v2280_v60  ;;  %723 = vmatprep.subr.bf16.mxu1 %v2282_v61 }
  0x4c   :  { %353 = vmatmul.mubr.bf16.gmra.mrb[12].mxu0 %v1888_v62  ;;  %426 = vmatmul.mubr.bf16.gmra.mrb[12].mxu1 %v1888_v62 }
  0x4d   :  { %683 = vmatpush1.bf16.msra.mxu0 %v2291_v63  ;;  %724 = vmatpush1.bf16.msra.mxu1 %v2293_v1 }
  0x4e   :  { %684 = vmatprep.subr.bf16.mxu0 %v2297_v2  ;;  %725 = vmatprep.subr.bf16.mxu1 %v2299_v3 }
  0x4f   :  { %702 = vmatprep.mubr.bf16.mxu0 %v2763_v0  ;;  %743 = vmatprep.mubr.bf16.mxu1 %v2763_v0 }
  0x51   :  { %685 = vmatpush1.bf16.msra.mxu0 %v2303_v4  ;;  %726 = vmatpush1.bf16.msra.mxu1 %v2305_v5 }
  0x52   :  { %782 = vmatprep.subr.bf16.mxu0 %v2197_v33  ;;  %823 = vmatprep.subr.bf16.mxu1 %v2199_v34 }
  0x54   :  { %703 = vmatmul.mubr.bf16.vlgmr.msra.gmra.mrb[16].mxu0 %v2049_v6  ;;  %744 = vmatmul.mubr.bf16.vlgmr.msra.gmra.mrb[16].mxu1 %v2049_v6 }
  0x55   :  { %783 = vmatpush1.bf16.msra.mxu0 %v2204_v36  ;;  %824 = vmatpush1.bf16.msra.mxu1 %v2206_v37 }
  0x56   :  { %784 = vmatprep.subr.bf16.mxu0 %v2210_v38  ;;  %825 = vmatprep.subr.bf16.mxu1 %v2212_v39 }
  0x57   :  { %814 = vmatprep.mubr.bf16.mxu0 %v2763_v0  ;;  %855 = vmatprep.mubr.bf16.mxu1 %v2763_v0 }
  0x59   :  { %785 = vmatpush1.bf16.msra.mxu0 %v2214_v40  ;;  %826 = vmatpush1.bf16.msra.mxu1 %v2218_v41 }
  0x5a   :  { %786 = vmatprep.subr.bf16.mxu0 %v2222_v42  ;;  %827 = vmatprep.subr.bf16.mxu1 %v2224_v43 }
  0x5d   :  { %787 = vmatpush1.bf16.msra.mxu0 %v2231_v45  ;;  %828 = vmatpush1.bf16.msra.mxu1 %v2233_v46 }
  0x5e   :  { %788 = vmatprep.subr.bf16.mxu0 %v2237_v47  ;;  %829 = vmatprep.subr.bf16.mxu1 %v2241_v48 }
  0x61   :  { %789 = vmatpush1.bf16.msra.mxu0 %v2243_v49  ;;  %830 = vmatpush1.bf16.msra.mxu1 %v2245_v50 }
  0x62   :  { %790 = vmatprep.subr.bf16.mxu0 %v2249_v51  ;;  %831 = vmatprep.subr.bf16.mxu1 %v2253_v52 }
  0x65   :  { %791 = vmatpush1.bf16.msra.mxu0 %v2260_v54  ;;  %832 = vmatpush1.bf16.msra.mxu1 %v2262_v55 }
  0x66   :  { %792 = vmatprep.subr.bf16.mxu0 %v2264_v56  ;;  %833 = vmatprep.subr.bf16.mxu1 %v2266_v57 }
  0x69   :  { %793 = vmatpush1.bf16.msra.mxu0 %v2274_v58  ;;  %834 = vmatpush1.bf16.msra.mxu1 %v2276_v59 }
  0x6a   :  { %794 = vmatprep.subr.bf16.mxu0 %v2280_v60  ;;  %835 = vmatprep.subr.bf16.mxu1 %v2282_v61 }
  0x6d   :  { %795 = vmatpush1.bf16.msra.mxu0 %v2291_v63  ;;  %836 = vmatpush1.bf16.msra.mxu1 %v2293_v1 }
  0x6e   :  { %796 = vmatprep.subr.bf16.mxu0 %v2297_v2  ;;  %837 = vmatprep.subr.bf16.mxu1 %v2299_v3 }
  0x71   :  { %797 = vmatpush1.bf16.msra.mxu0 %v2303_v4  ;;  %838 = vmatpush1.bf16.msra.mxu1 %v2305_v5 }
  0x72   :  { %894 = vmatprep.subr.bf16.mxu0 %v2197_v33  ;;  %935 = vmatprep.subr.bf16.mxu1 %v2199_v34 }
 0x107   :  { %v2354_v15 = vpop.f32.mrb[0].mxu0  ;;  %v2356_v16 = vpop.f32.mrb[0].mxu1 }
 0x108   :  { %v326_v19 = vpop.f32.mrb[1].mxu0  ;;  %v399_v20 = vpop.f32.mrb[1].mxu1 }
 0x109   :  { %v328_v22 = vpop.f32.mrb[2].mxu0  ;;  %v401_v23 = vpop.f32.mrb[2].mxu1 }
 0x10a   :  { %v2360_v24 = vadd.f32 %v328_v22, %v89_v18  ;;  %v330_v25 = vpop.f32.mrb[3].mxu0  ;;  %v2363_v26 = vadd.f32 %v401_v23, %v2352_v14  ;;  %v403_v27 = vpop.f32.mrb[3].mxu1 }
 0x10b   :  { %v2365_v28 = vadd.f32 %v330_v25, %v93_v21  ;;  %v2368_v29 = vadd.f32 %v403_v27, %v2358_v17 }
 0x10f   :  { %v334_v30 = vpop.f32.mrb[4].mxu0  ;;  %v407_v31 = vpop.f32.mrb[4].mxu1 }
 0x110   :  { %v2370_v32 = vadd.f32 %v334_v30, %v89_v18  ;;  %v336_v35 = vpop.f32.mrb[5].mxu0  ;;  %v2373_v44 = vadd.f32 %v407_v31, %v2352_v14  ;;  %v409_v53 = vpop.f32.mrb[5].mxu1 }
 0x111   :  { %v2375_v62 = vadd.f32 %v336_v35, %v93_v21  ;;  %v338_v6 = vpop.f32.mrb[6].mxu0  ;;  %v2378_v7 = vadd.f32 %v409_v53, %v2358_v17  ;;  %v411_v8 = vpop.f32.mrb[6].mxu1 }
 0x112   :  { %v2380_v9 = vadd.f32 %v338_v6, %v89_v18  ;;  %v340_v10 = vpop.f32.mrb[7].mxu0  ;;  %v2383_v11 = vadd.f32 %v411_v8, %v2352_v14  ;;  %v413_v12 = vpop.f32.mrb[7].mxu1 }
 0x113   :  { %2765 = vst [vmem:[#allocation8_spill] sm:$0xff] %v2378_v7  ;;  %v2385_v13 = vadd.f32 %v340_v10, %v93_v21  ;;  %v2388_v22 = vadd.f32 %v413_v12, %v2358_v17 }
 0x114   :  { %2766 = vst [vmem:[#allocation9_spill] sm:$0xff] %v2380_v9  ;;  %2767 = vst [vmem:[#allocation10_spill] sm:$0xff] %v2383_v11 }
 0x115   :  { %2768 = vst [vmem:[#allocation11_spill] sm:$0xff] %v2385_v13  ;;  %2769 = vst [vmem:[#allocation12_spill] sm:$0xff] %v2388_v22 }
 0x117   :  { %v344_v23 = vpop.f32.mrb[8].mxu0  ;;  %v417_v25 = vpop.f32.mrb[8].mxu1 }
 0x118   :  { %v2390_v27 = vadd.f32 %v344_v23, %v89_v18  ;;  %v346_v30 = vpop.f32.mrb[9].mxu0  ;;  %v2393_v31 = vadd.f32 %v417_v25, %v2352_v14  ;;  %v419_v35 = vpop.f32.mrb[9].mxu1 }
 0x119   :  { %v2395_v53 = vadd.f32 %v346_v30, %v93_v21  ;;  %v348_v6 = vpop.f32.mrb[10].mxu0  ;;  %v2398_v8 = vadd.f32 %v419_v35, %v2358_v17  ;;  %v421_v10 = vpop.f32.mrb[10].mxu1 }
 0x11a   :  { %2770 = vst [vmem:[#allocation13_spill] sm:$0xff] %v2390_v27  ;;  %2771 = vst [vmem:[#allocation14_spill] sm:$0xff] %v2393_v31  ;;  %v2400_v0 = vadd.f32 %v348_v6, %v89_v18  ;;  %v350_v12 = vpop.f32.mrb[11].mxu0  ;;  %v2403_v22 = vadd.f32 %v421_v10, %v2352_v14  ;;  %v423_v23 = vpop.f32.mrb[11].mxu1 }
 0x11b   :  { %2772 = vst [vmem:[#allocation15_spill] sm:$0xff] %v2395_v53  ;;  %2773 = vst [vmem:[#allocation16_spill] sm:$0xff] %v2398_v8  ;;  %v2405_v27 = vadd.f32 %v350_v12, %v93_v21  ;;  %v2408_v25 = vadd.f32 %v423_v23, %v2358_v17 }
 0x11c   :  { %2774 = vst [vmem:[#allocation17_spill] sm:$0xff] %v2400_v0  ;;  %2775 = vst [vmem:[#allocation18_spill] sm:$0xff] %v2403_v22 }
 0x11d   :  { %2776 = vst [vmem:[#allocation19_spill] sm:$0xff] %v2405_v27  ;;  %2777 = vst [vmem:[#allocation20_spill] sm:$0xff] %v2408_v25 }
 0x11f   :  { %v354_v31 = vpop.f32.mrb[12].mxu0  ;;  %v427_v30 = vpop.f32.mrb[12].mxu1 }
 0x120   :  { %v2410_v53 = vadd.f32 %v354_v31, %v89_v18  ;;  %v356_v13 = vpop.f32.mrb[13].mxu0  ;;  %v2413_v35 = vadd.f32 %v427_v30, %v2352_v14  ;;  %v429_v6 = vpop.f32.mrb[13].mxu1 }
 0x121   :  { %v2415_v0 = vadd.f32 %v356_v13, %v93_v21  ;;  %v358_v8 = vpop.f32.mrb[14].mxu0  ;;  %v2418_v10 = vadd.f32 %v429_v6, %v2358_v17  ;;  %v431_v12 = vpop.f32.mrb[14].mxu1  ;;  %v325_v13 = vadd.f32 %v2354_v15, %v89_v18  ;;  %v327_v6 = vadd.f32 %v326_v19, %v93_v21 }
 0x122   :  { %2778 = vst [vmem:[#allocation21_spill] sm:$0xff] %v2410_v53  ;;  %2779 = vst [vmem:[#allocation22_spill] sm:$0xff] %v2413_v35  ;;  %v2420_v27 = vadd.f32 %v358_v8, %v89_v18  ;;  %v360_v23 = vpop.f32.mrb[15].mxu0  ;;  %v2423_v25 = vadd.f32 %v431_v12, %v2352_v14  ;;  %v433_v31 = vpop.f32.mrb[15].mxu1 }
 0x123   :  { %2780 = vst [vmem:[#allocation23_spill] sm:$0xff] %v2415_v0  ;;  %2781 = vst [vmem:[#allocation24_spill] sm:$0xff] %v2418_v10  ;;  %v2425_v53 = vadd.f32 %v360_v23, %v93_v21  ;;  %v2428_v30 = vadd.f32 %v433_v31, %v2358_v17  ;;  %v398_v0 = vadd.f32 %v2356_v16, %v2352_v14 }
 0x124   :  { %2782 = vst [vmem:[#allocation25_spill] sm:$0xff] %v2420_v27  ;;  %2783 = vst [vmem:[#allocation26_spill] sm:$0xff] %v2423_v25  ;;  %v400_v10 = vadd.f32 %v399_v20, %v2358_v17 }
 0x125   :  { %2784 = vst [vmem:[#allocation27_spill] sm:$0xff] %v2425_v53  ;;  %2785 = vst [vmem:[#allocation28_spill] sm:$0xff] %v2428_v30 }
 0x127   :  { %v704_v8 = vpop.f32.mrb[16].mxu0  ;;  %v745_v27 = vpop.f32.mrb[16].mxu1 }
 0x128   :  { %v752_v35 = vadd.f32 %v704_v8, %v325_v13  ;;  %v754_v22 = vadd.f32 %v745_v27, %v398_v0  ;;  %v706_v12 = vpop.f32.mrb[17].mxu0  ;;  %v747_v25 = vpop.f32.mrb[17].mxu1 }
 0x129   :  { %v753_v11 = vadd.f32 %v706_v12, %v327_v6  ;;  %v755_v23 = vadd.f32 %v747_v25, %v400_v10  ;;  %v708_v53 = vpop.f32.mrb[18].mxu0  ;;  %v749_v9 = vpop.f32.mrb[18].mxu1 }
 0x12a   :  { %v756_v31 = vmul.f32 0.5, %v752_v35  ;;  %v709_v30 = vpop.f32.mrb[19].mxu0  ;;  %v750_v7 = vpop.f32.mrb[19].mxu1 }
 0x12b   :  { %v760_v15 = vmul.f32 0.5, %v753_v11  ;;  %v765_v14 = vmul.f32 0.5, %v755_v23  ;;  %v2786_v30 = vmov 0  }
 0x12c   :  { %1909 = vtanh.f32 %v756_v31 }
 0x12d   :  { %1911 = vtanh.f32 %v760_v15 }
 0x12e   :  { %1913 = vtanh.f32 %v754_v22 }
 0x12f   :  { %1915 = vtanh.f32 %v765_v14 }
 0x136   :  { %v1910_v16 = vpop.eup %1909 }
 0x137   :  { %v1912_v17 = vpop.eup %1911  ;;  %v758_v18 = vmul.f32 0.5, %v1910_v16 }
 0x138   :  { %v762_v19 = vmul.f32 0.5, %v1912_v17  ;;  %v1914_v20 = vpop.eup %1913 }
 0x139   :  { %v759_v0 = vadd.f32 0.5, %v758_v18  ;;  %v1916_v7 = vpop.eup %1915 }
 0x13a   :  { %v763_v21 = vadd.f32 0.5, %v762_v19  ;;  %v767_v9 = vmul.f32 0.5, %v1916_v7 }
 0x13b   :  { %v770_v27 = vmul.f32 %v1914_v20, %v759_v0 }
 0x13c   :  { %v769_v25 = vmul.f32 0.0, %v763_v21  ;;  %v768_v11 = vadd.f32 0.5, %v767_v9 }
 0x13e   :  { %v2434_v53 = vadd.f32 %v770_v27, %v769_v25 }
 0x140   :  { %1917 = vtanh.f32 %v2434_v53 }
 0x14a   :  { %v1918_v35 = vpop.eup %1917 }
 0x14b   :  { %v773_v22 = vmul.f32 %v1918_v35, %v768_v11 }
 0x14d   :  { %v781_v10 = vpack.c.bf16 %v773_v22, %v773_v22 }
 0x14f   :  { %815 = vmatmul.mubr.bf16.vlgmr.msra.gmra.mrb[20].mxu0 %v781_v10  ;;  %856 = vmatmul.mubr.bf16.vlgmr.msra.gmra.mrb[20].mxu1 %v781_v10 }
 0x150   :  { %895 = vmatpush1.bf16.msra.mxu0 %v2204_v36  ;;  %936 = vmatpush1.bf16.msra.mxu1 %v2206_v37 }
 0x151   :  { %896 = vmatprep.subr.bf16.mxu0 %v2210_v38  ;;  %937 = vmatprep.subr.bf16.mxu1 %v2212_v39 }
 0x152   :  { %926 = vmatprep.mubr.bf16.mxu0 %v2786_v30  ;;  %967 = vmatprep.mubr.bf16.mxu1 %v2786_v30 }
 0x154   :  { %897 = vmatpush1.bf16.msra.mxu0 %v2214_v40  ;;  %938 = vmatpush1.bf16.msra.mxu1 %v2218_v41 }
 0x155   :  { %898 = vmatprep.subr.bf16.mxu0 %v2222_v42  ;;  %939 = vmatprep.subr.bf16.mxu1 %v2224_v43 }
 0x158   :  { %899 = vmatpush1.bf16.msra.mxu0 %v2231_v45  ;;  %940 = vmatpush1.bf16.msra.mxu1 %v2233_v46 }
 0x159   :  { %900 = vmatprep.subr.bf16.mxu0 %v2237_v47  ;;  %941 = vmatprep.subr.bf16.mxu1 %v2241_v48 }
 0x15c   :  { %901 = vmatpush1.bf16.msra.mxu0 %v2243_v49  ;;  %942 = vmatpush1.bf16.msra.mxu1 %v2245_v50 }
 0x15d   :  { %902 = vmatprep.subr.bf16.mxu0 %v2249_v51  ;;  %943 = vmatprep.subr.bf16.mxu1 %v2253_v52 }
 0x160   :  { %903 = vmatpush1.bf16.msra.mxu0 %v2260_v54  ;;  %944 = vmatpush1.bf16.msra.mxu1 %v2262_v55 }
 0x161   :  { %904 = vmatprep.subr.bf16.mxu0 %v2264_v56  ;;  %945 = vmatprep.subr.bf16.mxu1 %v2266_v57 }
 0x164   :  { %905 = vmatpush1.bf16.msra.mxu0 %v2274_v58  ;;  %946 = vmatpush1.bf16.msra.mxu1 %v2276_v59 }
 0x165   :  { %906 = vmatprep.subr.bf16.mxu0 %v2280_v60  ;;  %947 = vmatprep.subr.bf16.mxu1 %v2282_v61 }
 0x168   :  { %907 = vmatpush1.bf16.msra.mxu0 %v2291_v63  ;;  %948 = vmatpush1.bf16.msra.mxu1 %v2293_v1 }
 0x169   :  { %908 = vmatprep.subr.bf16.mxu0 %v2297_v2  ;;  %949 = vmatprep.subr.bf16.mxu1 %v2299_v3 }
 0x16c   :  { %909 = vmatpush1.bf16.msra.mxu0 %v2303_v4  ;;  %950 = vmatpush1.bf16.msra.mxu1 %v2305_v5 }
 0x16d   :  { %1006 = vmatprep.subr.bf16.mxu0 %v2197_v33  ;;  %1047 = vmatprep.subr.bf16.mxu1 %v2199_v34 }
 0x222   :  { %v816_v13 = vpop.f32.mrb[20].mxu0  ;;  %v857_v6 = vpop.f32.mrb[20].mxu1 }
 0x223   :  { %v864_v8 = vadd.f32 %v816_v13, %v2360_v24  ;;  %v866_v12 = vadd.f32 %v857_v6, %v2363_v26  ;;  %v818_v23 = vpop.f32.mrb[21].mxu0  ;;  %v859_v31 = vpop.f32.mrb[21].mxu1 }
 0x224   :  { %v865_v15 = vadd.f32 %v818_v23, %v2365_v28  ;;  %v867_v14 = vadd.f32 %v859_v31, %v2368_v29  ;;  %v820_v16 = vpop.f32.mrb[22].mxu0  ;;  %v861_v17 = vpop.f32.mrb[22].mxu1 }
 0x225   :  { %v868_v18 = vmul.f32 0.5, %v864_v8  ;;  %v821_v19 = vpop.f32.mrb[23].mxu0  ;;  %v862_v0 = vpop.f32.mrb[23].mxu1 }
 0x226   :  { %v872_v20 = vmul.f32 0.5, %v865_v15  ;;  %v877_v21 = vmul.f32 0.5, %v867_v14 }
 0x227   :  { %1919 = vtanh.f32 %v868_v18  ;;  %v2787_v18 = vld [vmem:[#allocation8_spill] sm:$0xff] }
 0x228   :  { %1921 = vtanh.f32 %v872_v20 }
 0x229   :  { %1923 = vtanh.f32 %v866_v12 }
 0x22a   :  { %1925 = vtanh.f32 %v877_v21 }
 0x231   :  { %v1920_v27 = vpop.eup %1919 }
 0x232   :  { %v1922_v24 = vpop.eup %1921  ;;  %v870_v25 = vmul.f32 0.5, %v1920_v27 }
 0x233   :  { %v874_v26 = vmul.f32 0.5, %v1922_v24  ;;  %v1924_v9 = vpop.eup %1923 }
 0x234   :  { %v871_v7 = vadd.f32 0.5, %v870_v25  ;;  %v1926_v22 = vpop.eup %1925 }
 0x235   :  { %v875_v28 = vadd.f32 0.5, %v874_v26  ;;  %v879_v10 = vmul.f32 0.5, %v1926_v22 }
 0x236   :  { %v882_v11 = vmul.f32 %v1924_v9, %v871_v7 }
 0x237   :  { %v881_v29 = vmul.f32 %v875_v28, %v2434_v53  ;;  %v880_v13 = vadd.f32 0.5, %v879_v10 }
 0x239   :  { %v2476_v35 = vadd.f32 %v882_v11, %v881_v29 }
 0x23b   :  { %1927 = vtanh.f32 %v2476_v35 }
 0x245   :  { %v1928_v6 = vpop.eup %1927 }
 0x246   :  { %v885_v8 = vmul.f32 %v1928_v6, %v880_v13 }
 0x248   :  { %v893_v12 = vpack.c.bf16 %v885_v8, %v885_v8 }
 0x24a   :  { %927 = vmatmul.mubr.bf16.vlgmr.msra.gmra.mrb[24].mxu0 %v893_v12  ;;  %968 = vmatmul.mubr.bf16.vlgmr.msra.gmra.mrb[24].mxu1 %v893_v12 }
 0x24b   :  { %1007 = vmatpush1.bf16.msra.mxu0 %v2204_v36  ;;  %1048 = vmatpush1.bf16.msra.mxu1 %v2206_v37 }
 0x24c   :  { %1008 = vmatprep.subr.bf16.mxu0 %v2210_v38  ;;  %1049 = vmatprep.subr.bf16.mxu1 %v2212_v39 }
 0x24d   :  { %1038 = vmatprep.mubr.bf16.mxu0 %v2786_v30  ;;  %1079 = vmatprep.mubr.bf16.mxu1 %v2786_v30 }
 0x24f   :  { %1009 = vmatpush1.bf16.msra.mxu0 %v2214_v40  ;;  %1050 = vmatpush1.bf16.msra.mxu1 %v2218_v41 }
 0x250   :  { %1010 = vmatprep.subr.bf16.mxu0 %v2222_v42  ;;  %1051 = vmatprep.subr.bf16.mxu1 %v2224_v43 }
 0x253   :  { %1011 = vmatpush1.bf16.msra.mxu0 %v2231_v45  ;;  %1052 = vmatpush1.bf16.msra.mxu1 %v2233_v46 }
 0x254   :  { %1012 = vmatprep.subr.bf16.mxu0 %v2237_v47  ;;  %1053 = vmatprep.subr.bf16.mxu1 %v2241_v48 }
 0x257   :  { %1013 = vmatpush1.bf16.msra.mxu0 %v2243_v49  ;;  %1054 = vmatpush1.bf16.msra.mxu1 %v2245_v50 }
 0x258   :  { %1014 = vmatprep.subr.bf16.mxu0 %v2249_v51  ;;  %1055 = vmatprep.subr.bf16.mxu1 %v2253_v52 }
 0x25b   :  { %1015 = vmatpush1.bf16.msra.mxu0 %v2260_v54  ;;  %1056 = vmatpush1.bf16.msra.mxu1 %v2262_v55 }
 0x25c   :  { %1016 = vmatprep.subr.bf16.mxu0 %v2264_v56  ;;  %1057 = vmatprep.subr.bf16.mxu1 %v2266_v57 }
 0x25f   :  { %1017 = vmatpush1.bf16.msra.mxu0 %v2274_v58  ;;  %1058 = vmatpush1.bf16.msra.mxu1 %v2276_v59 }
 0x260   :  { %1018 = vmatprep.subr.bf16.mxu0 %v2280_v60  ;;  %1059 = vmatprep.subr.bf16.mxu1 %v2282_v61 }
 0x263   :  { %1019 = vmatpush1.bf16.msra.mxu0 %v2291_v63  ;;  %1060 = vmatpush1.bf16.msra.mxu1 %v2293_v1 }
 0x264   :  { %1020 = vmatprep.subr.bf16.mxu0 %v2297_v2  ;;  %1061 = vmatprep.subr.bf16.mxu1 %v2299_v3 }
 0x267   :  { %1021 = vmatpush1.bf16.msra.mxu0 %v2303_v4  ;;  %1062 = vmatpush1.bf16.msra.mxu1 %v2305_v5 }
 0x268   :  { %1118 = vmatprep.subr.bf16.mxu0 %v2197_v33  ;;  %1159 = vmatprep.subr.bf16.mxu1 %v2199_v34 }
 0x31d   :  { %v928_v53 = vpop.f32.mrb[24].mxu0  ;;  %v969_v23 = vpop.f32.mrb[24].mxu1 }
 0x31e   :  { %v976_v31 = vadd.f32 %v928_v53, %v2370_v32  ;;  %v978_v15 = vadd.f32 %v969_v23, %v2373_v44  ;;  %v930_v14 = vpop.f32.mrb[25].mxu0  ;;  %v971_v16 = vpop.f32.mrb[25].mxu1 }
 0x31f   :  { %v977_v17 = vadd.f32 %v930_v14, %v2375_v62  ;;  %v979_v19 = vadd.f32 %v971_v16, %v2787_v18  ;;  %v932_v0 = vpop.f32.mrb[26].mxu0  ;;  %v973_v20 = vpop.f32.mrb[26].mxu1  ;;  %v2789_v16 = vld [vmem:[#allocation10_spill] sm:$0xff] }
 0x320   :  { %v980_v21 = vmul.f32 0.5, %v976_v31  ;;  %v933_v27 = vpop.f32.mrb[27].mxu0  ;;  %v974_v24 = vpop.f32.mrb[27].mxu1  ;;  %v2790_v0 = vld [vmem:[#allocation11_spill] sm:$0xff] }
 0x321   :  { %v984_v25 = vmul.f32 0.5, %v977_v17  ;;  %v989_v26 = vmul.f32 0.5, %v979_v19 }
 0x322   :  { %1929 = vtanh.f32 %v980_v21  ;;  %v2791_v21 = vld [vmem:[#allocation12_spill] sm:$0xff] }
 0x323   :  { %1931 = vtanh.f32 %v984_v25 }
 0x324   :  { %1933 = vtanh.f32 %v978_v15  ;;  %v2788_v15 = vld [vmem:[#allocation9_spill] sm:$0xff] }
 0x325   :  { %1935 = vtanh.f32 %v989_v26 }
 0x32c   :  { %v1930_v7 = vpop.eup %1929 }
 0x32d   :  { %v1932_v32 = vpop.eup %1931  ;;  %v982_v9 = vmul.f32 0.5, %v1930_v7 }
 0x32e   :  { %v986_v44 = vmul.f32 0.5, %v1932_v32  ;;  %v1934_v11 = vpop.eup %1933 }
 0x32f   :  { %v983_v28 = vadd.f32 0.5, %v982_v9  ;;  %v1936_v13 = vpop.eup %1935 }
 0x330   :  { %v987_v62 = vadd.f32 0.5, %v986_v44  ;;  %v991_v6 = vmul.f32 0.5, %v1936_v13 }
 0x331   :  { %v994_v29 = vmul.f32 %v1934_v11, %v983_v28 }
 0x332   :  { %v993_v22 = vmul.f32 %v987_v62, %v2476_v35  ;;  %v992_v8 = vadd.f32 0.5, %v991_v6 }
 0x334   :  { %v2518_v10 = vadd.f32 %v994_v29, %v993_v22 }
 0x336   :  { %1937 = vtanh.f32 %v2518_v10 }
 0x340   :  { %v1938_v12 = vpop.eup %1937 }
 0x341   :  { %v997_v53 = vmul.f32 %v1938_v12, %v992_v8 }
 0x343   :  { %v1005_v23 = vpack.c.bf16 %v997_v53, %v997_v53 }
 0x345   :  { %1039 = vmatmul.mubr.bf16.vlgmr.msra.gmra.mrb[28].mxu0 %v1005_v23  ;;  %1080 = vmatmul.mubr.bf16.vlgmr.msra.gmra.mrb[28].mxu1 %v1005_v23 }
 0x346   :  { %1119 = vmatpush1.bf16.msra.mxu0 %v2204_v36  ;;  %1160 = vmatpush1.bf16.msra.mxu1 %v2206_v37 }
 0x347   :  { %1120 = vmatprep.subr.bf16.mxu0 %v2210_v38  ;;  %1161 = vmatprep.subr.bf16.mxu1 %v2212_v39 }
 0x348   :  { %1150 = vmatprep.mubr.bf16.mxu0 %v2786_v30  ;;  %1191 = vmatprep.mubr.bf16.mxu1 %v2786_v30 }
 0x34a   :  { %1121 = vmatpush1.bf16.msra.mxu0 %v2214_v40  ;;  %1162 = vmatpush1.bf16.msra.mxu1 %v2218_v41 }
 0x34b   :  { %1122 = vmatprep.subr.bf16.mxu0 %v2222_v42  ;;  %1163 = vmatprep.subr.bf16.mxu1 %v2224_v43 }
 0x34e   :  { %1123 = vmatpush1.bf16.msra.mxu0 %v2231_v45  ;;  %1164 = vmatpush1.bf16.msra.mxu1 %v2233_v46 }
 0x34f   :  { %1124 = vmatprep.subr.bf16.mxu0 %v2237_v47  ;;  %1165 = vmatprep.subr.bf16.mxu1 %v2241_v48 }
 0x352   :  { %1125 = vmatpush1.bf16.msra.mxu0 %v2243_v49  ;;  %1166 = vmatpush1.bf16.msra.mxu1 %v2245_v50 }
 0x353   :  { %1126 = vmatprep.subr.bf16.mxu0 %v2249_v51  ;;  %1167 = vmatprep.subr.bf16.mxu1 %v2253_v52 }
 0x356   :  { %1127 = vmatpush1.bf16.msra.mxu0 %v2260_v54  ;;  %1168 = vmatpush1.bf16.msra.mxu1 %v2262_v55 }
 0x357   :  { %1128 = vmatprep.subr.bf16.mxu0 %v2264_v56  ;;  %1169 = vmatprep.subr.bf16.mxu1 %v2266_v57 }
 0x35a   :  { %1129 = vmatpush1.bf16.msra.mxu0 %v2274_v58  ;;  %1170 = vmatpush1.bf16.msra.mxu1 %v2276_v59 }
 0x35b   :  { %1130 = vmatprep.subr.bf16.mxu0 %v2280_v60  ;;  %1171 = vmatprep.subr.bf16.mxu1 %v2282_v61 }
 0x35e   :  { %1131 = vmatpush1.bf16.msra.mxu0 %v2291_v63  ;;  %1172 = vmatpush1.bf16.msra.mxu1 %v2293_v1 }
 0x35f   :  { %1132 = vmatprep.subr.bf16.mxu0 %v2297_v2  ;;  %1173 = vmatprep.subr.bf16.mxu1 %v2299_v3 }
 0x362   :  { %1133 = vmatpush1.bf16.msra.mxu0 %v2303_v4  ;;  %1174 = vmatpush1.bf16.msra.mxu1 %v2305_v5 }
 0x363   :  { %1230 = vmatprep.subr.bf16.mxu0 %v2197_v33  ;;  %1271 = vmatprep.subr.bf16.mxu1 %v2199_v34 }
 0x418   :  { %v1040_v35 = vpop.f32.mrb[28].mxu0  ;;  %v1081_v31 = vpop.f32.mrb[28].mxu1 }
 0x419   :  { %v1088_v14 = vadd.f32 %v1040_v35, %v2788_v15  ;;  %v1090_v17 = vadd.f32 %v1081_v31, %v2789_v16  ;;  %v1042_v18 = vpop.f32.mrb[29].mxu0  ;;  %v1083_v19 = vpop.f32.mrb[29].mxu1 }
 0x41a   :  { %v1089_v20 = vadd.f32 %v1042_v18, %v2790_v0  ;;  %v1091_v27 = vadd.f32 %v1083_v19, %v2791_v21  ;;  %v1044_v24 = vpop.f32.mrb[30].mxu0  ;;  %v1085_v25 = vpop.f32.mrb[30].mxu1 }
 0x41b   :  { %v1092_v26 = vmul.f32 0.5, %v1088_v14  ;;  %v1045_v7 = vpop.f32.mrb[31].mxu0  ;;  %v1086_v32 = vpop.f32.mrb[31].mxu1 }
 0x41c   :  { %v1096_v33 = vmul.f32 0.5, %v1089_v20  ;;  %v1101_v34 = vmul.f32 0.5, %v1091_v27 }
 0x41d   :  { %1939 = vtanh.f32 %v1092_v26 }
 0x41e   :  { %1941 = vtanh.f32 %v1096_v33 }
 0x41f   :  { %1943 = vtanh.f32 %v1090_v17 }
 0x420   :  { %1945 = vtanh.f32 %v1101_v34 }
 0x427   :  { %v1940_v9 = vpop.eup %1939 }
 0x428   :  { %v1942_v44 = vpop.eup %1941  ;;  %v1094_v28 = vmul.f32 0.5, %v1940_v9  ;;  %v2609_v9 = vld [vmem:[#allocation5] ss:$16 sps:$4 sm:$0xff]  }
 0x429   :  { %v1098_v11 = vmul.f32 0.5, %v1942_v44  ;;  %v1944_v29 = vpop.eup %1943  ;;  %v2612_v44 = vld [vmem:[#allocation5 + $0x8] ss:$16 sps:$4 sm:$0xff]  }
 0x42a   :  { %v1095_v62 = vadd.f32 0.5, %v1094_v28  ;;  %v1946_v12 = vpop.eup %1945  ;;  %v2615_v28 = vld [vmem:[#allocation5 + $0x24] ss:$16 sps:$4 sm:$0xff]  }
 0x42b   :  { %v1099_v22 = vadd.f32 0.5, %v1098_v11  ;;  %v1103_v53 = vmul.f32 0.5, %v1946_v12  ;;  %v2618_v11 = vld [vmem:[#allocation5 + $0x2c] ss:$16 sps:$4 sm:$0xff]   ;;  %v2641_v12 = vld [vmem:[#allocation5 + $0x64] ss:$16 sps:$4 sm:$0xff]  }
 0x42c   :  { %v1106_v13 = vmul.f32 %v1944_v29, %v1095_v62  ;;  %v2623_v62 = vld [vmem:[#allocation5 + $0x20] ss:$16 sps:$4 sm:$0xff]   ;;  %v2626_v29 = vld [vmem:[#allocation5 + $0x28] ss:$16 sps:$4 sm:$0xff]  }
 0x42d   :  { %v1105_v6 = vmul.f32 %v1099_v22, %v2518_v10  ;;  %v1104_v23 = vadd.f32 0.5, %v1103_v53  ;;  %v2629_v22 = vld [vmem:[#allocation5 + $0x44] ss:$16 sps:$4 sm:$0xff]   ;;  %v2644_v53 = vld [vmem:[#allocation5 + $0x6c] ss:$16 sps:$4 sm:$0xff]  }
 0x42f   :  { %v2560_v8 = vadd.f32 %v1106_v13, %v1105_v6  ;;  %v2632_v13 = vld [vmem:[#allocation5 + $0x4c] ss:$16 sps:$4 sm:$0xff]   ;;  %v2635_v6 = vld [vmem:[#allocation5 + $0x40] ss:$16 sps:$4 sm:$0xff]  }
 0x431   :  { %1947 = vtanh.f32 %v2560_v8 }
 0x43b   :  { %v1948_v35 = vpop.eup %1947 }
 0x43c   :  { %v1109_v31 = vmul.f32 %v1948_v35, %v1104_v23  ;;  %v2647_v23 = vld [vmem:[#allocation5 + $0x60] ss:$16 sps:$4 sm:$0xff]   ;;  %v2650_v35 = vld [vmem:[#allocation5 + $0x68] ss:$16 sps:$4 sm:$0xff]  }
 0x43e   :  { %v1117_v15 = vpack.c.bf16 %v1109_v31, %v1109_v31  ;;  %v2653_v31 = vld [vmem:[#allocation5 + $0x84] ss:$16 sps:$4 sm:$0xff]  }
 0x440   :  { %1151 = vmatmul.mubr.bf16.vlgmr.msra.gmra.mrb[32].mxu0 %v1117_v15  ;;  %1192 = vmatmul.mubr.bf16.vlgmr.msra.gmra.mrb[32].mxu1 %v1117_v15  ;;  %v2656_v15 = vld [vmem:[#allocation5 + $0x8c] ss:$16 sps:$4 sm:$0xff]  }
 0x441   :  { %1231 = vmatpush1.bf16.msra.mxu0 %v2204_v36  ;;  %1272 = vmatpush1.bf16.msra.mxu1 %v2206_v37  ;;  %v2595_v36 = vld [vmem:[#allocation5 + $0x4] ss:$16 sps:$4 sm:$0xff]   ;;  %v2598_v37 = vld [vmem:[#allocation5 + $0xc] ss:$16 sps:$4 sm:$0xff]  }
 0x442   :  { %1232 = vmatprep.subr.bf16.mxu0 %v2210_v38  ;;  %1273 = vmatprep.subr.bf16.mxu1 %v2212_v39 }
 0x443   :  { %1262 = vmatprep.mubr.bf16.mxu0 %v2786_v30  ;;  %1303 = vmatprep.mubr.bf16.mxu1 %v2786_v30 }
 0x445   :  { %1233 = vmatpush1.bf16.msra.mxu0 %v2214_v40  ;;  %1274 = vmatpush1.bf16.msra.mxu1 %v2218_v41  ;;  %v2792_v40 = vld [vmem:[#allocation13_spill] sm:$0xff] }
 0x446   :  { %1234 = vmatprep.subr.bf16.mxu0 %v2222_v42  ;;  %1275 = vmatprep.subr.bf16.mxu1 %v2224_v43  ;;  %v2793_v42 = vld [vmem:[#allocation14_spill] sm:$0xff] }
 0x449   :  { %1235 = vmatpush1.bf16.msra.mxu0 %v2231_v45  ;;  %1276 = vmatpush1.bf16.msra.mxu1 %v2233_v46 }
 0x44a   :  { %1236 = vmatprep.subr.bf16.mxu0 %v2237_v47  ;;  %1277 = vmatprep.subr.bf16.mxu1 %v2241_v48  ;;  %v2794_v47 = vld [vmem:[#allocation15_spill] sm:$0xff] }
 0x44d   :  { %1237 = vmatpush1.bf16.msra.mxu0 %v2243_v49  ;;  %1278 = vmatpush1.bf16.msra.mxu1 %v2245_v50  ;;  %v2795_v49 = vld [vmem:[#allocation16_spill] sm:$0xff] }
 0x44e   :  { %1238 = vmatprep.subr.bf16.mxu0 %v2249_v51  ;;  %1279 = vmatprep.subr.bf16.mxu1 %v2253_v52 }
 0x451   :  { %1239 = vmatpush1.bf16.msra.mxu0 %v2260_v54  ;;  %1280 = vmatpush1.bf16.msra.mxu1 %v2262_v55 }
 0x452   :  { %1240 = vmatprep.subr.bf16.mxu0 %v2264_v56  ;;  %1281 = vmatprep.subr.bf16.mxu1 %v2266_v57 }
 0x455   :  { %1241 = vmatpush1.bf16.msra.mxu0 %v2274_v58  ;;  %1282 = vmatpush1.bf16.msra.mxu1 %v2276_v59 }
 0x456   :  { %1242 = vmatprep.subr.bf16.mxu0 %v2280_v60  ;;  %1283 = vmatprep.subr.bf16.mxu1 %v2282_v61 }
 0x459   :  { %1243 = vmatpush1.bf16.msra.mxu0 %v2291_v63  ;;  %1284 = vmatpush1.bf16.msra.mxu1 %v2293_v1 }
 0x45a   :  { %1244 = vmatprep.subr.bf16.mxu0 %v2297_v2  ;;  %1285 = vmatprep.subr.bf16.mxu1 %v2299_v3 }
 0x45d   :  { %1245 = vmatpush1.bf16.msra.mxu0 %v2303_v4  ;;  %1286 = vmatpush1.bf16.msra.mxu1 %v2305_v5 }
 0x45e   :  { %1342 = vmatprep.subr.bf16.mxu0 %v2595_v36  ;;  %1383 = vmatprep.subr.bf16.mxu1 %v2598_v37 }
 0x513   :  { %v1152_v38 = vpop.f32.mrb[32].mxu0  ;;  %v1193_v39 = vpop.f32.mrb[32].mxu1 }
 0x514   :  { %v1200_v41 = vadd.f32 %v1152_v38, %v2792_v40  ;;  %v1202_v43 = vadd.f32 %v1193_v39, %v2793_v42  ;;  %v1154_v45 = vpop.f32.mrb[33].mxu0  ;;  %v1195_v46 = vpop.f32.mrb[33].mxu1  ;;  %v2659_v38 = vld [vmem:[#allocation5 + $0x80] ss:$16 sps:$4 sm:$0xff]   ;;  %v2662_v39 = vld [vmem:[#allocation5 + $0x88] ss:$16 sps:$4 sm:$0xff]  }
 0x515   :  { %v1201_v48 = vadd.f32 %v1154_v45, %v2794_v47  ;;  %v1203_v50 = vadd.f32 %v1195_v46, %v2795_v49  ;;  %v1156_v51 = vpop.f32.mrb[34].mxu0  ;;  %v1197_v52 = vpop.f32.mrb[34].mxu1  ;;  %v2665_v40 = vld [vmem:[#allocation5 + $0xa4] ss:$16 sps:$4 sm:$0xff]   ;;  %v2798_v45 = vld [vmem:[#allocation19_spill] sm:$0xff] }
 0x516   :  { %v1204_v54 = vmul.f32 0.5, %v1200_v41  ;;  %v1157_v55 = vpop.f32.mrb[35].mxu0  ;;  %v1198_v56 = vpop.f32.mrb[35].mxu1  ;;  %v2668_v41 = vld [vmem:[#allocation5 + $0xac] ss:$16 sps:$4 sm:$0xff]   ;;  %v2797_v42 = vld [vmem:[#allocation18_spill] sm:$0xff] }
 0x517   :  { %v1208_v57 = vmul.f32 0.5, %v1201_v48  ;;  %v1213_v10 = vmul.f32 0.5, %v1203_v50  ;;  %v2799_v46 = vld [vmem:[#allocation20_spill] sm:$0xff] }
 0x518   :  { %1949 = vtanh.f32 %v1204_v54 }
 0x519   :  { %1951 = vtanh.f32 %v1208_v57 }
 0x51a   :  { %1953 = vtanh.f32 %v1202_v43 }
 0x51b   :  { %1955 = vtanh.f32 %v1213_v10 }
 0x522   :  { %v1950_v14 = vpop.eup %1949 }
 0x523   :  { %v1952_v16 = vpop.eup %1951  ;;  %v1206_v17 = vmul.f32 0.5, %v1950_v14 }
 0x524   :  { %v1210_v18 = vmul.f32 0.5, %v1952_v16  ;;  %v1954_v0 = vpop.eup %1953 }
 0x525   :  { %v1207_v19 = vadd.f32 0.5, %v1206_v17  ;;  %v1956_v25 = vpop.eup %1955 }
 0x526   :  { %v1211_v20 = vadd.f32 0.5, %v1210_v18  ;;  %v1215_v26 = vmul.f32 0.5, %v1956_v25  ;;  %v2014_v25 = vld [vmem:[#allocation5 + $0xcc] ss:$16 sps:$4 sm:$0xff]  }
 0x527   :  { %v1218_v21 = vmul.f32 %v1954_v0, %v1207_v19 }
 0x528   :  { %v1217_v27 = vmul.f32 %v1211_v20, %v2560_v8  ;;  %v1216_v7 = vadd.f32 0.5, %v1215_v26  ;;  %v2638_v8 = vld [vmem:[#allocation5 + $0x48] ss:$16 sps:$4 sm:$0xff]   ;;  %v2015_v26 = vld [vmem:[#allocation5 + $0xc0] ss:$16 sps:$4 sm:$0xff]  }
 0x52a   :  { %v2606_v24 = vadd.f32 %v1218_v21, %v1217_v27  ;;  %v2012_v27 = vld [vmem:[#allocation5 + $0xa8] ss:$16 sps:$4 sm:$0xff]  }
 0x52c   :  { %1957 = vtanh.f32 %v2606_v24 }
 0x536   :  { %v1958_v32 = vpop.eup %1957 }
 0x537   :  { %v1221_v33 = vmul.f32 %v1958_v32, %v1216_v7  ;;  %v2016_v7 = vld [vmem:[#allocation5 + $0xc8] ss:$16 sps:$4 sm:$0xff]   ;;  %v2017_v32 = vld [vmem:[#allocation5 + $0xe4] ss:$16 sps:$4 sm:$0xff]  }
 0x539   :  { %v1229_v34 = vpack.c.bf16 %v1221_v33, %v1221_v33  ;;  %v2018_v33 = vld [vmem:[#allocation5 + $0xec] ss:$16 sps:$4 sm:$0xff]  }
 0x53b   :  { %1263 = vmatmul.mubr.bf16.vlgmr.msra.gmra.mrb[36].mxu0 %v1229_v34  ;;  %1304 = vmatmul.mubr.bf16.vlgmr.msra.gmra.mrb[36].mxu1 %v1229_v34  ;;  %v2019_v34 = vld [vmem:[#allocation5 + $0xe0] ss:$16 sps:$4 sm:$0xff]  }
 0x53c   :  { %1343 = vmatpush1.bf16.msra.mxu0 %v2609_v9  ;;  %1384 = vmatpush1.bf16.msra.mxu1 %v2612_v44 }
 0x53d   :  { %1344 = vmatprep.subr.bf16.mxu0 %v2615_v28  ;;  %1385 = vmatprep.subr.bf16.mxu1 %v2618_v11 }
 0x53e   :  { %1374 = vmatprep.mubr.bf16.mxu0 %v2786_v30  ;;  %1415 = vmatprep.mubr.bf16.mxu1 %v2786_v30 }
 0x540   :  { %1345 = vmatpush1.bf16.msra.mxu0 %v2623_v62  ;;  %1386 = vmatpush1.bf16.msra.mxu1 %v2626_v29 }
 0x541   :  { %1346 = vmatprep.subr.bf16.mxu0 %v2629_v22  ;;  %1387 = vmatprep.subr.bf16.mxu1 %v2632_v13 }
 0x544   :  { %1347 = vmatpush1.bf16.msra.mxu0 %v2635_v6  ;;  %1388 = vmatpush1.bf16.msra.mxu1 %v2638_v8 }
 0x545   :  { %1348 = vmatprep.subr.bf16.mxu0 %v2641_v12  ;;  %1389 = vmatprep.subr.bf16.mxu1 %v2644_v53 }
 0x548   :  { %1349 = vmatpush1.bf16.msra.mxu0 %v2647_v23  ;;  %1390 = vmatpush1.bf16.msra.mxu1 %v2650_v35 }
 0x549   :  { %1350 = vmatprep.subr.bf16.mxu0 %v2653_v31  ;;  %1391 = vmatprep.subr.bf16.mxu1 %v2656_v15 }
 0x54c   :  { %1351 = vmatpush1.bf16.msra.mxu0 %v2659_v38  ;;  %1392 = vmatpush1.bf16.msra.mxu1 %v2662_v39 }
 0x54d   :  { %1352 = vmatprep.subr.bf16.mxu0 %v2665_v40  ;;  %1393 = vmatprep.subr.bf16.mxu1 %v2668_v41 }
 0x550   :  { %1353 = vmatpush1.bf16.msra.mxu0 %v2274_v58  ;;  %1394 = vmatpush1.bf16.msra.mxu1 %v2276_v59 }
 0x551   :  { %1354 = vmatprep.subr.bf16.mxu0 %v2280_v60  ;;  %1395 = vmatprep.subr.bf16.mxu1 %v2282_v61  ;;  %v2796_v60 = vld [vmem:[#allocation17_spill] sm:$0xff] }
 0x554   :  { %1355 = vmatpush1.bf16.msra.mxu0 %v2291_v63  ;;  %1396 = vmatpush1.bf16.msra.mxu1 %v2293_v1 }
 0x555   :  { %1356 = vmatprep.subr.bf16.mxu0 %v2297_v2  ;;  %1397 = vmatprep.subr.bf16.mxu1 %v2299_v3 }
 0x558   :  { %1357 = vmatpush1.bf16.msra.mxu0 %v2303_v4  ;;  %1398 = vmatpush1.bf16.msra.mxu1 %v2305_v5 }
 0x559   :  { %1454 = vmatprep.subr.bf16.mxu0 %v2595_v36  ;;  %1495 = vmatprep.subr.bf16.mxu1 %v2598_v37 }
 0x60e   :  { %v1264_v58 = vpop.f32.mrb[36].mxu0  ;;  %v1305_v59 = vpop.f32.mrb[36].mxu1 }
 0x60f   :  { %v1312_v61 = vadd.f32 %v1264_v58, %v2796_v60  ;;  %v1314_v63 = vadd.f32 %v1305_v59, %v2797_v42  ;;  %v1266_v43 = vpop.f32.mrb[37].mxu0  ;;  %v1307_v1 = vpop.f32.mrb[37].mxu1 }
 0x610   :  { %v1313_v2 = vadd.f32 %v1266_v43, %v2798_v45  ;;  %v1315_v3 = vadd.f32 %v1307_v1, %v2799_v46  ;;  %v1268_v47 = vpop.f32.mrb[38].mxu0  ;;  %v1309_v4 = vpop.f32.mrb[38].mxu1 }
 0x611   :  { %v1316_v48 = vmul.f32 0.5, %v1312_v61  ;;  %v1269_v5 = vpop.f32.mrb[39].mxu0  ;;  %v1310_v49 = vpop.f32.mrb[39].mxu1 }
 0x612   :  { %v1320_v36 = vmul.f32 0.5, %v1313_v2  ;;  %v1325_v37 = vmul.f32 0.5, %v1315_v3  ;;  %v1901_v49 = vld [vmem:[%s2760_s4] sm:$0xff]  }
 0x613   :  { %1959 = vtanh.f32 %v1316_v48 }
 0x614   :  { %1961 = vtanh.f32 %v1320_v36  ;;  %v2050_v36 = vmov 0.0  }
 0x615   :  { %1963 = vtanh.f32 %v1314_v63 }
 0x616   :  { %1965 = vtanh.f32 %v1325_v37  ;;  %v1902_v37 = vld [vmem:[%s2760_s4 + $0x8] sm:$0xff]  }
 0x61d   :  { %v1960_v50 = vpop.eup %1959 }
 0x61e   :  { %v1962_v51 = vpop.eup %1961  ;;  %v1318_v52 = vmul.f32 0.5, %v1960_v50  ;;  %v1903_v50 = vld [vmem:[%s2760_s4 + $0x10] sm:$0xff]  }
 0x61f   :  { %v1322_v54 = vmul.f32 0.5, %v1962_v51  ;;  %v1964_v56 = vpop.eup %1963  ;;  %v1904_v51 = vld [vmem:[%s2760_s4 + $0x18] sm:$0xff]  }
 0x620   :  { %v1319_v55 = vadd.f32 0.5, %v1318_v52  ;;  %v1966_v17 = vpop.eup %1965  ;;  %v1905_v52 = vld [vmem:[%s2760_s4 + $0x20] sm:$0xff]  }
 0x621   :  { %v1323_v57 = vadd.f32 0.5, %v1322_v54  ;;  %v1327_v18 = vmul.f32 0.5, %v1966_v17  ;;  %v1906_v54 = vld [vmem:[%s2760_s4 + $0x28] sm:$0xff]   ;;  %v2805_v17 = vld [vmem:[#allocation26_spill] sm:$0xff] }
 0x622   :  { %v1330_v10 = vmul.f32 %v1964_v56, %v1319_v55  ;;  %v1907_v55 = vld [vmem:[%s2760_s4 + $0x30] sm:$0xff]   ;;  %v1908_v56 = vld [vmem:[%s2760_s4 + $0x38] sm:$0xff]  }
 0x623   :  { %v1329_v14 = vmul.f32 %v1323_v57, %v2606_v24  ;;  %v1328_v19 = vadd.f32 0.5, %v1327_v18  ;;  %v2013_v24 = vld [vmem:[#allocation5 + $0xc4] ss:$16 sps:$4 sm:$0xff]  }
 0x625   :  { %v2688_v16 = vadd.f32 %v1330_v10, %v1329_v14  ;;  %v2804_v14 = vld [vmem:[#allocation25_spill] sm:$0xff] }
 0x627   :  { %1967 = vtanh.f32 %v2688_v16 }
 0x631   :  { %v1968_v0 = vpop.eup %1967 }
 0x632   :  { %v1333_v20 = vmul.f32 %v1968_v0, %v1328_v19 }
 0x634   :  { %v1341_v21 = vpack.c.bf16 %v1333_v20, %v1333_v20  ;;  %v2806_v20 = vld [vmem:[#allocation27_spill] sm:$0xff] }
 0x636   :  { %1375 = vmatmul.mubr.bf16.vlgmr.msra.gmra.mrb[40].mxu0 %v1341_v21  ;;  %1416 = vmatmul.mubr.bf16.vlgmr.msra.gmra.mrb[40].mxu1 %v1341_v21 }
 0x637   :  { %1455 = vmatpush1.bf16.msra.mxu0 %v2609_v9  ;;  %1496 = vmatpush1.bf16.msra.mxu1 %v2612_v44  ;;  %v2020_v9 = vld [vmem:[#allocation5 + $0xe8] ss:$16 sps:$4 sm:$0xff]  }
 0x638   :  { %1456 = vmatprep.subr.bf16.mxu0 %v2615_v28  ;;  %1497 = vmatprep.subr.bf16.mxu1 %v2618_v11  ;;  %v2800_v11 = vld [vmem:[#allocation21_spill] sm:$0xff] }
 0x639   :  { %1486 = vmatprep.mubr.bf16.mxu0 %v2786_v30  ;;  %1527 = vmatprep.mubr.bf16.mxu1 %v2786_v30  ;;  %v2011_v30 = vld [vmem:[#allocation5 + $0xa0] ss:$16 sps:$4 sm:$0xff]  }
 0x63b   :  { %1457 = vmatpush1.bf16.msra.mxu0 %v2623_v62  ;;  %1498 = vmatpush1.bf16.msra.mxu1 %v2626_v29  ;;  %v2801_v29 = vld [vmem:[#allocation22_spill] sm:$0xff] }
 0x63c   :  { %1458 = vmatprep.subr.bf16.mxu0 %v2629_v22  ;;  %1499 = vmatprep.subr.bf16.mxu1 %v2632_v13 }
 0x63f   :  { %1459 = vmatpush1.bf16.msra.mxu0 %v2635_v6  ;;  %1500 = vmatpush1.bf16.msra.mxu1 %v2638_v8  ;;  %v2802_v8 = vld [vmem:[#allocation23_spill] sm:$0xff] }
 0x640   :  { %1460 = vmatprep.subr.bf16.mxu0 %v2641_v12  ;;  %1501 = vmatprep.subr.bf16.mxu1 %v2644_v53  ;;  %v2803_v53 = vld [vmem:[#allocation24_spill] sm:$0xff] }
 0x643   :  { %1461 = vmatpush1.bf16.msra.mxu0 %v2647_v23  ;;  %1502 = vmatpush1.bf16.msra.mxu1 %v2650_v35 }
 0x644   :  { %1462 = vmatprep.subr.bf16.mxu0 %v2653_v31  ;;  %1503 = vmatprep.subr.bf16.mxu1 %v2656_v15 }
 0x647   :  { %1463 = vmatpush1.bf16.msra.mxu0 %v2659_v38  ;;  %1504 = vmatpush1.bf16.msra.mxu1 %v2662_v39 }
 0x648   :  { %1464 = vmatprep.subr.bf16.mxu0 %v2665_v40  ;;  %1505 = vmatprep.subr.bf16.mxu1 %v2668_v41 }
 0x64b   :  { %1465 = vmatpush1.bf16.msra.mxu0 %v2011_v30  ;;  %1506 = vmatpush1.bf16.msra.mxu1 %v2012_v27  ;;  %v2807_v30 = vld [vmem:[#allocation28_spill] sm:$0xff] }
 0x64c   :  { %1466 = vmatprep.subr.bf16.mxu0 %v2013_v24  ;;  %1507 = vmatprep.subr.bf16.mxu1 %v2014_v25 }
 0x64f   :  { %1467 = vmatpush1.bf16.msra.mxu0 %v2015_v26  ;;  %1508 = vmatpush1.bf16.msra.mxu1 %v2016_v7 }
 0x650   :  { %1468 = vmatprep.subr.bf16.mxu0 %v2017_v32  ;;  %1509 = vmatprep.subr.bf16.mxu1 %v2018_v33 }
 0x653   :  { %1469 = vmatpush1.bf16.msra.mxu0 %v2019_v34  ;;  %1510 = vmatpush1.bf16.msra.mxu1 %v2020_v9 }
 0x654   :  { %1774 = vmatprep.subr.bf16.mxu0 %v2050_v36 }
 0x709   :  { %v1376_v44 = vpop.f32.mrb[40].mxu0  ;;  %v1417_v28 = vpop.f32.mrb[40].mxu1 }
 0x70a   :  { %v1424_v62 = vadd.f32 %v1376_v44, %v2800_v11  ;;  %v1426_v22 = vadd.f32 %v1417_v28, %v2801_v29  ;;  %v1378_v13 = vpop.f32.mrb[41].mxu0  ;;  %v1419_v6 = vpop.f32.mrb[41].mxu1 }
 0x70b   :  { %v1425_v12 = vadd.f32 %v1378_v13, %v2802_v8  ;;  %v1427_v23 = vadd.f32 %v1419_v6, %v2803_v53  ;;  %v1380_v35 = vpop.f32.mrb[42].mxu0  ;;  %v1421_v31 = vpop.f32.mrb[42].mxu1 }
 0x70c   :  { %v1428_v15 = vmul.f32 0.5, %v1424_v62  ;;  %v1381_v38 = vpop.f32.mrb[43].mxu0  ;;  %v1422_v39 = vpop.f32.mrb[43].mxu1 }
 0x70d   :  { %v1432_v40 = vmul.f32 0.5, %v1425_v12  ;;  %v1437_v41 = vmul.f32 0.5, %v1427_v23  ;;  %v1756_v38 = vld [vmem:[%s2761_s5] ss:$0 sm:$0xff] }
 0x70e   :  { %1969 = vtanh.f32 %v1428_v15 }
 0x70f   :  { %1971 = vtanh.f32 %v1432_v40 }
 0x710   :  { %1973 = vtanh.f32 %v1426_v22 }
 0x711   :  { %1975 = vtanh.f32 %v1437_v41 }
 0x718   :  { %v1970_v58 = vpop.eup %1969 }
 0x719   :  { %v1972_v59 = vpop.eup %1971  ;;  %v1430_v60 = vmul.f32 0.5, %v1970_v58 }
 0x71a   :  { %v1434_v61 = vmul.f32 0.5, %v1972_v59  ;;  %v1974_v63 = vpop.eup %1973 }
 0x71b   :  { %v1431_v42 = vadd.f32 0.5, %v1430_v60  ;;  %v1976_v46 = vpop.eup %1975 }
 0x71c   :  { %v1435_v43 = vadd.f32 0.5, %v1434_v61  ;;  %v1439_v3 = vmul.f32 0.5, %v1976_v46 }
 0x71d   :  { %v1442_v1 = vmul.f32 %v1974_v63, %v1431_v42 }
 0x71e   :  { %v1441_v45 = vmul.f32 %v1435_v43, %v2688_v16  ;;  %v1440_v47 = vadd.f32 0.5, %v1439_v3 }
 0x720   :  { %v2718_v2 = vadd.f32 %v1442_v1, %v1441_v45 }
 0x722   :  { %1977 = vtanh.f32 %v2718_v2 }
 0x72c   :  { %v1978_v4 = vpop.eup %1977 }
 0x72d   :  { %v1445_v48 = vmul.f32 %v1978_v4, %v1440_v47 }
 0x72f   :  { %v1453_v5 = vpack.c.bf16 %v1445_v48, %v1445_v48 }
 0x731   :  { %1487 = vmatmul.mubr.bf16.vlgmr.msra.gmra.mrb[44].mxu0 %v1453_v5  ;;  %1528 = vmatmul.mubr.bf16.vlgmr.msra.gmra.mrb[44].mxu1 %v1453_v5 }
 0x732   :  { %1775 = vmatpush3.bf16.msra.mxu0 %v1901_v49  ;;  %1790 = vmatprep.mubr.msk.bf16.mxu0 %vm2051_vm0, %v2050_v36 }
 0x733   :  { %1776 = vmatprep.subr.bf16.mxu0 %v2050_v36 }
 0x736   :  { %1777 = vmatpush3.bf16.msra.mxu0 %v1902_v37 }
 0x737   :  { %1778 = vmatprep.subr.bf16.mxu0 %v2050_v36 }
 0x73a   :  { %1779 = vmatpush3.bf16.msra.mxu0 %v1903_v50 }
 0x73b   :  { %1780 = vmatprep.subr.bf16.mxu0 %v2050_v36 }
 0x73e   :  { %1781 = vmatpush3.bf16.msra.mxu0 %v1904_v51 }
 0x73f   :  { %1782 = vmatprep.subr.bf16.mxu0 %v2050_v36 }
 0x742   :  { %1783 = vmatpush3.bf16.msra.mxu0 %v1905_v52 }
 0x743   :  { %1784 = vmatprep.subr.bf16.mxu0 %v2050_v36 }
 0x746   :  { %1785 = vmatpush3.bf16.msra.mxu0 %v1906_v54 }
 0x747   :  { %1786 = vmatprep.subr.bf16.mxu0 %v2050_v36 }
 0x74a   :  { %1787 = vmatpush3.bf16.msra.mxu0 %v1907_v55 }
 0x74b   :  { %1788 = vmatprep.subr.bf16.mxu0 %v2050_v36 }
 0x74e   :  { %1789 = vmatpush3.bf16.msra.mxu0 %v1908_v56 }
 0x804   :  { %v1488_v57 = vpop.f32.mrb[44].mxu0  ;;  %v1529_v10 = vpop.f32.mrb[44].mxu1 }
 0x805   :  { %v1536_v16 = vadd.f32 %v1488_v57, %v2804_v14  ;;  %v1538_v18 = vadd.f32 %v1529_v10, %v2805_v17  ;;  %v1490_v19 = vpop.f32.mrb[45].mxu0  ;;  %v1531_v0 = vpop.f32.mrb[45].mxu1 }
 0x806   :  { %v1537_v21 = vadd.f32 %v1490_v19, %v2806_v20  ;;  %v1539_v27 = vadd.f32 %v1531_v0, %v2807_v30  ;;  %v1492_v24 = vpop.f32.mrb[46].mxu0  ;;  %v1533_v25 = vpop.f32.mrb[46].mxu1 }
 0x807   :  { %v1540_v26 = vmul.f32 0.5, %v1536_v16  ;;  %v1493_v7 = vpop.f32.mrb[47].mxu0  ;;  %v1534_v32 = vpop.f32.mrb[47].mxu1 }
 0x808   :  { %v1544_v33 = vmul.f32 0.5, %v1537_v21  ;;  %v1549_v34 = vmul.f32 0.5, %v1539_v27 }
 0x809   :  { %1979 = vtanh.f32 %v1540_v26 }
 0x80a   :  { %1981 = vtanh.f32 %v1544_v33 }
 0x80b   :  { %1983 = vtanh.f32 %v1538_v18 }
 0x80c   :  { %1985 = vtanh.f32 %v1549_v34 }
 0x813   :  { %v1980_v9 = vpop.eup %1979 }
 0x814   :  { %v1982_v44 = vpop.eup %1981  ;;  %v1542_v28 = vmul.f32 0.5, %v1980_v9 }
 0x815   :  { %v1546_v11 = vmul.f32 0.5, %v1982_v44  ;;  %v1984_v29 = vpop.eup %1983 }
 0x816   :  { %v1543_v62 = vadd.f32 0.5, %v1542_v28  ;;  %v1986_v12 = vpop.eup %1985 }
 0x817   :  { %v1547_v22 = vadd.f32 0.5, %v1546_v11  ;;  %v1551_v53 = vmul.f32 0.5, %v1986_v12 }
 0x818   :  { %v1554_v13 = vmul.f32 %v1984_v29, %v1543_v62 }
 0x819   :  { %v1553_v6 = vmul.f32 %v1547_v22, %v2718_v2  ;;  %v1552_v23 = vadd.f32 0.5, %v1551_v53 }
 0x81b   :  { %v1555_v8 = vadd.f32 %v1554_v13, %v1553_v6 }
 0x81d   :  { %1987 = vtanh.f32 %v1555_v8 }
 0x827   :  { %v1988_v35 = vpop.eup %1987 }
 0x828   :  { %v1557_v31 = vmul.f32 %v1988_v35, %v1552_v23 }
 0x82a   :  { %v1563_v15 = vpack.c.bf16 %v1557_v31, %v1557_v31 }
 0x82c   :  { %1791 = vmatmul.mubr.bf16.vlgmr.msra.gmra.mrb[48].mxu0 %v1563_v15 }
 0x8ff   :  { %v1669_v39 = vpop.f32.mrb[48].mxu0 }
 0x900   :  { %v1670_v40 = vadd.f32 %v1756_v38, %v1669_v39  ;;  %v1792_v41 = vpop.f32.mrb[49].mxu0 }
 0x901   :  { %v1672_v58 = vpop.f32.mrb[50].mxu0 }
 0x902   :  { %1675 = vst [vmem:[%s2762_s6] sm:$0xff] %v1670_v40  ;;  %v1793_v59 = vpop.f32.mrb[51].mxu0 }
 0x903   :  { %1680 = vsyncpa [#allocation6], 1 }

// kernel: lstm_model_forward.2
= control target key start
LH: loop header
LB: loop body
LE: loop exit
PB: predicated region body
PF: predicated region fallthrough
CT: control target
= control target key end

     0   :  { %9 = vsyncpa [#allocation6], 0  ;;  %s3988_s0 = inlined_call_operand.vmem [shape: bf16[1,64,8], index: 0, kind: input, shape index: {}]   ;;  %s3989_s1 = inlined_call_operand.hbm [shape: bf16[8,512], index: 1, kind: input, shape index: {}]   ;;  %s3990_s2 = inlined_call_operand.hbm [shape: bf16[128,512], index: 2, kind: input, shape index: {}]   ;;  %s3991_s3 = inlined_call_operand.hbm [shape: f32[1,512], index: 3, kind: input, shape index: {}]   ;;  %s3992_s4 = inlined_call_operand.vmem [shape: bf16[1,64,128], index: 4, kind: output, shape index: {}]  }
   0x1   :  { %10 = vsyncpa [#allocation8], 0  ;;  %s3334_s15 = smov [#allocation7]   ;;  %s3264_s19 = scalar_lea.hbm %s3990_s2, 4096 }
   0x2   :  { %s28_s16 = sshll.u32 %s3334_s15, 4  ;;  %p3265_p0 = scmp.ne.s32.totalorder %s3990_s2, %s3264_s19  ;;  %s29_s16 = int_to_ptr.vmem [resolvable:$true] %s28_s16 }
   0x3   :  { %p3268_p1 = scmp.lt.u32.totalorder %s3264_s19, %s3990_s2 }
   0x5   :  { %p3270_p2 = pnand %p3268_p1, %p3265_p0 }
   0x7   :  { %3273 = shalt.err (!%p3270_p2)
}
   0x8   :  { %s3274_s24 = scalar_lea.vmem %s29_s16, 4096  ;;  %p3279_p4 = scmp.lt.s32.totalorder %s29_s16, %s29_s16 }
   0x9   :  { %p3275_p3 = scmp.ne.s32.totalorder %s29_s16, %s3274_s24  ;;  %p3280_p5 = scmp.lt.s32.totalorder %s3274_s24, %s3274_s24 }
   0xb   :  { %p3281_p6 = por %p3280_p5, %p3279_p4 }
   0xd   :  { %p3282_p7 = pnand %p3281_p6, %p3275_p3 }
   0xf   :  { %3285 = shalt.err (!%p3282_p7)
}
  0x10   :  { %s3335_s25 = smov 256   ;;  %s3336_s26 = smov 16  }
  0x11   :  { %34 = dma.hbm_to_vmem [thread:$0]  %s3990_s2, 4096, %s29_s16, [#allocation8], %s3335_s25, %s3335_s25, %s3336_s26  }
  0x12   :  { %s3337_s29 = smov [#allocation5]   ;;  %s3338_s5 = smov [#allocation9]  }
  0x13   :  { %s19_s30 = sshll.u32 %s3337_s29, 4  ;;  %s41_s6 = sshll.u32 %s3338_s5, 4  ;;  %s20_s30 = int_to_ptr.vmem [resolvable:$true] %s19_s30  ;;  %s42_s6 = int_to_ptr.vmem [resolvable:$true] %s41_s6 }
  0x14   :  { %s3286_s9 = scalar_lea.hbm %s3989_s1, 256 }
  0x15   :  { %p3287_p8 = scmp.ne.s32.totalorder %s3989_s1, %s3286_s9  ;;  %p3290_p9 = scmp.lt.u32.totalorder %s3286_s9, %s3989_s1 }
  0x17   :  { %p3292_p10 = pnand %p3290_p9, %p3287_p8 }
  0x19   :  { %3295 = shalt.err (!%p3292_p10)
}
  0x1a   :  { %s3296_s2 = scalar_lea.vmem %s20_s30, 256  ;;  %p3301_p12 = scmp.lt.s32.totalorder %s20_s30, %s20_s30 }
  0x1b   :  { %p3297_p11 = scmp.ne.s32.totalorder %s20_s30, %s3296_s2  ;;  %p3302_p13 = scmp.lt.s32.totalorder %s3296_s2, %s3296_s2 }
  0x1d   :  { %p3303_p0 = por %p3302_p13, %p3301_p12 }
  0x1f   :  { %p3304_p1 = pnand %p3303_p0, %p3297_p11 }
  0x21   :  { %3307 = shalt.err (!%p3304_p1)
}
  0x22   :  { %22 = dma.hbm_to_vmem [thread:$0]  %s3989_s1, 256, %s20_s30, [#allocation6]  }
  0x23   :  { %s3308_s18 = scalar_lea.hbm %s3991_s3, 64 }
  0x24   :  { %p3309_p2 = scmp.ne.s32.totalorder %s3991_s3, %s3308_s18  ;;  %p3312_p3 = scmp.lt.u32.totalorder %s3308_s18, %s3991_s3 }
  0x26   :  { %p3314_p4 = pnand %p3312_p3, %p3309_p2 }
  0x28   :  { %3317 = shalt.err (!%p3314_p4)
}
  0x29   :  { %s3318_s23 = scalar_lea.vmem %s42_s6, 64  ;;  %p3323_p6 = scmp.lt.s32.totalorder %s42_s6, %s42_s6 }
  0x2a   :  { %p3319_p5 = scmp.ne.s32.totalorder %s42_s6, %s3318_s23  ;;  %p3324_p7 = scmp.lt.s32.totalorder %s3318_s23, %s3318_s23 }
  0x2c   :  { %p3325_p8 = por %p3324_p7, %p3323_p6 }
  0x2e   :  { %p3326_p9 = pnand %p3325_p8, %p3319_p5 }
  0x30   :  { %3329 = shalt.err (!%p3326_p9)
}
  0x31   :  { %44 = dma.hbm_to_vmem [thread:$0]  %s3991_s3, 64, %s42_s6, [#allocation8]  }
  0x32   :  { %3330 = dma.done.wait [#allocation6], 256  }
  0x33   :  { %3331 = vsyncadd [#allocation6], 4294967040 }
  0x34   :  { %3332 = dma.done.wait [#allocation8], 4160  }
  0x35   :  { %3333 = vsyncadd [#allocation8], 4294963136  ;;  %v3993_v0 = vmov 0   ;;  %v69_v1 = vld [vmem:[#allocation5] sm:$0xff]  ;;  %vm136_vm0 = vcmask 1043456   ;;  %v70_v2 = vld [vmem:[#allocation5 + $0x8] sm:$0xff]  ;;  %v73_v46 = vlaneseq }
  0x36   :  { %181 = vmatprep.mubr.bf16.mxu0 %v3993_v0  ;;  %254 = vmatprep.mubr.bf16.mxu1 %v3993_v0  ;;  %v2797_v3 = vcombine.high %v69_v1, %v69_v1  ;;  %v2799_v4 = vcombine.high %v70_v2, %v70_v2  ;;  %v2796_v5 = vcombine.low %v69_v1, %v69_v1  ;;  %v3084_v7 = vld [vmem:[%s3988_s0] sm:$0xff]   ;;  %v3411_v12 = vld [vmem:[#allocation7 + $0x8] ss:$16 sps:$4 sm:$0xff]   ;;  %vm123_vm1 = vcmask 64512   ;;  %v3413_v13 = vld [vmem:[#allocation7 + $0xc] ss:$16 sps:$4 sm:$0xff]  }
  0x37   :  { %v2798_v6 = vcombine.low %v70_v2, %v70_v2  ;;  %v3407_v8 = vld [vmem:[#allocation7] ss:$16 sps:$4 sm:$0xff]   ;;  %v3409_v9 = vld [vmem:[#allocation7 + $0x4] ss:$16 sps:$4 sm:$0xff]   ;;  %v3419_v15 = vld [vmem:[#allocation7 + $0x2c] ss:$16 sps:$4 sm:$0xff]  }
  0x38   :  { %2800 = vmatprep.subr.msk.bf16.mxu0 %vm136_vm0, %v2797_v3  ;;  %2805 = vmatprep.subr.msk.bf16.mxu1 %vm136_vm0, %v2799_v4  ;;  %v138_v10 = vsel %vm136_vm0, %v2796_v5, 0  ;;  %v3416_v14 = vld [vmem:[#allocation7 + $0x24] ss:$16 sps:$4 sm:$0xff]   ;;  %v3423_v16 = vld [vmem:[#allocation7 + $0x20] ss:$16 sps:$4 sm:$0xff]   ;;  %v3097_v19 = vld [vmem:[%s3988_s0 + $0x8] sm:$0xff]  }
  0x39   :  { %v144_v11 = vsel %vm136_vm0, %v2798_v6, 0  ;;  %150 = vmatpush1.bf16.msra.mxu0 %v138_v10  ;;  %v3427_v17 = vld [vmem:[#allocation7 + $0x28] ss:$16 sps:$4 sm:$0xff]   ;;  %v3431_v18 = vld [vmem:[#allocation7 + $0x44] ss:$16 sps:$4 sm:$0xff]   ;;  %v3340_v45 = vmov 0.0|0.0  }
  0x3a   :  { %223 = vmatpush1.bf16.msra.mxu1 %v144_v11  ;;  %529 = vmatprep.subr.bf16.mxu0 %v3409_v9  ;;  %v3438_v20 = vld [vmem:[#allocation7 + $0x4c] ss:$16 sps:$4 sm:$0xff]   ;;  %v3440_v21 = vld [vmem:[#allocation7 + $0x40] ss:$16 sps:$4 sm:$0xff]   ;;  %v3442_v22 = vld [vmem:[#allocation7 + $0x48] ss:$16 sps:$4 sm:$0xff]  }
  0x3b   :  { %570 = vmatprep.subr.bf16.mxu1 %v3413_v13  ;;  %v3446_v23 = vld [vmem:[#allocation7 + $0x64] ss:$16 sps:$4 sm:$0xff]   ;;  %v3450_v24 = vld [vmem:[#allocation7 + $0x6c] ss:$16 sps:$4 sm:$0xff]   ;;  %v3454_v25 = vld [vmem:[#allocation7 + $0x60] ss:$16 sps:$4 sm:$0xff]  }
  0x3c   :  { %2801 = vmatmul.mubr.msk.bf16.vlgmr.msra.gmra.mrb[0].mxu0 %vm123_vm1, %v3084_v7  ;;  %v3458_v26 = vld [vmem:[#allocation7 + $0x68] ss:$16 sps:$4 sm:$0xff]   ;;  %v3460_v27 = vld [vmem:[#allocation7 + $0x84] ss:$16 sps:$4 sm:$0xff]   ;;  %v3464_v28 = vld [vmem:[#allocation7 + $0x8c] ss:$16 sps:$4 sm:$0xff]  }
  0x3d   :  { %2806 = vmatmul.mubr.msk.bf16.vlgmr.msra.gmra.mrb[0].mxu1 %vm123_vm1, %v3084_v7  ;;  %530 = vmatpush1.bf16.msra.mxu0 %v3407_v8  ;;  %v3110_v29 = vld [vmem:[%s3988_s0 + $0x10] sm:$0xff]   ;;  %v3475_v31 = vld [vmem:[#allocation7 + $0x88] ss:$16 sps:$4 sm:$0xff]   ;;  %v3481_v33 = vld [vmem:[#allocation7 + $0xac] ss:$16 sps:$4 sm:$0xff]   ;;  %v74_v47 = vshrl.u32 %v73_v46, 7 }
  0x3e   :  { %571 = vmatpush1.bf16.msra.mxu1 %v3411_v12  ;;  %531 = vmatprep.subr.bf16.mxu0 %v3416_v14  ;;  %v3471_v30 = vld [vmem:[#allocation7 + $0x80] ss:$16 sps:$4 sm:$0xff]   ;;  %v3479_v32 = vld [vmem:[#allocation7 + $0xa4] ss:$16 sps:$4 sm:$0xff]   ;;  %v3489_v35 = vld [vmem:[#allocation7 + $0xa8] ss:$16 sps:$4 sm:$0xff]  }
  0x3f   :  { %572 = vmatprep.subr.bf16.mxu1 %v3419_v15  ;;  %191 = vmatprep.mubr.bf16.mxu0 %v3993_v0  ;;  %v3487_v34 = vld [vmem:[#allocation7 + $0xa0] ss:$16 sps:$4 sm:$0xff]   ;;  %v3123_v36 = vld [vmem:[%s3988_s0 + $0x18] sm:$0xff]   ;;  %v3496_v37 = vld [vmem:[#allocation7 + $0xc4] ss:$16 sps:$4 sm:$0xff]   ;;  %v83_v48 = vsub.s32 2, %v74_v47 }
  0x40   :  { %264 = vmatprep.mubr.bf16.mxu1 %v3993_v0  ;;  %v3498_v38 = vld [vmem:[#allocation7 + $0xcc] ss:$16 sps:$4 sm:$0xff]   ;;  %v3502_v39 = vld [vmem:[#allocation7 + $0xc0] ss:$16 sps:$4 sm:$0xff]   ;;  %v3504_v40 = vld [vmem:[#allocation7 + $0xc8] ss:$16 sps:$4 sm:$0xff]  }
  0x41   :  { %532 = vmatpush1.bf16.msra.mxu0 %v3423_v16  ;;  %v3506_v41 = vld [vmem:[#allocation7 + $0xe4] ss:$16 sps:$4 sm:$0xff]   ;;  %v3508_v42 = vld [vmem:[#allocation7 + $0xec] ss:$16 sps:$4 sm:$0xff]   ;;  %v3514_v43 = vld [vmem:[#allocation7 + $0xe0] ss:$16 sps:$4 sm:$0xff]  }
  0x42   :  { %573 = vmatpush1.bf16.msra.mxu1 %v3427_v17  ;;  %533 = vmatprep.subr.bf16.mxu0 %v3431_v18  ;;  %v3516_v44 = vld [vmem:[#allocation7 + $0xe8] ss:$16 sps:$4 sm:$0xff]   ;;  %v87_v49 = vsub.s32 3, %v74_v47  ;;  %v75_v50 = vsub.s32 0, %v74_v47  ;;  %v71_v51 = vld [vmem:[#allocation9] sm:$0xf] }
  0x43   :  { %574 = vmatprep.subr.bf16.mxu1 %v3438_v20  ;;  %v79_v52 = vsub.s32 1, %v74_v47  ;;  %v3564_v53 = vrot.slane %v71_v51, %v83_v48 }
  0x44   :  { %2802 = vmatmul.mubr.msk.bf16.gmra.mrb[4].mxu0 %vm123_vm1, %v3097_v19  ;;  %v3570_v56 = vrot.slane %v71_v51, %v87_v49  ;;  %v76_v57 = vrot.slane %v71_v51, %v75_v50 }
  0x45   :  { %2807 = vmatmul.mubr.msk.bf16.gmra.mrb[4].mxu1 %vm123_vm1, %v3097_v19  ;;  %534 = vmatpush1.bf16.msra.mxu0 %v3440_v21  ;;  %v80_v60 = vrot.slane %v71_v51, %v79_v52 }
  0x46   :  { %575 = vmatpush1.bf16.msra.mxu1 %v3442_v22  ;;  %535 = vmatprep.subr.bf16.mxu0 %v3446_v23 }
  0x47   :  { %576 = vmatprep.subr.bf16.mxu1 %v3450_v24  ;;  %201 = vmatprep.mubr.bf16.mxu0 %v3993_v0 }
  0x48   :  { %274 = vmatprep.mubr.bf16.mxu1 %v3993_v0 }
  0x49   :  { %536 = vmatpush1.bf16.msra.mxu0 %v3454_v25 }
  0x4a   :  { %577 = vmatpush1.bf16.msra.mxu1 %v3458_v26  ;;  %537 = vmatprep.subr.bf16.mxu0 %v3460_v27 }
  0x4b   :  { %578 = vmatprep.subr.bf16.mxu1 %v3464_v28 }
  0x4c   :  { %2803 = vmatmul.mubr.msk.bf16.gmra.mrb[8].mxu0 %vm123_vm1, %v3110_v29 }
  0x4d   :  { %2808 = vmatmul.mubr.msk.bf16.gmra.mrb[8].mxu1 %vm123_vm1, %v3110_v29  ;;  %538 = vmatpush1.bf16.msra.mxu0 %v3471_v30 }
  0x4e   :  { %579 = vmatpush1.bf16.msra.mxu1 %v3475_v31  ;;  %539 = vmatprep.subr.bf16.mxu0 %v3479_v32 }
  0x4f   :  { %580 = vmatprep.subr.bf16.mxu1 %v3481_v33  ;;  %211 = vmatprep.mubr.bf16.mxu0 %v3993_v0 }
  0x50   :  { %284 = vmatprep.mubr.bf16.mxu1 %v3993_v0 }
  0x51   :  { %540 = vmatpush1.bf16.msra.mxu0 %v3487_v34 }
  0x52   :  { %581 = vmatpush1.bf16.msra.mxu1 %v3489_v35  ;;  %541 = vmatprep.subr.bf16.mxu0 %v3496_v37 }
  0x53   :  { %582 = vmatprep.subr.bf16.mxu1 %v3498_v38 }
  0x54   :  { %2804 = vmatmul.mubr.msk.bf16.gmra.mrb[12].mxu0 %vm123_vm1, %v3123_v36 }
  0x55   :  { %2809 = vmatmul.mubr.msk.bf16.gmra.mrb[12].mxu1 %vm123_vm1, %v3123_v36  ;;  %542 = vmatpush1.bf16.msra.mxu0 %v3502_v39 }
  0x56   :  { %583 = vmatpush1.bf16.msra.mxu1 %v3504_v40  ;;  %543 = vmatprep.subr.bf16.mxu0 %v3506_v41 }
  0x57   :  { %584 = vmatprep.subr.bf16.mxu1 %v3508_v42  ;;  %561 = vmatprep.mubr.bf16.mxu0 %v3993_v0 }
  0x58   :  { %602 = vmatprep.mubr.bf16.mxu1 %v3993_v0 }
  0x59   :  { %544 = vmatpush1.bf16.msra.mxu0 %v3514_v43 }
  0x5a   :  { %585 = vmatpush1.bf16.msra.mxu1 %v3516_v44  ;;  %834 = vmatprep.subr.bf16.mxu0 %v3409_v9 }
  0x5b   :  { %875 = vmatprep.subr.bf16.mxu1 %v3413_v13 }
  0x5c   :  { %562 = vmatmul.mubr.bf16.vlgmr.msra.gmra.mrb[16].mxu0 %v3340_v45 }
  0x5d   :  { %603 = vmatmul.mubr.bf16.vlgmr.msra.gmra.mrb[16].mxu1 %v3340_v45  ;;  %835 = vmatpush1.bf16.msra.mxu0 %v3407_v8 }
  0x5e   :  { %876 = vmatpush1.bf16.msra.mxu1 %v3411_v12  ;;  %836 = vmatprep.subr.bf16.mxu0 %v3416_v14 }
  0x5f   :  { %877 = vmatprep.subr.bf16.mxu1 %v3419_v15  ;;  %866 = vmatprep.mubr.bf16.mxu0 %v3993_v0 }
  0x60   :  { %907 = vmatprep.mubr.bf16.mxu1 %v3993_v0 }
  0x61   :  { %837 = vmatpush1.bf16.msra.mxu0 %v3423_v16 }
  0x62   :  { %878 = vmatpush1.bf16.msra.mxu1 %v3427_v17  ;;  %838 = vmatprep.subr.bf16.mxu0 %v3431_v18 }
  0x63   :  { %879 = vmatprep.subr.bf16.mxu1 %v3438_v20 }
  0x65   :  { %839 = vmatpush1.bf16.msra.mxu0 %v3440_v21 }
  0x66   :  { %880 = vmatpush1.bf16.msra.mxu1 %v3442_v22  ;;  %840 = vmatprep.subr.bf16.mxu0 %v3446_v23 }
  0x67   :  { %881 = vmatprep.subr.bf16.mxu1 %v3450_v24 }
  0x69   :  { %841 = vmatpush1.bf16.msra.mxu0 %v3454_v25 }
  0x6a   :  { %882 = vmatpush1.bf16.msra.mxu1 %v3458_v26  ;;  %842 = vmatprep.subr.bf16.mxu0 %v3460_v27 }
  0x6b   :  { %883 = vmatprep.subr.bf16.mxu1 %v3464_v28 }
  0x6d   :  { %843 = vmatpush1.bf16.msra.mxu0 %v3471_v30 }
  0x6e   :  { %884 = vmatpush1.bf16.msra.mxu1 %v3475_v31  ;;  %844 = vmatprep.subr.bf16.mxu0 %v3479_v32 }
  0x6f   :  { %885 = vmatprep.subr.bf16.mxu1 %v3481_v33 }
  0x71   :  { %845 = vmatpush1.bf16.msra.mxu0 %v3487_v34 }
  0x72   :  { %886 = vmatpush1.bf16.msra.mxu1 %v3489_v35  ;;  %846 = vmatprep.subr.bf16.mxu0 %v3496_v37 }
  0x73   :  { %887 = vmatprep.subr.bf16.mxu1 %v3498_v38 }
  0x75   :  { %847 = vmatpush1.bf16.msra.mxu0 %v3502_v39 }
  0x76   :  { %888 = vmatpush1.bf16.msra.mxu1 %v3504_v40  ;;  %848 = vmatprep.subr.bf16.mxu0 %v3506_v41 }
  0x77   :  { %889 = vmatprep.subr.bf16.mxu1 %v3508_v42 }
  0x79   :  { %849 = vmatpush1.bf16.msra.mxu0 %v3514_v43 }
  0x7a   :  { %890 = vmatpush1.bf16.msra.mxu1 %v3516_v44  ;;  %1140 = vmatprep.subr.bf16.mxu0 %v3409_v9 }
  0x7b   :  { %1181 = vmatprep.subr.bf16.mxu1 %v3413_v13 }
 0x10f   :  { %v3566_v54 = vpop.f32.mrb[0].mxu0 }
 0x110   :  { %v3568_v55 = vpop.f32.mrb[0].mxu1  ;;  %v185_v58 = vpop.f32.mrb[1].mxu0 }
 0x111   :  { %v258_v59 = vpop.f32.mrb[1].mxu1  ;;  %v187_v61 = vpop.f32.mrb[2].mxu0 }
 0x112   :  { %v260_v62 = vpop.f32.mrb[2].mxu1  ;;  %v3572_v63 = vadd.f32 %v187_v61, %v76_v57  ;;  %v189_v1 = vpop.f32.mrb[3].mxu0 }
 0x113   :  { %v3575_v2 = vadd.f32 %v260_v62, %v3564_v53  ;;  %v262_v3 = vpop.f32.mrb[3].mxu1  ;;  %v3577_v4 = vadd.f32 %v189_v1, %v80_v60 }
 0x114   :  { %v3580_v5 = vadd.f32 %v262_v3, %v3570_v56 }
 0x117   :  { %v193_v6 = vpop.f32.mrb[4].mxu0 }
 0x118   :  { %v266_v7 = vpop.f32.mrb[4].mxu1  ;;  %v3582_v10 = vadd.f32 %v193_v6, %v76_v57  ;;  %v195_v11 = vpop.f32.mrb[5].mxu0 }
 0x119   :  { %v3585_v19 = vadd.f32 %v266_v7, %v3564_v53  ;;  %v268_v29 = vpop.f32.mrb[5].mxu1  ;;  %v3587_v36 = vadd.f32 %v195_v11, %v80_v60  ;;  %v197_v45 = vpop.f32.mrb[6].mxu0 }
 0x11a   :  { %v3590_v46 = vadd.f32 %v268_v29, %v3570_v56  ;;  %v270_v47 = vpop.f32.mrb[6].mxu1  ;;  %v3592_v48 = vadd.f32 %v197_v45, %v76_v57  ;;  %v199_v49 = vpop.f32.mrb[7].mxu0 }
 0x11b   :  { %v3595_v50 = vadd.f32 %v270_v47, %v3564_v53  ;;  %v272_v51 = vpop.f32.mrb[7].mxu1  ;;  %v3597_v52 = vadd.f32 %v199_v49, %v80_v60 }
 0x11c   :  { %3995 = vst [vmem:[#allocation12_spill] sm:$0xff] %v3590_v46  ;;  %3996 = vst [vmem:[#allocation13_spill] sm:$0xff] %v3592_v48  ;;  %v3600_v61 = vadd.f32 %v272_v51, %v3570_v56 }
 0x11d   :  { %3997 = vst [vmem:[#allocation14_spill] sm:$0xff] %v3595_v50  ;;  %3998 = vst [vmem:[#allocation15_spill] sm:$0xff] %v3597_v52 }
 0x11e   :  { %3999 = vst [vmem:[#allocation16_spill] sm:$0xff] %v3600_v61 }
 0x11f   :  { %v203_v62 = vpop.f32.mrb[8].mxu0 }
 0x120   :  { %v276_v1 = vpop.f32.mrb[8].mxu1  ;;  %v3602_v3 = vadd.f32 %v203_v62, %v76_v57  ;;  %v205_v6 = vpop.f32.mrb[9].mxu0 }
 0x121   :  { %v3605_v7 = vadd.f32 %v276_v1, %v3564_v53  ;;  %v278_v11 = vpop.f32.mrb[9].mxu1  ;;  %v3607_v29 = vadd.f32 %v205_v6, %v80_v60  ;;  %v207_v45 = vpop.f32.mrb[10].mxu0 }
 0x122   :  { %4000 = vst [vmem:[#allocation17_spill] sm:$0xff] %v3602_v3  ;;  %v3610_v47 = vadd.f32 %v278_v11, %v3570_v56  ;;  %v280_v49 = vpop.f32.mrb[10].mxu1  ;;  %v3612_v0 = vadd.f32 %v207_v45, %v76_v57  ;;  %v209_v51 = vpop.f32.mrb[11].mxu0 }
 0x123   :  { %4001 = vst [vmem:[#allocation18_spill] sm:$0xff] %v3605_v7  ;;  %4002 = vst [vmem:[#allocation19_spill] sm:$0xff] %v3607_v29  ;;  %v3615_v61 = vadd.f32 %v280_v49, %v3564_v53  ;;  %v282_v62 = vpop.f32.mrb[11].mxu1  ;;  %v3617_v3 = vadd.f32 %v209_v51, %v80_v60 }
 0x124   :  { %4003 = vst [vmem:[#allocation20_spill] sm:$0xff] %v3610_v47  ;;  %4004 = vst [vmem:[#allocation21_spill] sm:$0xff] %v3612_v0  ;;  %v3620_v1 = vadd.f32 %v282_v62, %v3570_v56 }
 0x125   :  { %4005 = vst [vmem:[#allocation22_spill] sm:$0xff] %v3615_v61  ;;  %4006 = vst [vmem:[#allocation23_spill] sm:$0xff] %v3617_v3 }
 0x126   :  { %4007 = vst [vmem:[#allocation24_spill] sm:$0xff] %v3620_v1 }
 0x127   :  { %v213_v7 = vpop.f32.mrb[12].mxu0 }
 0x128   :  { %v286_v6 = vpop.f32.mrb[12].mxu1  ;;  %v3622_v29 = vadd.f32 %v213_v7, %v76_v57  ;;  %v215_v52 = vpop.f32.mrb[13].mxu0 }
 0x129   :  { %v3625_v11 = vadd.f32 %v286_v6, %v3564_v53  ;;  %v288_v45 = vpop.f32.mrb[13].mxu1  ;;  %v3627_v0 = vadd.f32 %v215_v52, %v80_v60  ;;  %v217_v47 = vpop.f32.mrb[14].mxu0  ;;  %v184_v52 = vadd.f32 %v3566_v54, %v76_v57 }
 0x12a   :  { %4008 = vst [vmem:[#allocation25_spill] sm:$0xff] %v3622_v29  ;;  %v3630_v49 = vadd.f32 %v288_v45, %v3570_v56  ;;  %v290_v51 = vpop.f32.mrb[14].mxu1  ;;  %v3632_v3 = vadd.f32 %v217_v47, %v76_v57  ;;  %v219_v62 = vpop.f32.mrb[15].mxu0  ;;  %v186_v45 = vadd.f32 %v185_v58, %v80_v60 }
 0x12b   :  { %4009 = vst [vmem:[#allocation26_spill] sm:$0xff] %v3625_v11  ;;  %4010 = vst [vmem:[#allocation27_spill] sm:$0xff] %v3627_v0  ;;  %v3635_v1 = vadd.f32 %v290_v51, %v3564_v53  ;;  %v292_v7 = vpop.f32.mrb[15].mxu1  ;;  %v3637_v29 = vadd.f32 %v219_v62, %v80_v60  ;;  %v257_v0 = vadd.f32 %v3568_v55, %v3564_v53 }
 0x12c   :  { %4011 = vst [vmem:[#allocation28_spill] sm:$0xff] %v3630_v49  ;;  %4012 = vst [vmem:[#allocation29_spill] sm:$0xff] %v3632_v3  ;;  %v3640_v6 = vadd.f32 %v292_v7, %v3570_v56  ;;  %v259_v49 = vadd.f32 %v258_v59, %v3570_v56 }
 0x12d   :  { %4013 = vst [vmem:[#allocation30_spill] sm:$0xff] %v3635_v1  ;;  %4014 = vst [vmem:[#allocation31_spill] sm:$0xff] %v3637_v29 }
 0x12e   :  { %4015 = vst [vmem:[#allocation32_spill] sm:$0xff] %v3640_v6 }
 0x12f   :  { %v563_v47 = vpop.f32.mrb[16].mxu0 }
 0x130   :  { %v604_v3 = vpop.f32.mrb[16].mxu1  ;;  %v611_v11 = vadd.f32 %v563_v47, %v184_v52  ;;  %v565_v51 = vpop.f32.mrb[17].mxu0 }
 0x131   :  { %v613_v61 = vadd.f32 %v604_v3, %v257_v0  ;;  %v606_v1 = vpop.f32.mrb[17].mxu1  ;;  %v612_v50 = vadd.f32 %v565_v51, %v186_v45  ;;  %v567_v29 = vpop.f32.mrb[18].mxu0 }
 0x132   :  { %v614_v62 = vadd.f32 %v606_v1, %v259_v49  ;;  %v608_v48 = vpop.f32.mrb[18].mxu1  ;;  %v615_v7 = vmul.f32 0.5, %v611_v11  ;;  %v568_v6 = vpop.f32.mrb[19].mxu0 }
 0x133   :  { %v609_v46 = vpop.f32.mrb[19].mxu1  ;;  %v619_v54 = vmul.f32 0.5, %v612_v50  ;;  %v4016_v6 = vmov 0  }
 0x134   :  { %3184 = vtanh.f32 %v615_v7  ;;  %v624_v53 = vmul.f32 0.5, %v614_v62 }
 0x135   :  { %3186 = vtanh.f32 %v619_v54 }
 0x136   :  { %3188 = vtanh.f32 %v613_v61 }
 0x137   :  { %3190 = vtanh.f32 %v624_v53 }
 0x13e   :  { %v3185_v55 = vpop.eup %3184 }
 0x13f   :  { %v3187_v56 = vpop.eup %3186  ;;  %v617_v57 = vmul.f32 0.5, %v3185_v55 }
 0x140   :  { %v621_v58 = vmul.f32 0.5, %v3187_v56  ;;  %v3189_v59 = vpop.eup %3188 }
 0x141   :  { %v618_v0 = vadd.f32 0.5, %v617_v57  ;;  %v3191_v46 = vpop.eup %3190 }
 0x142   :  { %v622_v60 = vadd.f32 0.5, %v621_v58  ;;  %v626_v48 = vmul.f32 0.5, %v3191_v46 }
 0x143   :  { %v629_v3 = vmul.f32 %v3189_v59, %v618_v0 }
 0x144   :  { %v628_v1 = vmul.f32 0.0, %v622_v60  ;;  %v627_v50 = vadd.f32 0.5, %v626_v48 }
 0x146   :  { %v3646_v29 = vadd.f32 %v629_v3, %v628_v1 }
 0x148   :  { %3192 = vtanh.f32 %v3646_v29 }
 0x152   :  { %v3193_v11 = vpop.eup %3192 }
 0x153   :  { %v632_v61 = vmul.f32 %v3193_v11, %v627_v50 }
 0x155   :  { %v633_v49 = vpack.c.bf16 %v632_v61, %v632_v61 }
 0x157   :  { %634 = vst [vmem:[%s3992_s4] sm:$0xf] %v633_v49  ;;  %867 = vmatmul.mubr.bf16.vlgmr.msra.gmra.mrb[20].mxu0 %v633_v49  ;;  %908 = vmatmul.mubr.bf16.vlgmr.msra.gmra.mrb[20].mxu1 %v633_v49 }
 0x158   :  { %1141 = vmatpush1.bf16.msra.mxu0 %v3407_v8  ;;  %1182 = vmatpush1.bf16.msra.mxu1 %v3411_v12 }
 0x159   :  { %1142 = vmatprep.subr.bf16.mxu0 %v3416_v14  ;;  %1183 = vmatprep.subr.bf16.mxu1 %v3419_v15 }
 0x15a   :  { %1172 = vmatprep.mubr.bf16.mxu0 %v4016_v6  ;;  %1213 = vmatprep.mubr.bf16.mxu1 %v4016_v6 }
 0x15c   :  { %1143 = vmatpush1.bf16.msra.mxu0 %v3423_v16  ;;  %1184 = vmatpush1.bf16.msra.mxu1 %v3427_v17 }
 0x15d   :  { %1144 = vmatprep.subr.bf16.mxu0 %v3431_v18  ;;  %1185 = vmatprep.subr.bf16.mxu1 %v3438_v20 }
 0x160   :  { %1145 = vmatpush1.bf16.msra.mxu0 %v3440_v21  ;;  %1186 = vmatpush1.bf16.msra.mxu1 %v3442_v22 }
 0x161   :  { %1146 = vmatprep.subr.bf16.mxu0 %v3446_v23  ;;  %1187 = vmatprep.subr.bf16.mxu1 %v3450_v24 }
 0x164   :  { %1147 = vmatpush1.bf16.msra.mxu0 %v3454_v25  ;;  %1188 = vmatpush1.bf16.msra.mxu1 %v3458_v26 }
 0x165   :  { %1148 = vmatprep.subr.bf16.mxu0 %v3460_v27  ;;  %1189 = vmatprep.subr.bf16.mxu1 %v3464_v28 }
 0x168   :  { %1149 = vmatpush1.bf16.msra.mxu0 %v3471_v30  ;;  %1190 = vmatpush1.bf16.msra.mxu1 %v3475_v31 }
 0x169   :  { %1150 = vmatprep.subr.bf16.mxu0 %v3479_v32  ;;  %1191 = vmatprep.subr.bf16.mxu1 %v3481_v33 }
 0x16c   :  { %1151 = vmatpush1.bf16.msra.mxu0 %v3487_v34  ;;  %1192 = vmatpush1.bf16.msra.mxu1 %v3489_v35 }
 0x16d   :  { %1152 = vmatprep.subr.bf16.mxu0 %v3496_v37  ;;  %1193 = vmatprep.subr.bf16.mxu1 %v3498_v38 }
 0x170   :  { %1153 = vmatpush1.bf16.msra.mxu0 %v3502_v39  ;;  %1194 = vmatpush1.bf16.msra.mxu1 %v3504_v40 }
 0x171   :  { %1154 = vmatprep.subr.bf16.mxu0 %v3506_v41  ;;  %1195 = vmatprep.subr.bf16.mxu1 %v3508_v42 }
 0x174   :  { %1155 = vmatpush1.bf16.msra.mxu0 %v3514_v43  ;;  %1196 = vmatpush1.bf16.msra.mxu1 %v3516_v44 }
 0x175   :  { %1446 = vmatprep.subr.bf16.mxu0 %v3409_v9  ;;  %1487 = vmatprep.subr.bf16.mxu1 %v3413_v13 }
 0x22a   :  { %v868_v52 = vpop.f32.mrb[20].mxu0  ;;  %v909_v45 = vpop.f32.mrb[20].mxu1 }
 0x22b   :  { %v916_v47 = vadd.f32 %v868_v52, %v3572_v63  ;;  %v918_v51 = vadd.f32 %v909_v45, %v3575_v2  ;;  %v870_v62 = vpop.f32.mrb[21].mxu0  ;;  %v911_v7 = vpop.f32.mrb[21].mxu1 }
 0x22c   :  { %v917_v54 = vadd.f32 %v870_v62, %v3577_v4  ;;  %v919_v53 = vadd.f32 %v911_v7, %v3580_v5  ;;  %v872_v55 = vpop.f32.mrb[22].mxu0  ;;  %v913_v56 = vpop.f32.mrb[22].mxu1  ;;  %v3754_v62 = vld [vmem:[#allocation7 + $0x24] ss:$16 sps:$4 sm:$0xff]   ;;  %v3756_v7 = vld [vmem:[#allocation7 + $0x2c] ss:$16 sps:$4 sm:$0xff]  }
 0x22d   :  { %v920_v57 = vmul.f32 0.5, %v916_v47  ;;  %v873_v58 = vpop.f32.mrb[23].mxu0  ;;  %v914_v0 = vpop.f32.mrb[23].mxu1  ;;  %v3746_v47 = vld [vmem:[#allocation7] ss:$16 sps:$4 sm:$0xff]  }
 0x22e   :  { %v924_v9 = vmul.f32 0.5, %v917_v54  ;;  %v929_v13 = vmul.f32 0.5, %v919_v53  ;;  %v3758_v54 = vld [vmem:[#allocation7 + $0x20] ss:$16 sps:$4 sm:$0xff]   ;;  %v3760_v53 = vld [vmem:[#allocation7 + $0x28] ss:$16 sps:$4 sm:$0xff]  }
 0x22f   :  { %3194 = vtanh.f32 %v920_v57  ;;  %v3766_v55 = vld [vmem:[#allocation7 + $0x44] ss:$16 sps:$4 sm:$0xff]   ;;  %v3768_v56 = vld [vmem:[#allocation7 + $0x4c] ss:$16 sps:$4 sm:$0xff]   ;;  %v3770_v57 = vld [vmem:[#allocation7 + $0x40] ss:$16 sps:$4 sm:$0xff]  }
 0x230   :  { %3196 = vtanh.f32 %v924_v9  ;;  %v3772_v58 = vld [vmem:[#allocation7 + $0x48] ss:$16 sps:$4 sm:$0xff]   ;;  %v3778_v0 = vld [vmem:[#allocation7 + $0x64] ss:$16 sps:$4 sm:$0xff]   ;;  %v3780_v9 = vld [vmem:[#allocation7 + $0x6c] ss:$16 sps:$4 sm:$0xff]  }
 0x231   :  { %3198 = vtanh.f32 %v918_v51  ;;  %v3748_v51 = vld [vmem:[#allocation7 + $0x8] ss:$16 sps:$4 sm:$0xff]  }
 0x232   :  { %3200 = vtanh.f32 %v929_v13  ;;  %v3782_v13 = vld [vmem:[#allocation7 + $0x60] ss:$16 sps:$4 sm:$0xff]  }
 0x239   :  { %v3195_v59 = vpop.eup %3194 }
 0x23a   :  { %v3197_v63 = vpop.eup %3196  ;;  %v922_v60 = vmul.f32 0.5, %v3195_v59  ;;  %v3784_v59 = vld [vmem:[#allocation7 + $0x68] ss:$16 sps:$4 sm:$0xff]  }
 0x23b   :  { %v926_v2 = vmul.f32 0.5, %v3197_v63  ;;  %v3199_v1 = vpop.eup %3198  ;;  %v3790_v63 = vld [vmem:[#allocation7 + $0x84] ss:$16 sps:$4 sm:$0xff]  }
 0x23c   :  { %v923_v3 = vadd.f32 0.5, %v922_v60  ;;  %v3201_v50 = vpop.eup %3200  ;;  %v3792_v60 = vld [vmem:[#allocation7 + $0x8c] ss:$16 sps:$4 sm:$0xff]  }
 0x23d   :  { %v927_v4 = vadd.f32 0.5, %v926_v2  ;;  %v931_v11 = vmul.f32 0.5, %v3201_v50  ;;  %v3794_v2 = vld [vmem:[#allocation7 + $0x80] ss:$16 sps:$4 sm:$0xff]   ;;  %v3816_v50 = vld [vmem:[#allocation7 + $0xcc] ss:$16 sps:$4 sm:$0xff]  }
 0x23e   :  { %v934_v46 = vmul.f32 %v3199_v1, %v923_v3  ;;  %v3796_v3 = vld [vmem:[#allocation7 + $0x88] ss:$16 sps:$4 sm:$0xff]   ;;  %v3802_v1 = vld [vmem:[#allocation7 + $0xa4] ss:$16 sps:$4 sm:$0xff]  }
 0x23f   :  { %v933_v5 = vmul.f32 %v927_v4, %v3646_v29  ;;  %v932_v61 = vadd.f32 0.5, %v931_v11  ;;  %v3744_v29 = vld [vmem:[#allocation7 + $0xc] ss:$16 sps:$4 sm:$0xff]   ;;  %v3818_v11 = vld [vmem:[#allocation7 + $0xc0] ss:$16 sps:$4 sm:$0xff]  }
 0x240   :  { %v3804_v4 = vld [vmem:[#allocation7 + $0xac] ss:$16 sps:$4 sm:$0xff]  }
 0x241   :  { %v3691_v48 = vadd.f32 %v934_v46, %v933_v5  ;;  %v3806_v46 = vld [vmem:[#allocation7 + $0xa0] ss:$16 sps:$4 sm:$0xff]   ;;  %v3808_v5 = vld [vmem:[#allocation7 + $0xa8] ss:$16 sps:$4 sm:$0xff]  }
 0x243   :  { %3202 = vtanh.f32 %v3691_v48 }
 0x24d   :  { %v3203_v49 = vpop.eup %3202 }
 0x24e   :  { %v937_v52 = vmul.f32 %v3203_v49, %v932_v61  ;;  %v3820_v61 = vld [vmem:[#allocation7 + $0xc8] ss:$16 sps:$4 sm:$0xff]   ;;  %v3826_v49 = vld [vmem:[#allocation7 + $0xe4] ss:$16 sps:$4 sm:$0xff]  }
 0x250   :  { %v938_v45 = vpack.c.bf16 %v937_v52, %v937_v52  ;;  %v3828_v52 = vld [vmem:[#allocation7 + $0xec] ss:$16 sps:$4 sm:$0xff]  }
 0x252   :  { %2874 = vst [vmem:[%s3992_s4 + $0x4] sm:$0xf] %v938_v45  ;;  %1173 = vmatmul.mubr.bf16.vlgmr.msra.gmra.mrb[24].mxu0 %v938_v45  ;;  %1214 = vmatmul.mubr.bf16.vlgmr.msra.gmra.mrb[24].mxu1 %v938_v45  ;;  %v3830_v45 = vld [vmem:[#allocation7 + $0xe0] ss:$16 sps:$4 sm:$0xff]  }
 0x253   :  { %1447 = vmatpush1.bf16.msra.mxu0 %v3407_v8  ;;  %1488 = vmatpush1.bf16.msra.mxu1 %v3411_v12 }
 0x254   :  { %1448 = vmatprep.subr.bf16.mxu0 %v3416_v14  ;;  %1489 = vmatprep.subr.bf16.mxu1 %v3419_v15 }
 0x255   :  { %1478 = vmatprep.mubr.bf16.mxu0 %v4016_v6  ;;  %1519 = vmatprep.mubr.bf16.mxu1 %v4016_v6 }
 0x257   :  { %1449 = vmatpush1.bf16.msra.mxu0 %v3423_v16  ;;  %1490 = vmatpush1.bf16.msra.mxu1 %v3427_v17 }
 0x258   :  { %1450 = vmatprep.subr.bf16.mxu0 %v3431_v18  ;;  %1491 = vmatprep.subr.bf16.mxu1 %v3438_v20  ;;  %v4017_v20 = vld [vmem:[#allocation12_spill] sm:$0xff] }
 0x25b   :  { %1451 = vmatpush1.bf16.msra.mxu0 %v3440_v21  ;;  %1492 = vmatpush1.bf16.msra.mxu1 %v3442_v22 }
 0x25c   :  { %1452 = vmatprep.subr.bf16.mxu0 %v3446_v23  ;;  %1493 = vmatprep.subr.bf16.mxu1 %v3450_v24 }
 0x25f   :  { %1453 = vmatpush1.bf16.msra.mxu0 %v3454_v25  ;;  %1494 = vmatpush1.bf16.msra.mxu1 %v3458_v26 }
 0x260   :  { %1454 = vmatprep.subr.bf16.mxu0 %v3460_v27  ;;  %1495 = vmatprep.subr.bf16.mxu1 %v3464_v28 }
 0x263   :  { %1455 = vmatpush1.bf16.msra.mxu0 %v3471_v30  ;;  %1496 = vmatpush1.bf16.msra.mxu1 %v3475_v31 }
 0x264   :  { %1456 = vmatprep.subr.bf16.mxu0 %v3479_v32  ;;  %1497 = vmatprep.subr.bf16.mxu1 %v3481_v33 }
 0x267   :  { %1457 = vmatpush1.bf16.msra.mxu0 %v3487_v34  ;;  %1498 = vmatpush1.bf16.msra.mxu1 %v3489_v35 }
 0x268   :  { %1458 = vmatprep.subr.bf16.mxu0 %v3496_v37  ;;  %1499 = vmatprep.subr.bf16.mxu1 %v3498_v38 }
 0x26b   :  { %1459 = vmatpush1.bf16.msra.mxu0 %v3502_v39  ;;  %1500 = vmatpush1.bf16.msra.mxu1 %v3504_v40 }
 0x26c   :  { %1460 = vmatprep.subr.bf16.mxu0 %v3506_v41  ;;  %1501 = vmatprep.subr.bf16.mxu1 %v3508_v42 }
 0x26f   :  { %1461 = vmatpush1.bf16.msra.mxu0 %v3514_v43  ;;  %1502 = vmatpush1.bf16.msra.mxu1 %v3516_v44 }
 0x270   :  { %1793 = vmatprep.subr.bf16.mxu1 %v3744_v29 }
 0x325   :  { %v1174_v8 = vpop.f32.mrb[24].mxu0  ;;  %v1215_v12 = vpop.f32.mrb[24].mxu1 }
 0x326   :  { %v1222_v14 = vadd.f32 %v1174_v8, %v3582_v10  ;;  %v1224_v15 = vadd.f32 %v1215_v12, %v3585_v19  ;;  %v1176_v16 = vpop.f32.mrb[25].mxu0  ;;  %v1217_v17 = vpop.f32.mrb[25].mxu1  ;;  %v3832_v8 = vld [vmem:[#allocation7 + $0xe8] ss:$16 sps:$4 sm:$0xff]  }
 0x327   :  { %v1223_v18 = vadd.f32 %v1176_v16, %v3587_v36  ;;  %v1225_v21 = vadd.f32 %v1217_v17, %v4017_v20  ;;  %v1178_v22 = vpop.f32.mrb[26].mxu0  ;;  %v1219_v23 = vpop.f32.mrb[26].mxu1  ;;  %v3742_v36 = vld [vmem:[#allocation7 + $0x4] ss:$16 sps:$4 sm:$0xff]  }
 0x328   :  { %v1226_v24 = vmul.f32 0.5, %v1222_v14  ;;  %v1179_v25 = vpop.f32.mrb[27].mxu0  ;;  %v1220_v26 = vpop.f32.mrb[27].mxu1  ;;  %1752 = vmatprep.subr.bf16.mxu0 %v3742_v36  ;;  %v4019_v17 = vld [vmem:[#allocation14_spill] sm:$0xff]  ;;  %v4020_v22 = vld [vmem:[#allocation15_spill] sm:$0xff] }
 0x329   :  { %v1230_v27 = vmul.f32 0.5, %v1223_v18  ;;  %v1235_v28 = vmul.f32 0.5, %v1225_v21 }
 0x32a   :  { %3204 = vtanh.f32 %v1226_v24  ;;  %v4021_v24 = vld [vmem:[#allocation16_spill] sm:$0xff] }
 0x32b   :  { %3206 = vtanh.f32 %v1230_v27 }
 0x32c   :  { %3208 = vtanh.f32 %v1224_v15  ;;  %v4018_v15 = vld [vmem:[#allocation13_spill] sm:$0xff] }
 0x32d   :  { %3210 = vtanh.f32 %v1235_v28 }
 0x334   :  { %v3205_v30 = vpop.eup %3204 }
 0x335   :  { %v3207_v31 = vpop.eup %3206  ;;  %v1228_v32 = vmul.f32 0.5, %v3205_v30 }
 0x336   :  { %v1232_v33 = vmul.f32 0.5, %v3207_v31  ;;  %v3209_v35 = vpop.eup %3208 }
 0x337   :  { %v1229_v34 = vadd.f32 0.5, %v1228_v32  ;;  %v3211_v41 = vpop.eup %3210 }
 0x338   :  { %v1233_v37 = vadd.f32 0.5, %v1232_v33  ;;  %v1237_v42 = vmul.f32 0.5, %v3211_v41 }
 0x339   :  { %v1240_v38 = vmul.f32 %v3209_v35, %v1229_v34 }
 0x33a   :  { %v1239_v39 = vmul.f32 %v1233_v37, %v3691_v48  ;;  %v1238_v43 = vadd.f32 0.5, %v1237_v42  ;;  %v3814_v48 = vld [vmem:[#allocation7 + $0xc4] ss:$16 sps:$4 sm:$0xff]  }
 0x33c   :  { %v3734_v40 = vadd.f32 %v1240_v38, %v1239_v39 }
 0x33e   :  { %3212 = vtanh.f32 %v3734_v40 }
 0x348   :  { %v3213_v44 = vpop.eup %3212 }
 0x349   :  { %v1243_v10 = vmul.f32 %v3213_v44, %v1238_v43 }
 0x34b   :  { %v1244_v19 = vpack.c.bf16 %v1243_v10, %v1243_v10 }
 0x34d   :  { %2907 = vst [vmem:[%s3992_s4 + $0x8] sm:$0xf] %v1244_v19  ;;  %1479 = vmatmul.mubr.bf16.vlgmr.msra.gmra.mrb[28].mxu0 %v1244_v19  ;;  %1520 = vmatmul.mubr.bf16.vlgmr.msra.gmra.mrb[28].mxu1 %v1244_v19 }
 0x34e   :  { %1784 = vmatprep.mubr.bf16.mxu0 %v4016_v6  ;;  %1825 = vmatprep.mubr.bf16.mxu1 %v4016_v6 }
 0x34f   :  { %1753 = vmatpush1.bf16.msra.mxu0 %v3746_v47  ;;  %1794 = vmatpush1.bf16.msra.mxu1 %v3748_v51 }
 0x350   :  { %1754 = vmatprep.subr.bf16.mxu0 %v3754_v62  ;;  %1795 = vmatprep.subr.bf16.mxu1 %v3756_v7 }
 0x353   :  { %1755 = vmatpush1.bf16.msra.mxu0 %v3758_v54  ;;  %1796 = vmatpush1.bf16.msra.mxu1 %v3760_v53 }
 0x354   :  { %1756 = vmatprep.subr.bf16.mxu0 %v3766_v55  ;;  %1797 = vmatprep.subr.bf16.mxu1 %v3768_v56 }
 0x357   :  { %1757 = vmatpush1.bf16.msra.mxu0 %v3770_v57  ;;  %1798 = vmatpush1.bf16.msra.mxu1 %v3772_v58 }
 0x358   :  { %1758 = vmatprep.subr.bf16.mxu0 %v3778_v0  ;;  %1799 = vmatprep.subr.bf16.mxu1 %v3780_v9 }
 0x35b   :  { %1759 = vmatpush1.bf16.msra.mxu0 %v3782_v13  ;;  %1800 = vmatpush1.bf16.msra.mxu1 %v3784_v59 }
 0x35c   :  { %1760 = vmatprep.subr.bf16.mxu0 %v3790_v63  ;;  %1801 = vmatprep.subr.bf16.mxu1 %v3792_v60 }
 0x35f   :  { %1761 = vmatpush1.bf16.msra.mxu0 %v3794_v2  ;;  %1802 = vmatpush1.bf16.msra.mxu1 %v3796_v3 }
 0x360   :  { %1762 = vmatprep.subr.bf16.mxu0 %v3802_v1  ;;  %1803 = vmatprep.subr.bf16.mxu1 %v3804_v4 }
 0x363   :  { %1763 = vmatpush1.bf16.msra.mxu0 %v3806_v46  ;;  %1804 = vmatpush1.bf16.msra.mxu1 %v3808_v5 }
 0x364   :  { %1764 = vmatprep.subr.bf16.mxu0 %v3814_v48  ;;  %1805 = vmatprep.subr.bf16.mxu1 %v3816_v50 }
 0x367   :  { %1765 = vmatpush1.bf16.msra.mxu0 %v3818_v11  ;;  %1806 = vmatpush1.bf16.msra.mxu1 %v3820_v61 }
 0x368   :  { %1766 = vmatprep.subr.bf16.mxu0 %v3826_v49  ;;  %1807 = vmatprep.subr.bf16.mxu1 %v3828_v52 }
 0x36b   :  { %1767 = vmatpush1.bf16.msra.mxu0 %v3830_v45  ;;  %1808 = vmatpush1.bf16.msra.mxu1 %v3832_v8 }
 0x36c   :  { %2058 = vmatprep.subr.bf16.mxu0 %v3742_v36  ;;  %2099 = vmatprep.subr.bf16.mxu1 %v3744_v29 }
 0x420   :  { %v1480_v12 = vpop.f32.mrb[28].mxu0  ;;  %v1521_v14 = vpop.f32.mrb[28].mxu1 }
 0x421   :  { %v1528_v16 = vadd.f32 %v1480_v12, %v4018_v15  ;;  %v1530_v18 = vadd.f32 %v1521_v14, %v4019_v17  ;;  %v1482_v20 = vpop.f32.mrb[29].mxu0  ;;  %v1523_v21 = vpop.f32.mrb[29].mxu1 }
 0x422   :  { %v1529_v23 = vadd.f32 %v1482_v20, %v4020_v22  ;;  %v1531_v25 = vadd.f32 %v1523_v21, %v4021_v24  ;;  %v1484_v26 = vpop.f32.mrb[30].mxu0  ;;  %v1525_v27 = vpop.f32.mrb[30].mxu1  ;;  %v4022_v20 = vld [vmem:[#allocation17_spill] sm:$0xff]  ;;  %v4023_v22 = vld [vmem:[#allocation18_spill] sm:$0xff] }
 0x423   :  { %v1532_v28 = vmul.f32 0.5, %v1528_v16  ;;  %v1485_v30 = vpop.f32.mrb[31].mxu0  ;;  %v1526_v31 = vpop.f32.mrb[31].mxu1  ;;  %v4024_v26 = vld [vmem:[#allocation19_spill] sm:$0xff] }
 0x424   :  { %v1536_v32 = vmul.f32 0.5, %v1529_v23  ;;  %v1541_v33 = vmul.f32 0.5, %v1531_v25 }
 0x425   :  { %3214 = vtanh.f32 %v1532_v28  ;;  %v4025_v28 = vld [vmem:[#allocation20_spill] sm:$0xff] }
 0x426   :  { %3216 = vtanh.f32 %v1536_v32 }
 0x427   :  { %3218 = vtanh.f32 %v1530_v18 }
 0x428   :  { %3220 = vtanh.f32 %v1541_v33 }
 0x42f   :  { %v3215_v34 = vpop.eup %3214 }
 0x430   :  { %v3217_v35 = vpop.eup %3216  ;;  %v1534_v37 = vmul.f32 0.5, %v3215_v34 }
 0x431   :  { %v1538_v38 = vmul.f32 0.5, %v3217_v35  ;;  %v3219_v41 = vpop.eup %3218 }
 0x432   :  { %v1535_v39 = vadd.f32 0.5, %v1534_v37  ;;  %v3221_v19 = vpop.eup %3220 }
 0x433   :  { %v1539_v42 = vadd.f32 0.5, %v1538_v38  ;;  %v1543_v12 = vmul.f32 0.5, %v3221_v19 }
 0x434   :  { %v1546_v43 = vmul.f32 %v3219_v41, %v1535_v39 }
 0x435   :  { %v1545_v44 = vmul.f32 %v1539_v42, %v3734_v40  ;;  %v1544_v14 = vadd.f32 0.5, %v1543_v12 }
 0x437   :  { %v3845_v10 = vadd.f32 %v1546_v43, %v1545_v44 }
 0x439   :  { %3222 = vtanh.f32 %v3845_v10 }
 0x443   :  { %v3223_v15 = vpop.eup %3222 }
 0x444   :  { %v1549_v16 = vmul.f32 %v3223_v15, %v1544_v14 }
 0x446   :  { %v1550_v17 = vpack.c.bf16 %v1549_v16, %v1549_v16 }
 0x448   :  { %2940 = vst [vmem:[%s3992_s4 + $0xc] sm:$0xf] %v1550_v17  ;;  %1785 = vmatmul.mubr.bf16.vlgmr.msra.gmra.mrb[32].mxu0 %v1550_v17  ;;  %1826 = vmatmul.mubr.bf16.vlgmr.msra.gmra.mrb[32].mxu1 %v1550_v17 }
 0x449   :  { %2059 = vmatpush1.bf16.msra.mxu0 %v3746_v47  ;;  %2100 = vmatpush1.bf16.msra.mxu1 %v3748_v51 }
 0x44a   :  { %2060 = vmatprep.subr.bf16.mxu0 %v3754_v62  ;;  %2101 = vmatprep.subr.bf16.mxu1 %v3756_v7 }
 0x44b   :  { %2090 = vmatprep.mubr.bf16.mxu0 %v4016_v6  ;;  %2131 = vmatprep.mubr.bf16.mxu1 %v4016_v6 }
 0x44d   :  { %2061 = vmatpush1.bf16.msra.mxu0 %v3758_v54  ;;  %2102 = vmatpush1.bf16.msra.mxu1 %v3760_v53 }
 0x44e   :  { %2062 = vmatprep.subr.bf16.mxu0 %v3766_v55  ;;  %2103 = vmatprep.subr.bf16.mxu1 %v3768_v56 }
 0x451   :  { %2063 = vmatpush1.bf16.msra.mxu0 %v3770_v57  ;;  %2104 = vmatpush1.bf16.msra.mxu1 %v3772_v58 }
 0x452   :  { %2064 = vmatprep.subr.bf16.mxu0 %v3778_v0  ;;  %2105 = vmatprep.subr.bf16.mxu1 %v3780_v9 }
 0x455   :  { %2065 = vmatpush1.bf16.msra.mxu0 %v3782_v13  ;;  %2106 = vmatpush1.bf16.msra.mxu1 %v3784_v59 }
 0x456   :  { %2066 = vmatprep.subr.bf16.mxu0 %v3790_v63  ;;  %2107 = vmatprep.subr.bf16.mxu1 %v3792_v60 }
 0x459   :  { %2067 = vmatpush1.bf16.msra.mxu0 %v3794_v2  ;;  %2108 = vmatpush1.bf16.msra.mxu1 %v3796_v3 }
 0x45a   :  { %2068 = vmatprep.subr.bf16.mxu0 %v3802_v1  ;;  %2109 = vmatprep.subr.bf16.mxu1 %v3804_v4 }
 0x45d   :  { %2069 = vmatpush1.bf16.msra.mxu0 %v3806_v46  ;;  %2110 = vmatpush1.bf16.msra.mxu1 %v3808_v5 }
 0x45e   :  { %2070 = vmatprep.subr.bf16.mxu0 %v3814_v48  ;;  %2111 = vmatprep.subr.bf16.mxu1 %v3816_v50 }
 0x461   :  { %2071 = vmatpush1.bf16.msra.mxu0 %v3818_v11  ;;  %2112 = vmatpush1.bf16.msra.mxu1 %v3820_v61 }
 0x462   :  { %2072 = vmatprep.subr.bf16.mxu0 %v3826_v49  ;;  %2113 = vmatprep.subr.bf16.mxu1 %v3828_v52 }
 0x465   :  { %2073 = vmatpush1.bf16.msra.mxu0 %v3830_v45  ;;  %2114 = vmatpush1.bf16.msra.mxu1 %v3832_v8 }
 0x466   :  { %2364 = vmatprep.subr.bf16.mxu0 %v3742_v36  ;;  %2405 = vmatprep.subr.bf16.mxu1 %v3744_v29 }
 0x51b   :  { %v1786_v40 = vpop.f32.mrb[32].mxu0  ;;  %v1827_v18 = vpop.f32.mrb[32].mxu1 }
 0x51c   :  { %v1834_v21 = vadd.f32 %v1786_v40, %v4022_v20  ;;  %v1836_v23 = vadd.f32 %v1827_v18, %v4023_v22  ;;  %v1788_v24 = vpop.f32.mrb[33].mxu0  ;;  %v1829_v25 = vpop.f32.mrb[33].mxu1 }
 0x51d   :  { %v1835_v27 = vadd.f32 %v1788_v24, %v4024_v26  ;;  %v1837_v30 = vadd.f32 %v1829_v25, %v4025_v28  ;;  %v1790_v31 = vpop.f32.mrb[34].mxu0  ;;  %v1831_v32 = vpop.f32.mrb[34].mxu1  ;;  %v4026_v24 = vld [vmem:[#allocation21_spill] sm:$0xff]  ;;  %v4027_v26 = vld [vmem:[#allocation22_spill] sm:$0xff] }
 0x51e   :  { %v1838_v33 = vmul.f32 0.5, %v1834_v21  ;;  %v1791_v34 = vpop.f32.mrb[35].mxu0  ;;  %v1832_v35 = vpop.f32.mrb[35].mxu1  ;;  %v4028_v31 = vld [vmem:[#allocation23_spill] sm:$0xff] }
 0x51f   :  { %v1842_v37 = vmul.f32 0.5, %v1835_v27  ;;  %v1847_v38 = vmul.f32 0.5, %v1837_v30 }
 0x520   :  { %3224 = vtanh.f32 %v1838_v33  ;;  %v4029_v33 = vld [vmem:[#allocation24_spill] sm:$0xff] }
 0x521   :  { %3226 = vtanh.f32 %v1842_v37 }
 0x522   :  { %3228 = vtanh.f32 %v1836_v23 }
 0x523   :  { %3230 = vtanh.f32 %v1847_v38 }
 0x52a   :  { %v3225_v39 = vpop.eup %3224 }
 0x52b   :  { %v3227_v41 = vpop.eup %3226  ;;  %v1840_v42 = vmul.f32 0.5, %v3225_v39 }
 0x52c   :  { %v1844_v43 = vmul.f32 0.5, %v3227_v41  ;;  %v3229_v19 = vpop.eup %3228 }
 0x52d   :  { %v1841_v44 = vadd.f32 0.5, %v1840_v42  ;;  %v3231_v17 = vpop.eup %3230 }
 0x52e   :  { %v1845_v12 = vadd.f32 0.5, %v1844_v43  ;;  %v1849_v40 = vmul.f32 0.5, %v3231_v17 }
 0x52f   :  { %v1852_v14 = vmul.f32 %v3229_v19, %v1841_v44 }
 0x530   :  { %v1851_v15 = vmul.f32 %v1845_v12, %v3845_v10  ;;  %v1850_v18 = vadd.f32 0.5, %v1849_v40 }
 0x532   :  { %v3890_v16 = vadd.f32 %v1852_v14, %v1851_v15 }
 0x534   :  { %3232 = vtanh.f32 %v3890_v16 }
 0x53e   :  { %v3233_v20 = vpop.eup %3232 }
 0x53f   :  { %v1855_v21 = vmul.f32 %v3233_v20, %v1850_v18 }
 0x541   :  { %v1856_v22 = vpack.c.bf16 %v1855_v21, %v1855_v21 }
 0x543   :  { %2973 = vst [vmem:[%s3992_s4 + $0x10] sm:$0xf] %v1856_v22  ;;  %2091 = vmatmul.mubr.bf16.vlgmr.msra.gmra.mrb[36].mxu0 %v1856_v22  ;;  %2132 = vmatmul.mubr.bf16.vlgmr.msra.gmra.mrb[36].mxu1 %v1856_v22 }
 0x544   :  { %2365 = vmatpush1.bf16.msra.mxu0 %v3746_v47  ;;  %2406 = vmatpush1.bf16.msra.mxu1 %v3748_v51 }
 0x545   :  { %2366 = vmatprep.subr.bf16.mxu0 %v3754_v62  ;;  %2407 = vmatprep.subr.bf16.mxu1 %v3756_v7 }
 0x546   :  { %2396 = vmatprep.mubr.bf16.mxu0 %v4016_v6  ;;  %2437 = vmatprep.mubr.bf16.mxu1 %v4016_v6 }
 0x548   :  { %2367 = vmatpush1.bf16.msra.mxu0 %v3758_v54  ;;  %2408 = vmatpush1.bf16.msra.mxu1 %v3760_v53 }
 0x549   :  { %2368 = vmatprep.subr.bf16.mxu0 %v3766_v55  ;;  %2409 = vmatprep.subr.bf16.mxu1 %v3768_v56 }
 0x54c   :  { %2369 = vmatpush1.bf16.msra.mxu0 %v3770_v57  ;;  %2410 = vmatpush1.bf16.msra.mxu1 %v3772_v58 }
 0x54d   :  { %2370 = vmatprep.subr.bf16.mxu0 %v3778_v0  ;;  %2411 = vmatprep.subr.bf16.mxu1 %v3780_v9 }
 0x550   :  { %2371 = vmatpush1.bf16.msra.mxu0 %v3782_v13  ;;  %2412 = vmatpush1.bf16.msra.mxu1 %v3784_v59 }
 0x551   :  { %2372 = vmatprep.subr.bf16.mxu0 %v3790_v63  ;;  %2413 = vmatprep.subr.bf16.mxu1 %v3792_v60 }
 0x554   :  { %2373 = vmatpush1.bf16.msra.mxu0 %v3794_v2  ;;  %2414 = vmatpush1.bf16.msra.mxu1 %v3796_v3 }
 0x555   :  { %2374 = vmatprep.subr.bf16.mxu0 %v3802_v1  ;;  %2415 = vmatprep.subr.bf16.mxu1 %v3804_v4 }
 0x558   :  { %2375 = vmatpush1.bf16.msra.mxu0 %v3806_v46  ;;  %2416 = vmatpush1.bf16.msra.mxu1 %v3808_v5 }
 0x559   :  { %2376 = vmatprep.subr.bf16.mxu0 %v3814_v48  ;;  %2417 = vmatprep.subr.bf16.mxu1 %v3816_v50 }
 0x55c   :  { %2377 = vmatpush1.bf16.msra.mxu0 %v3818_v11  ;;  %2418 = vmatpush1.bf16.msra.mxu1 %v3820_v61 }
 0x55d   :  { %2378 = vmatprep.subr.bf16.mxu0 %v3826_v49  ;;  %2419 = vmatprep.subr.bf16.mxu1 %v3828_v52 }
 0x560   :  { %2379 = vmatpush1.bf16.msra.mxu0 %v3830_v45  ;;  %2420 = vmatpush1.bf16.msra.mxu1 %v3832_v8 }
 0x561   :  { %2670 = vmatprep.subr.bf16.mxu0 %v3742_v36  ;;  %2711 = vmatprep.subr.bf16.mxu1 %v3744_v29 }
 0x616   :  { %v2092_v10 = vpop.f32.mrb[36].mxu0  ;;  %v2133_v23 = vpop.f32.mrb[36].mxu1 }
 0x617   :  { %v2140_v25 = vadd.f32 %v2092_v10, %v4026_v24  ;;  %v2142_v27 = vadd.f32 %v2133_v23, %v4027_v26  ;;  %v2094_v28 = vpop.f32.mrb[37].mxu0  ;;  %v2135_v30 = vpop.f32.mrb[37].mxu1 }
 0x618   :  { %v2141_v32 = vadd.f32 %v2094_v28, %v4028_v31  ;;  %v2143_v34 = vadd.f32 %v2135_v30, %v4029_v33  ;;  %v2096_v35 = vpop.f32.mrb[38].mxu0  ;;  %v2137_v37 = vpop.f32.mrb[38].mxu1  ;;  %v4034_v31 = vld [vmem:[#allocation29_spill] sm:$0xff]  ;;  %v4035_v33 = vld [vmem:[#allocation30_spill] sm:$0xff] }
 0x619   :  { %v2144_v38 = vmul.f32 0.5, %v2140_v25  ;;  %v2097_v39 = vpop.f32.mrb[39].mxu0  ;;  %v2138_v41 = vpop.f32.mrb[39].mxu1 }
 0x61a   :  { %v2148_v36 = vmul.f32 0.5, %v2141_v32  ;;  %v2153_v29 = vmul.f32 0.5, %v2143_v34  ;;  %v4037_v41 = vld [vmem:[#allocation32_spill] sm:$0xff] }
 0x61b   :  { %3234 = vtanh.f32 %v2144_v38  ;;  %v4036_v38 = vld [vmem:[#allocation31_spill] sm:$0xff] }
 0x61c   :  { %3236 = vtanh.f32 %v2148_v36 }
 0x61d   :  { %3238 = vtanh.f32 %v2142_v27 }
 0x61e   :  { %3240 = vtanh.f32 %v2153_v29 }
 0x625   :  { %v3235_v42 = vpop.eup %3234 }
 0x626   :  { %v3237_v43 = vpop.eup %3236  ;;  %v2146_v44 = vmul.f32 0.5, %v3235_v42 }
 0x627   :  { %v2150_v19 = vmul.f32 0.5, %v3237_v43  ;;  %v3239_v14 = vpop.eup %3238 }
 0x628   :  { %v2147_v12 = vadd.f32 0.5, %v2146_v44  ;;  %v3241_v20 = vpop.eup %3240 }
 0x629   :  { %v2151_v15 = vadd.f32 0.5, %v2150_v19  ;;  %v2155_v21 = vmul.f32 0.5, %v3241_v20 }
 0x62a   :  { %v2158_v17 = vmul.f32 %v3239_v14, %v2147_v12 }
 0x62b   :  { %v2157_v40 = vmul.f32 %v2151_v15, %v3890_v16  ;;  %v2156_v22 = vadd.f32 0.5, %v2155_v21 }
 0x62d   :  { %v3935_v18 = vadd.f32 %v2158_v17, %v2157_v40 }
 0x62f   :  { %3242 = vtanh.f32 %v3935_v18 }
 0x639   :  { %v3243_v10 = vpop.eup %3242 }
 0x63a   :  { %v2161_v23 = vmul.f32 %v3243_v10, %v2156_v22 }
 0x63c   :  { %v2162_v24 = vpack.c.bf16 %v2161_v23, %v2161_v23 }
 0x63e   :  { %3006 = vst [vmem:[%s3992_s4 + $0x14] sm:$0xf] %v2162_v24  ;;  %2397 = vmatmul.mubr.bf16.vlgmr.msra.gmra.mrb[40].mxu0 %v2162_v24  ;;  %2438 = vmatmul.mubr.bf16.vlgmr.msra.gmra.mrb[40].mxu1 %v2162_v24 }
 0x63f   :  { %2671 = vmatpush1.bf16.msra.mxu0 %v3746_v47  ;;  %2712 = vmatpush1.bf16.msra.mxu1 %v3748_v51  ;;  %v4030_v51 = vld [vmem:[#allocation25_spill] sm:$0xff] }
 0x640   :  { %2672 = vmatprep.subr.bf16.mxu0 %v3754_v62  ;;  %2713 = vmatprep.subr.bf16.mxu1 %v3756_v7  ;;  %v4031_v7 = vld [vmem:[#allocation26_spill] sm:$0xff] }
 0x641   :  { %2702 = vmatprep.mubr.bf16.mxu0 %v4016_v6  ;;  %2743 = vmatprep.mubr.bf16.mxu1 %v4016_v6 }
 0x643   :  { %2673 = vmatpush1.bf16.msra.mxu0 %v3758_v54  ;;  %2714 = vmatpush1.bf16.msra.mxu1 %v3760_v53 }
 0x644   :  { %2674 = vmatprep.subr.bf16.mxu0 %v3766_v55  ;;  %2715 = vmatprep.subr.bf16.mxu1 %v3768_v56  ;;  %v4032_v56 = vld [vmem:[#allocation27_spill] sm:$0xff] }
 0x647   :  { %2675 = vmatpush1.bf16.msra.mxu0 %v3770_v57  ;;  %2716 = vmatpush1.bf16.msra.mxu1 %v3772_v58  ;;  %v4033_v58 = vld [vmem:[#allocation28_spill] sm:$0xff] }
 0x648   :  { %2676 = vmatprep.subr.bf16.mxu0 %v3778_v0  ;;  %2717 = vmatprep.subr.bf16.mxu1 %v3780_v9 }
 0x64b   :  { %2677 = vmatpush1.bf16.msra.mxu0 %v3782_v13  ;;  %2718 = vmatpush1.bf16.msra.mxu1 %v3784_v59 }
 0x64c   :  { %2678 = vmatprep.subr.bf16.mxu0 %v3790_v63  ;;  %2719 = vmatprep.subr.bf16.mxu1 %v3792_v60 }
 0x64f   :  { %2679 = vmatpush1.bf16.msra.mxu0 %v3794_v2  ;;  %2720 = vmatpush1.bf16.msra.mxu1 %v3796_v3 }
 0x650   :  { %2680 = vmatprep.subr.bf16.mxu0 %v3802_v1  ;;  %2721 = vmatprep.subr.bf16.mxu1 %v3804_v4 }
 0x653   :  { %2681 = vmatpush1.bf16.msra.mxu0 %v3806_v46  ;;  %2722 = vmatpush1.bf16.msra.mxu1 %v3808_v5 }
 0x654   :  { %2682 = vmatprep.subr.bf16.mxu0 %v3814_v48  ;;  %2723 = vmatprep.subr.bf16.mxu1 %v3816_v50 }
 0x657   :  { %2683 = vmatpush1.bf16.msra.mxu0 %v3818_v11  ;;  %2724 = vmatpush1.bf16.msra.mxu1 %v3820_v61 }
 0x658   :  { %2684 = vmatprep.subr.bf16.mxu0 %v3826_v49  ;;  %2725 = vmatprep.subr.bf16.mxu1 %v3828_v52 }
 0x65b   :  { %2685 = vmatpush1.bf16.msra.mxu0 %v3830_v45  ;;  %2726 = vmatpush1.bf16.msra.mxu1 %v3832_v8 }
 0x711   :  { %v2398_v6 = vpop.f32.mrb[40].mxu0  ;;  %v2439_v47 = vpop.f32.mrb[40].mxu1 }
 0x712   :  { %v2446_v62 = vadd.f32 %v2398_v6, %v4030_v51  ;;  %v2448_v54 = vadd.f32 %v2439_v47, %v4031_v7  ;;  %v2400_v53 = vpop.f32.mrb[41].mxu0  ;;  %v2441_v55 = vpop.f32.mrb[41].mxu1 }
 0x713   :  { %v2447_v57 = vadd.f32 %v2400_v53, %v4032_v56  ;;  %v2449_v0 = vadd.f32 %v2441_v55, %v4033_v58  ;;  %v2402_v9 = vpop.f32.mrb[42].mxu0  ;;  %v2443_v13 = vpop.f32.mrb[42].mxu1 }
 0x714   :  { %v2450_v59 = vmul.f32 0.5, %v2446_v62  ;;  %v2403_v63 = vpop.f32.mrb[43].mxu0  ;;  %v2444_v60 = vpop.f32.mrb[43].mxu1 }
 0x715   :  { %v2454_v2 = vmul.f32 0.5, %v2447_v57  ;;  %v2459_v3 = vmul.f32 0.5, %v2449_v0 }
 0x716   :  { %3244 = vtanh.f32 %v2450_v59 }
 0x717   :  { %3246 = vtanh.f32 %v2454_v2 }
 0x718   :  { %3248 = vtanh.f32 %v2448_v54 }
 0x719   :  { %3250 = vtanh.f32 %v2459_v3 }
 0x720   :  { %v3245_v1 = vpop.eup %3244 }
 0x721   :  { %v3247_v4 = vpop.eup %3246  ;;  %v2452_v46 = vmul.f32 0.5, %v3245_v1 }
 0x722   :  { %v2456_v5 = vmul.f32 0.5, %v3247_v4  ;;  %v3249_v50 = vpop.eup %3248 }
 0x723   :  { %v2453_v48 = vadd.f32 0.5, %v2452_v46  ;;  %v3251_v45 = vpop.eup %3250 }
 0x724   :  { %v2457_v11 = vadd.f32 0.5, %v2456_v5  ;;  %v2461_v8 = vmul.f32 0.5, %v3251_v45 }
 0x725   :  { %v2464_v61 = vmul.f32 %v3249_v50, %v2453_v48 }
 0x726   :  { %v2463_v49 = vmul.f32 %v2457_v11, %v3935_v18  ;;  %v2462_v16 = vadd.f32 0.5, %v2461_v8 }
 0x728   :  { %v2465_v52 = vadd.f32 %v2464_v61, %v2463_v49 }
 0x72a   :  { %3252 = vtanh.f32 %v2465_v52 }
 0x734   :  { %v3253_v25 = vpop.eup %3252 }
 0x735   :  { %v2467_v26 = vmul.f32 %v3253_v25, %v2462_v16 }
 0x737   :  { %v2468_v27 = vpack.c.bf16 %v2467_v26, %v2467_v26 }
 0x739   :  { %3039 = vst [vmem:[%s3992_s4 + $0x18] sm:$0xf] %v2468_v27  ;;  %2703 = vmatmul.mubr.bf16.vlgmr.msra.gmra.mrb[44].mxu0 %v2468_v27  ;;  %2744 = vmatmul.mubr.bf16.vlgmr.msra.gmra.mrb[44].mxu1 %v2468_v27 }
 0x80c   :  { %v2704_v28 = vpop.f32.mrb[44].mxu0  ;;  %v2745_v30 = vpop.f32.mrb[44].mxu1 }
 0x80d   :  { %v2752_v32 = vadd.f32 %v2704_v28, %v4034_v31  ;;  %v2754_v34 = vadd.f32 %v2745_v30, %v4035_v33  ;;  %v2706_v35 = vpop.f32.mrb[45].mxu0  ;;  %v2747_v37 = vpop.f32.mrb[45].mxu1 }
 0x80e   :  { %v2753_v39 = vadd.f32 %v2706_v35, %v4036_v38  ;;  %v2755_v36 = vadd.f32 %v2747_v37, %v4037_v41  ;;  %v2708_v29 = vpop.f32.mrb[46].mxu0  ;;  %v2749_v42 = vpop.f32.mrb[46].mxu1 }
 0x80f   :  { %v2756_v43 = vmul.f32 0.5, %v2752_v32  ;;  %v2709_v44 = vpop.f32.mrb[47].mxu0  ;;  %v2750_v19 = vpop.f32.mrb[47].mxu1 }
 0x810   :  { %v2760_v12 = vmul.f32 0.5, %v2753_v39  ;;  %v2765_v14 = vmul.f32 0.5, %v2755_v36 }
 0x811   :  { %3254 = vtanh.f32 %v2756_v43 }
 0x812   :  { %3256 = vtanh.f32 %v2760_v12 }
 0x813   :  { %3258 = vtanh.f32 %v2754_v34 }
 0x814   :  { %3260 = vtanh.f32 %v2765_v14 }
 0x81b   :  { %v3255_v15 = vpop.eup %3254 }
 0x81c   :  { %v3257_v17 = vpop.eup %3256  ;;  %v2758_v40 = vmul.f32 0.5, %v3255_v15 }
 0x81d   :  { %v2762_v18 = vmul.f32 0.5, %v3257_v17  ;;  %v3259_v21 = vpop.eup %3258 }
 0x81e   :  { %v2759_v20 = vadd.f32 0.5, %v2758_v40  ;;  %v3261_v6 = vpop.eup %3260 }
 0x81f   :  { %v2763_v22 = vadd.f32 0.5, %v2762_v18  ;;  %v2767_v47 = vmul.f32 0.5, %v3261_v6 }
 0x820   :  { %v2770_v10 = vmul.f32 %v3259_v21, %v2759_v20 }
 0x821   :  { %v2769_v23 = vmul.f32 %v2763_v22, %v2465_v52  ;;  %v2768_v51 = vadd.f32 0.5, %v2767_v47 }
 0x823   :  { %v2771_v24 = vadd.f32 %v2770_v10, %v2769_v23 }
 0x825   :  { %3262 = vtanh.f32 %v2771_v24 }
 0x82f   :  { %v3263_v62 = vpop.eup %3262 }
 0x830   :  { %v2773_v7 = vmul.f32 %v3263_v62, %v2768_v51 }
 0x832   :  { %v2774_v54 = vpack.c.bf16 %v2773_v7, %v2773_v7 }
 0x834   :  { %3072 = vst [vmem:[%s3992_s4 + $0x1c] sm:$0xf] %v2774_v54 }
 0x835   :  { %2783 = vsyncpa [#allocation6], 1 }
 0x836   :  { %2784 = vsyncpa [#allocation8], 1 }

</bundles_post_ra>
